<compile_context>
chip_gen: v7x
topology: tpu7x:2x2x1
jax: 0.10.0
libtpu: 0.0.40
codegen_flags: <defaults>
</compile_context>

<pallas_src>
import functools

import numpy as np

import jax
import jax.numpy as jnp
from jax.experimental import pallas as pl
from jax.experimental.pallas import tpu as pltpu

_EPS = 1e-5          # nn.GroupNorm default
_NEG_SLOPE = 0.01    # nn.LeakyReLU default
# Whole-network working set here is < 1 MiB; 32 MiB keeps us safely inside
# v7x's 64 MiB physical VMEM (and every generation's scoped default).
_VMEM_LIMIT = 32 * 1024 * 1024


# ----------------------------- kernel helpers -----------------------------

def _tap_conv(gather_ref, w_ref, z, *, bf16_mxu):
    """4x4 conv as a sum over its 16 taps:  sum_t (G_t @ z) @ W_t.

    gather_ref: (taps, M_out, M_in) bf16 0/1 patch-gather matrices (the
                in-VMEM im2col); an all-zero row encodes the conv's padding.
    w_ref:      (taps*C_in, C_out) conv weight, tap-major rows (bf16).
    z:          (M_in, C_in) activation (bf16), rows ordered (sample, h, w).
    """
    cin = z.shape[1]
    y = jnp.zeros((gather_ref.shape[1], w_ref.shape[1]), jnp.float32)
    for t in range(gather_ref.shape[0]):
        p_t = jnp.dot(gather_ref[t], z, preferred_element_type=jnp.float32)
        w_t = w_ref[t * cin:(t + 1) * cin, :]
        if bf16_mxu:
            p_t = p_t.astype(jnp.bfloat16)   # exact: one source row per patch row
        else:
            w_t = w_t.astype(jnp.float32)    # head path (batch-sum rows stay f32)
        y = y + jnp.dot(p_t, w_t, preferred_element_type=jnp.float32)
    return y


def _group_norm_lrelu(y, gamma_ref, beta_ref, ag_ref, agt_ref, ssel_ref,
                      sselt_ref, *, eps, neg_slope):
    """Per-(sample, group) GroupNorm (two-pass variance) + LeakyReLU on the
    batched conv accumulator y of shape (N*HW, C) (rows sample-major).

    ssel (N, N*HW): 0/1 row->sample selector; sselT its transpose.
    ag   (C, G):    channel->group one-hot scaled by 1/(HW*cpg) (folds mean).
    agT  (G, C):    group->channel one-hot (broadcast stats back to channels).
    All statistics stay in f32; one-hot matmuls keep the lane (C) layout fixed.
    """
    f32 = jnp.float32
    ssel, sselt = ssel_ref[...], sselt_ref[...]
    ag, agt = ag_ref[...], agt_ref[...]
    sum_c = jnp.dot(ssel, y, preferred_element_type=f32)                  # (N, C)
    mean_g = jnp.dot(sum_c, ag, preferred_element_type=f32)               # (N, G)
    mean_c = jnp.dot(mean_g, agt, preferred_element_type=f32)             # (N, C)
    d = y - jnp.dot(sselt, mean_c, preferred_element_type=f32)            # centered
    var_g = jnp.dot(jnp.dot(ssel, d * d, preferred_element_type=f32), ag,
                    preferred_element_type=f32)                           # (N, G)
    inv_c = jnp.dot(jax.lax.rsqrt(var_g + eps), agt,
                    preferred_element_type=f32)                           # (N, C)
    scale_c = inv_c * gamma_ref[...]                                      # (N, C)
    z = d * jnp.dot(sselt, scale_c, preferred_element_type=f32) + beta_ref[...]
    return jnp.where(z > 0, z, neg_slope * z)                             # LeakyReLU


def _critic_kernel(*refs, num_layers, out_scale, eps, neg_slope):
    """Whole Critic forward; only HBM traffic is operand prefetch + the tiny
    result.  Ref order must match the arg order built in critic_forward."""
    it = iter(refs[:-1])
    out_ref = refs[-1]

    # Layer 0: pre-im2col'ed input patches, one MXU dot (K = 16*c_in, unpadded).
    p0 = next(it)[...]
    w0 = next(it)[...]
    y = jnp.dot(p0, w0, preferred_element_type=jnp.float32)
    gn = [next(it) for _ in range(6)]
    z = _group_norm_lrelu(y, *gn, eps=eps, neg_slope=neg_slope)
    zb = z.astype(jnp.bfloat16)

    # Layers 1..L-1: in-VMEM im2col (tap gathers) + conv + GroupNorm + LeakyReLU.
    for _ in range(num_layers - 1):
        g_ref = next(it)
        w_ref = next(it)
        y = _tap_conv(g_ref, w_ref, zb, bf16_mxu=True)
        gn = [next(it) for _ in range(6)]
        z = _group_norm_lrelu(y, *gn, eps=eps, neg_slope=neg_slope)
        zb = z.astype(jnp.bfloat16)

    # Head: 4x4 valid conv; torch's x.mean(0) is folded in as a batch-sum
    # gather plus a 1/N scale at the store.
    g_ref = next(it)
    w_ref = next(it)
    out_ref[...] = _tap_conv(g_ref, w_ref, zb, bf16_mxu=False) * out_scale


# --------------------------- host-side builders ---------------------------

def _im2col(x_nhwc, k, stride, pad):
    """k*k patches ((kh, kw) major, channel fastest) -> (N*Ho*Wo, k*k*C)."""
    if pad:
        x_nhwc = jnp.pad(x_nhwc, ((0, 0), (pad, pad), (pad, pad), (0, 0)))
    n, hp, wp, c = x_nhwc.shape
    ho = (hp - k) // stride + 1
    wo = (wp - k) // stride + 1
    cols = []
    for kh in range(k):
        for kw in range(k):
            cols.append(x_nhwc[:, kh:kh + stride * ho:stride,
                               kw:kw + stride * wo:stride, :])
    patches = jnp.concatenate(cols, axis=-1)
    return patches.reshape(n * ho * wo, k * k * c), ho, wo


def _w_to_mat(w_ochw):
    """PyTorch conv weight (Cout, Cin, kh, kw) -> (kh*kw*Cin, Cout), tap-major."""
    cout = w_ochw.shape[0]
    return jnp.transpose(w_ochw, (2, 3, 1, 0)).reshape(-1, cout)


def _build_gather(n, h, w, k, stride, pad):
    """0/1 tap-gather matrices (k*k, N*Ho*Wo, N*H*W) for a kxk conv.

    Row (n, i, j) of tap (kh, kw) selects flattened source row
    (n, stride*i + kh - pad, stride*j + kw - pad); out-of-bounds positions
    (the conv's zero padding) stay all-zero rows.
    """
    ho = (h + 2 * pad - k) // stride + 1
    wo = (w + 2 * pad - k) // stride + 1
    g = np.zeros((k * k, n * ho * wo, n * h * w), np.float32)
    for kh in range(k):
        for kw in range(k):
            t = kh * k + kw
            for i in range(ho):
                hi = stride * i + kh - pad
                if hi < 0 or hi >= h:
                    continue
                for j in range(wo):
                    wi = stride * j + kw - pad
                    if wi < 0 or wi >= w:
                        continue
                    for s in range(n):
                        g[t, s * ho * wo + i * wo + j, s * h * w + hi * w + wi] = 1.0
    return g, ho, wo


def _build_gn_consts(n, hw, c, groups):
    """Selector / one-hot constants for per-(sample, group) GroupNorm."""
    cpg = c // groups
    ssel = np.kron(np.eye(n, dtype=np.float32), np.ones((1, hw), np.float32))
    ag = np.kron(np.eye(groups, dtype=np.float32),
                 np.ones((cpg, 1), np.float32)) / float(hw * cpg)
    agt = np.kron(np.eye(groups, dtype=np.float32), np.ones((1, cpg), np.float32))
    return ssel, np.ascontiguousarray(ssel.T), ag, agt


# ------------------------------ forward pass ------------------------------

def critic_forward(params, x_nchw, *, cpg=16, mean=True):
    """DualGan Critic forward: one fused Pallas call for the whole network."""
    n = x_nchw.shape[0]
    x = jnp.transpose(x_nchw, (0, 2, 3, 1)).astype(jnp.float32)     # NCHW -> NHWC
    layers = params['layers']

    # Layer-0 patches: im2col of the (tiny) network input; K = 16*c_in stays
    # unpadded (no 48 -> 128 zero-pad in HBM).
    p0, out_h, out_w = _im2col(x, 4, 2, 1)
    args = [p0.astype(jnp.bfloat16)]

    for li, layer in enumerate(layers):
        cout = layer['w'].shape[0]
        groups = cout // cpg                       # static (shape-derived)
        if li > 0:
            gmat, out_h, out_w = _build_gather(n, out_h, out_w, 4, 2, 1)
            args.append(jnp.asarray(gmat, jnp.bfloat16))
        args.append(_w_to_mat(layer['w']).astype(jnp.bfloat16))
        ssel, sselt, ag, agt = _build_gn_consts(n, out_h * out_w, cout, groups)
        args += [layer['gamma'].astype(jnp.float32).reshape(1, cout),
                 layer['beta'].astype(jnp.float32).reshape(1, cout),
                 jnp.asarray(ag), jnp.asarray(agt),
                 jnp.asarray(ssel), jnp.asarray(sselt)]

    g_head, head_h, head_w = _build_gather(n, out_h, out_w, 4, 1, 0)
    if mean:   # fold torch's x.mean(0): sum samples in the gather, 1/N in-kernel
        g_head = g_head.reshape(16, n, head_h * head_w, -1).sum(axis=1)
    args.append(jnp.asarray(g_head, jnp.bfloat16))
    args.append(_w_to_mat(params['w_out']).astype(jnp.bfloat16))

    rows = g_head.shape[1]
    kernel = functools.partial(_critic_kernel, num_layers=len(layers),
                               out_scale=(1.0 / n) if mean else 1.0,
                               eps=_EPS, neg_slope=_NEG_SLOPE)
    out = pl.pallas_call(
        kernel,
        out_shape=jax.ShapeDtypeStruct((rows, 1), jnp.float32),
        compiler_params=pltpu.CompilerParams(vmem_limit_bytes=_VMEM_LIMIT),
    )(*args)
    if mean:
        return out.reshape(1, head_h, head_w)
    return out.reshape(n, 1, head_h, head_w)


# ------------------------- params + pure-JAX reference -------------------------

def build_critic_params(key, imsize, c_in=3):
    """Mirror Critic.add_modules; every parameter ~ N(0, 0.02).  Only array
    leaves (no Python ints), so the pytree jit-traces cleanly."""
    layers = []
    num_c = 64
    keys = iter(jax.random.split(key, 64))
    size = imsize
    while size > 4:
        layers.append(dict(
            w=0.02 * jax.random.normal(next(keys), (num_c, c_in, 4, 4), jnp.float32),
            gamma=0.02 * jax.random.normal(next(keys), (num_c,), jnp.float32),
            beta=0.02 * jax.random.normal(next(keys), (num_c,), jnp.float32)))
        c_in = num_c
        num_c *= 2
        size = (size - 2) // 2 + 1
    w_out = 0.02 * jax.random.normal(next(keys), (1, c_in, 4, 4), jnp.float32)
    return dict(layers=layers, w_out=w_out)


def critic_reference(params, x_nchw, *, cpg=16, mean=True):
    """Pure-JAX reference (bf16 MXU operands mirrored, f32 stats/accumulation)."""
    x = jnp.transpose(x_nchw, (0, 2, 3, 1)).astype(jnp.float32)
    n = x.shape[0]
    for layer in params['layers']:
        cout = layer['w'].shape[0]
        patches, ho, wo = _im2col(x, 4, 2, 1)
        y = jnp.dot(patches.astype(jnp.bfloat16),
                    _w_to_mat(layer['w']).astype(jnp.bfloat16),
                    preferred_element_type=jnp.float32).reshape(n, ho * wo, cout)
        g = cout // cpg
        yg = y.reshape(n, ho * wo, g, cout // g)
        m = yg.mean(axis=(1, 3), keepdims=True)
        v = ((yg - m) ** 2).mean(axis=(1, 3), keepdims=True)
        yn = ((yg - m) / jnp.sqrt(v + _EPS)).reshape(n, ho * wo, cout)
        yn = yn * layer['gamma'] + layer['beta']
        x = jnp.where(yn > 0, yn, _NEG_SLOPE * yn).reshape(n, ho, wo, cout)
    patches, ho, wo = _im2col(x, 4, 1, 0)
    y = jnp.dot(patches.astype(jnp.bfloat16),
                _w_to_mat(params['w_out']).astype(jnp.bfloat16),
                preferred_element_type=jnp.float32).reshape(n, 1, ho, wo)
    return y.mean(0) if mean else y


if __name__ == "__main__":
    key = jax.random.PRNGKey(0)
    kp, kx = jax.random.split(key)
    imsize = 16
    params = build_critic_params(kp, imsize)
    x = jax.random.normal(kx, (2, 3, imsize, imsize), jnp.float32)   # NCHW input

    fwd = jax.jit(functools.partial(critic_forward, cpg=16, mean=True))
    out = jax.block_until_ready(fwd(params, x))
    ref = jax.block_until_ready(critic_reference(params, x, cpg=16, mean=True))
    assert out.shape == (1, 1, 1), out.shape
    assert jnp.allclose(out, ref, atol=5e-4, rtol=5e-3), (out, ref)

    fwd_all = jax.jit(functools.partial(critic_forward, cpg=16, mean=False))
    out_all = jax.block_until_ready(fwd_all(params, x))
    ref_all = jax.block_until_ready(critic_reference(params, x, cpg=16, mean=False))
    assert out_all.shape == (2, 1, 1, 1), out_all.shape
    assert jnp.allclose(out_all, ref_all, atol=5e-4, rtol=5e-3), (out_all, ref_all)

    print("KERNEL_OK")
</pallas_src>

<mosaic_0001>
module attributes {stable_mosaic.version = 11 : i64} {
  func.func @_critic_kernel(%arg0: memref<128x48xbf16, #tpu.memory_space<vmem>>, %arg1: memref<48x64xbf16, #tpu.memory_space<vmem>>, %arg2: memref<1x64xf32, #tpu.memory_space<vmem>>, %arg3: memref<1x64xf32, #tpu.memory_space<vmem>>, %arg4: memref<64x4xf32, #tpu.memory_space<vmem>>, %arg5: memref<4x64xf32, #tpu.memory_space<vmem>>, %arg6: memref<2x128xf32, #tpu.memory_space<vmem>>, %arg7: memref<128x2xf32, #tpu.memory_space<vmem>>, %arg8: memref<16x32x128xbf16, #tpu.memory_space<vmem>>, %arg9: memref<1024x128xbf16, #tpu.memory_space<vmem>>, %arg10: memref<1x128xf32, #tpu.memory_space<vmem>>, %arg11: memref<1x128xf32, #tpu.memory_space<vmem>>, %arg12: memref<128x8xf32, #tpu.memory_space<vmem>>, %arg13: memref<8x128xf32, #tpu.memory_space<vmem>>, %arg14: memref<2x32xf32, #tpu.memory_space<vmem>>, %arg15: memref<32x2xf32, #tpu.memory_space<vmem>>, %arg16: memref<16x1x32xbf16, #tpu.memory_space<vmem>>, %arg17: memref<2048x1xbf16, #tpu.memory_space<vmem>>, %arg18: memref<1x1xf32, #tpu.memory_space<vmem>>) attributes {dimension_semantics = [], scalar_prefetch = 0 : i64, scratch_operands = 0 : i64, tpu.core_type = #tpu.core_type<tc>} {
    %c0 = arith.constant 0 : index
    %c0_0 = arith.constant 0 : index
    %0 = vector.load %arg0[%c0, %c0_0] : memref<128x48xbf16, #tpu.memory_space<vmem>>, vector<128x48xbf16>
    %c0_1 = arith.constant 0 : index
    %c0_2 = arith.constant 0 : index
    %1 = vector.load %arg1[%c0_1, %c0_2] : memref<48x64xbf16, #tpu.memory_space<vmem>>, vector<48x64xbf16>
    %cst = arith.constant dense<0.000000e+00> : vector<128x64xf32>
    %2 = tpu.matmul %0, %1, %cst {dimension_numbers = #tpu.dot_dimension_numbers<[1], [0], [0], [1], [0, 0, 1, 1], [], []>} : vector<128x48xbf16>, vector<48x64xbf16>, vector<128x64xf32> -> vector<128x64xf32>
    %c0_3 = arith.constant 0 : index
    %c0_4 = arith.constant 0 : index
    %3 = vector.load %arg6[%c0_3, %c0_4] : memref<2x128xf32, #tpu.memory_space<vmem>>, vector<2x128xf32>
    %c0_5 = arith.constant 0 : index
    %c0_6 = arith.constant 0 : index
    %4 = vector.load %arg7[%c0_5, %c0_6] : memref<128x2xf32, #tpu.memory_space<vmem>>, vector<128x2xf32>
    %c0_7 = arith.constant 0 : index
    %c0_8 = arith.constant 0 : index
    %5 = vector.load %arg4[%c0_7, %c0_8] : memref<64x4xf32, #tpu.memory_space<vmem>>, vector<64x4xf32>
    %c0_9 = arith.constant 0 : index
    %c0_10 = arith.constant 0 : index
    %6 = vector.load %arg5[%c0_9, %c0_10] : memref<4x64xf32, #tpu.memory_space<vmem>>, vector<4x64xf32>
    %cst_11 = arith.constant dense<0.000000e+00> : vector<2x64xf32>
    %7 = tpu.matmul %3, %2, %cst_11 {dimension_numbers = #tpu.dot_dimension_numbers<[1], [0], [0], [1], [0, 0, 1, 1], [], []>} : vector<2x128xf32>, vector<128x64xf32>, vector<2x64xf32> -> vector<2x64xf32>
    %cst_12 = arith.constant dense<0.000000e+00> : vector<2x4xf32>
    %8 = tpu.matmul %7, %5, %cst_12 {dimension_numbers = #tpu.dot_dimension_numbers<[1], [0], [0], [1], [0, 0, 1, 1], [], []>} : vector<2x64xf32>, vector<64x4xf32>, vector<2x4xf32> -> vector<2x4xf32>
    %cst_13 = arith.constant dense<0.000000e+00> : vector<2x64xf32>
    %9 = tpu.matmul %8, %6, %cst_13 {dimension_numbers = #tpu.dot_dimension_numbers<[1], [0], [0], [1], [0, 0, 1, 1], [], []>} : vector<2x4xf32>, vector<4x64xf32>, vector<2x64xf32> -> vector<2x64xf32>
    %cst_14 = arith.constant dense<0.000000e+00> : vector<128x64xf32>
    %10 = tpu.matmul %4, %9, %cst_14 {dimension_numbers = #tpu.dot_dimension_numbers<[1], [0], [0], [1], [0, 0, 1, 1], [], []>} : vector<128x2xf32>, vector<2x64xf32>, vector<128x64xf32> -> vector<128x64xf32>
    %11 = arith.subf %2, %10 : vector<128x64xf32>
    %12 = arith.mulf %11, %11 : vector<128x64xf32>
    %cst_15 = arith.constant dense<0.000000e+00> : vector<2x64xf32>
    %13 = tpu.matmul %3, %12, %cst_15 {dimension_numbers = #tpu.dot_dimension_numbers<[1], [0], [0], [1], [0, 0, 1, 1], [], []>} : vector<2x128xf32>, vector<128x64xf32>, vector<2x64xf32> -> vector<2x64xf32>
    %cst_16 = arith.constant dense<0.000000e+00> : vector<2x4xf32>
    %14 = tpu.matmul %13, %5, %cst_16 {dimension_numbers = #tpu.dot_dimension_numbers<[1], [0], [0], [1], [0, 0, 1, 1], [], []>} : vector<2x64xf32>, vector<64x4xf32>, vector<2x4xf32> -> vector<2x4xf32>
    %cst_17 = arith.constant 9.99999974E-6 : f32
    %15 = vector.broadcast %cst_17 : f32 to vector<2x4xf32>
    %16 = arith.addf %14, %15 : vector<2x4xf32>
    %17 = math.rsqrt %16 : vector<2x4xf32>
    %cst_18 = arith.constant dense<0.000000e+00> : vector<2x64xf32>
    %18 = tpu.matmul %17, %6, %cst_18 {dimension_numbers = #tpu.dot_dimension_numbers<[1], [0], [0], [1], [0, 0, 1, 1], [], []>} : vector<2x4xf32>, vector<4x64xf32>, vector<2x64xf32> -> vector<2x64xf32>
    %c0_19 = arith.constant 0 : index
    %c0_20 = arith.constant 0 : index
    %19 = vector.load %arg2[%c0_19, %c0_20] : memref<1x64xf32, #tpu.memory_space<vmem>>, vector<1x64xf32>
    %20 = vector.broadcast %19 : vector<1x64xf32> to vector<2x64xf32>
    %21 = arith.mulf %18, %20 : vector<2x64xf32>
    %cst_21 = arith.constant dense<0.000000e+00> : vector<128x64xf32>
    %22 = tpu.matmul %4, %21, %cst_21 {dimension_numbers = #tpu.dot_dimension_numbers<[1], [0], [0], [1], [0, 0, 1, 1], [], []>} : vector<128x2xf32>, vector<2x64xf32>, vector<128x64xf32> -> vector<128x64xf32>
    %23 = arith.mulf %11, %22 : vector<128x64xf32>
    %c0_22 = arith.constant 0 : index
    %c0_23 = arith.constant 0 : index
    %24 = vector.load %arg3[%c0_22, %c0_23] : memref<1x64xf32, #tpu.memory_space<vmem>>, vector<1x64xf32>
    %25 = vector.broadcast %24 : vector<1x64xf32> to vector<128x64xf32>
    %26 = arith.addf %23, %25 : vector<128x64xf32>
    %cst_24 = arith.constant 0.000000e+00 : f32
    %27 = vector.broadcast %cst_24 : f32 to vector<128x64xf32>
    %28 = arith.cmpf ogt, %26, %27 : vector<128x64xf32>
    %cst_25 = arith.constant 0.00999999977 : f32
    %29 = vector.broadcast %cst_25 : f32 to vector<128x64xf32>
    %30 = arith.mulf %29, %26 : vector<128x64xf32>
    %31 = arith.select %28, %26, %30 : vector<128x64xi1>, vector<128x64xf32>
    %32 = arith.truncf %31 : vector<128x64xf32> to vector<128x64xbf16>
    %cst_26 = arith.constant 0.000000e+00 : f32
    %33 = vector.broadcast %cst_26 : f32 to vector<32x128xf32>
    %c0_27 = arith.constant 0 : index
    %c0_28 = arith.constant 0 : index
    %c0_29 = arith.constant 0 : index
    %34 = vector.load %arg8[%c0_27, %c0_28, %c0_29] : memref<16x32x128xbf16, #tpu.memory_space<vmem>>, vector<1x32x128xbf16>
    %35 = vector.shape_cast %34 : vector<1x32x128xbf16> to vector<32x128xbf16>
    %cst_30 = arith.constant dense<0.000000e+00> : vector<32x64xf32>
    %36 = tpu.matmul %35, %32, %cst_30 {dimension_numbers = #tpu.dot_dimension_numbers<[1], [0], [0], [1], [0, 0, 1, 1], [], []>} : vector<32x128xbf16>, vector<128x64xbf16>, vector<32x64xf32> -> vector<32x64xf32>
    %c0_31 = arith.constant 0 : index
    %c0_32 = arith.constant 0 : index
    %37 = vector.load %arg9[%c0_31, %c0_32] : memref<1024x128xbf16, #tpu.memory_space<vmem>>, vector<64x128xbf16>
    %38 = arith.truncf %36 : vector<32x64xf32> to vector<32x64xbf16>
    %cst_33 = arith.constant dense<0.000000e+00> : vector<32x128xf32>
    %39 = tpu.matmul %38, %37, %cst_33 {dimension_numbers = #tpu.dot_dimension_numbers<[1], [0], [0], [1], [0, 0, 1, 1], [], []>} : vector<32x64xbf16>, vector<64x128xbf16>, vector<32x128xf32> -> vector<32x128xf32>
    %40 = arith.addf %33, %39 : vector<32x128xf32>
    %c1 = arith.constant 1 : index
    %c0_34 = arith.constant 0 : index
    %c0_35 = arith.constant 0 : index
    %41 = vector.load %arg8[%c1, %c0_34, %c0_35] : memref<16x32x128xbf16, #tpu.memory_space<vmem>>, vector<1x32x128xbf16>
    %42 = vector.shape_cast %41 : vector<1x32x128xbf16> to vector<32x128xbf16>
    %cst_36 = arith.constant dense<0.000000e+00> : vector<32x64xf32>
    %43 = tpu.matmul %42, %32, %cst_36 {dimension_numbers = #tpu.dot_dimension_numbers<[1], [0], [0], [1], [0, 0, 1, 1], [], []>} : vector<32x128xbf16>, vector<128x64xbf16>, vector<32x64xf32> -> vector<32x64xf32>
    %c64 = arith.constant 64 : index
    %c0_37 = arith.constant 0 : index
    %44 = vector.load %arg9[%c64, %c0_37] : memref<1024x128xbf16, #tpu.memory_space<vmem>>, vector<64x128xbf16>
    %45 = arith.truncf %43 : vector<32x64xf32> to vector<32x64xbf16>
    %cst_38 = arith.constant dense<0.000000e+00> : vector<32x128xf32>
    %46 = tpu.matmul %45, %44, %cst_38 {dimension_numbers = #tpu.dot_dimension_numbers<[1], [0], [0], [1], [0, 0, 1, 1], [], []>} : vector<32x64xbf16>, vector<64x128xbf16>, vector<32x128xf32> -> vector<32x128xf32>
    %47 = arith.addf %40, %46 : vector<32x128xf32>
    %c2 = arith.constant 2 : index
    %c0_39 = arith.constant 0 : index
    %c0_40 = arith.constant 0 : index
    %48 = vector.load %arg8[%c2, %c0_39, %c0_40] : memref<16x32x128xbf16, #tpu.memory_space<vmem>>, vector<1x32x128xbf16>
    %49 = vector.shape_cast %48 : vector<1x32x128xbf16> to vector<32x128xbf16>
    %cst_41 = arith.constant dense<0.000000e+00> : vector<32x64xf32>
    %50 = tpu.matmul %49, %32, %cst_41 {dimension_numbers = #tpu.dot_dimension_numbers<[1], [0], [0], [1], [0, 0, 1, 1], [], []>} : vector<32x128xbf16>, vector<128x64xbf16>, vector<32x64xf32> -> vector<32x64xf32>
    %c128 = arith.constant 128 : index
    %c0_42 = arith.constant 0 : index
    %51 = vector.load %arg9[%c128, %c0_42] : memref<1024x128xbf16, #tpu.memory_space<vmem>>, vector<64x128xbf16>
    %52 = arith.truncf %50 : vector<32x64xf32> to vector<32x64xbf16>
    %cst_43 = arith.constant dense<0.000000e+00> : vector<32x128xf32>
    %53 = tpu.matmul %52, %51, %cst_43 {dimension_numbers = #tpu.dot_dimension_numbers<[1], [0], [0], [1], [0, 0, 1, 1], [], []>} : vector<32x64xbf16>, vector<64x128xbf16>, vector<32x128xf32> -> vector<32x128xf32>
    %54 = arith.addf %47, %53 : vector<32x128xf32>
    %c3 = arith.constant 3 : index
    %c0_44 = arith.constant 0 : index
    %c0_45 = arith.constant 0 : index
    %55 = vector.load %arg8[%c3, %c0_44, %c0_45] : memref<16x32x128xbf16, #tpu.memory_space<vmem>>, vector<1x32x128xbf16>
    %56 = vector.shape_cast %55 : vector<1x32x128xbf16> to vector<32x128xbf16>
    %cst_46 = arith.constant dense<0.000000e+00> : vector<32x64xf32>
    %57 = tpu.matmul %56, %32, %cst_46 {dimension_numbers = #tpu.dot_dimension_numbers<[1], [0], [0], [1], [0, 0, 1, 1], [], []>} : vector<32x128xbf16>, vector<128x64xbf16>, vector<32x64xf32> -> vector<32x64xf32>
    %c192 = arith.constant 192 : index
    %c0_47 = arith.constant 0 : index
    %58 = vector.load %arg9[%c192, %c0_47] : memref<1024x128xbf16, #tpu.memory_space<vmem>>, vector<64x128xbf16>
    %59 = arith.truncf %57 : vector<32x64xf32> to vector<32x64xbf16>
    %cst_48 = arith.constant dense<0.000000e+00> : vector<32x128xf32>
    %60 = tpu.matmul %59, %58, %cst_48 {dimension_numbers = #tpu.dot_dimension_numbers<[1], [0], [0], [1], [0, 0, 1, 1], [], []>} : vector<32x64xbf16>, vector<64x128xbf16>, vector<32x128xf32> -> vector<32x128xf32>
    %61 = arith.addf %54, %60 : vector<32x128xf32>
    %c4 = arith.constant 4 : index
    %c0_49 = arith.constant 0 : index
    %c0_50 = arith.constant 0 : index
    %62 = vector.load %arg8[%c4, %c0_49, %c0_50] : memref<16x32x128xbf16, #tpu.memory_space<vmem>>, vector<1x32x128xbf16>
    %63 = vector.shape_cast %62 : vector<1x32x128xbf16> to vector<32x128xbf16>
    %cst_51 = arith.constant dense<0.000000e+00> : vector<32x64xf32>
    %64 = tpu.matmul %63, %32, %cst_51 {dimension_numbers = #tpu.dot_dimension_numbers<[1], [0], [0], [1], [0, 0, 1, 1], [], []>} : vector<32x128xbf16>, vector<128x64xbf16>, vector<32x64xf32> -> vector<32x64xf32>
    %c256 = arith.constant 256 : index
    %c0_52 = arith.constant 0 : index
    %65 = vector.load %arg9[%c256, %c0_52] : memref<1024x128xbf16, #tpu.memory_space<vmem>>, vector<64x128xbf16>
    %66 = arith.truncf %64 : vector<32x64xf32> to vector<32x64xbf16>
    %cst_53 = arith.constant dense<0.000000e+00> : vector<32x128xf32>
    %67 = tpu.matmul %66, %65, %cst_53 {dimension_numbers = #tpu.dot_dimension_numbers<[1], [0], [0], [1], [0, 0, 1, 1], [], []>} : vector<32x64xbf16>, vector<64x128xbf16>, vector<32x128xf32> -> vector<32x128xf32>
    %68 = arith.addf %61, %67 : vector<32x128xf32>
    %c5 = arith.constant 5 : index
    %c0_54 = arith.constant 0 : index
    %c0_55 = arith.constant 0 : index
    %69 = vector.load %arg8[%c5, %c0_54, %c0_55] : memref<16x32x128xbf16, #tpu.memory_space<vmem>>, vector<1x32x128xbf16>
    %70 = vector.shape_cast %69 : vector<1x32x128xbf16> to vector<32x128xbf16>
    %cst_56 = arith.constant dense<0.000000e+00> : vector<32x64xf32>
    %71 = tpu.matmul %70, %32, %cst_56 {dimension_numbers = #tpu.dot_dimension_numbers<[1], [0], [0], [1], [0, 0, 1, 1], [], []>} : vector<32x128xbf16>, vector<128x64xbf16>, vector<32x64xf32> -> vector<32x64xf32>
    %c320 = arith.constant 320 : index
    %c0_57 = arith.constant 0 : index
    %72 = vector.load %arg9[%c320, %c0_57] : memref<1024x128xbf16, #tpu.memory_space<vmem>>, vector<64x128xbf16>
    %73 = arith.truncf %71 : vector<32x64xf32> to vector<32x64xbf16>
    %cst_58 = arith.constant dense<0.000000e+00> : vector<32x128xf32>
    %74 = tpu.matmul %73, %72, %cst_58 {dimension_numbers = #tpu.dot_dimension_numbers<[1], [0], [0], [1], [0, 0, 1, 1], [], []>} : vector<32x64xbf16>, vector<64x128xbf16>, vector<32x128xf32> -> vector<32x128xf32>
    %75 = arith.addf %68, %74 : vector<32x128xf32>
    %c6 = arith.constant 6 : index
    %c0_59 = arith.constant 0 : index
    %c0_60 = arith.constant 0 : index
    %76 = vector.load %arg8[%c6, %c0_59, %c0_60] : memref<16x32x128xbf16, #tpu.memory_space<vmem>>, vector<1x32x128xbf16>
    %77 = vector.shape_cast %76 : vector<1x32x128xbf16> to vector<32x128xbf16>
    %cst_61 = arith.constant dense<0.000000e+00> : vector<32x64xf32>
    %78 = tpu.matmul %77, %32, %cst_61 {dimension_numbers = #tpu.dot_dimension_numbers<[1], [0], [0], [1], [0, 0, 1, 1], [], []>} : vector<32x128xbf16>, vector<128x64xbf16>, vector<32x64xf32> -> vector<32x64xf32>
    %c384 = arith.constant 384 : index
    %c0_62 = arith.constant 0 : index
    %79 = vector.load %arg9[%c384, %c0_62] : memref<1024x128xbf16, #tpu.memory_space<vmem>>, vector<64x128xbf16>
    %80 = arith.truncf %78 : vector<32x64xf32> to vector<32x64xbf16>
    %cst_63 = arith.constant dense<0.000000e+00> : vector<32x128xf32>
    %81 = tpu.matmul %80, %79, %cst_63 {dimension_numbers = #tpu.dot_dimension_numbers<[1], [0], [0], [1], [0, 0, 1, 1], [], []>} : vector<32x64xbf16>, vector<64x128xbf16>, vector<32x128xf32> -> vector<32x128xf32>
    %82 = arith.addf %75, %81 : vector<32x128xf32>
    %c7 = arith.constant 7 : index
    %c0_64 = arith.constant 0 : index
    %c0_65 = arith.constant 0 : index
    %83 = vector.load %arg8[%c7, %c0_64, %c0_65] : memref<16x32x128xbf16, #tpu.memory_space<vmem>>, vector<1x32x128xbf16>
    %84 = vector.shape_cast %83 : vector<1x32x128xbf16> to vector<32x128xbf16>
    %cst_66 = arith.constant dense<0.000000e+00> : vector<32x64xf32>
    %85 = tpu.matmul %84, %32, %cst_66 {dimension_numbers = #tpu.dot_dimension_numbers<[1], [0], [0], [1], [0, 0, 1, 1], [], []>} : vector<32x128xbf16>, vector<128x64xbf16>, vector<32x64xf32> -> vector<32x64xf32>
    %c448 = arith.constant 448 : index
    %c0_67 = arith.constant 0 : index
    %86 = vector.load %arg9[%c448, %c0_67] : memref<1024x128xbf16, #tpu.memory_space<vmem>>, vector<64x128xbf16>
    %87 = arith.truncf %85 : vector<32x64xf32> to vector<32x64xbf16>
    %cst_68 = arith.constant dense<0.000000e+00> : vector<32x128xf32>
    %88 = tpu.matmul %87, %86, %cst_68 {dimension_numbers = #tpu.dot_dimension_numbers<[1], [0], [0], [1], [0, 0, 1, 1], [], []>} : vector<32x64xbf16>, vector<64x128xbf16>, vector<32x128xf32> -> vector<32x128xf32>
    %89 = arith.addf %82, %88 : vector<32x128xf32>
    %c8 = arith.constant 8 : index
    %c0_69 = arith.constant 0 : index
    %c0_70 = arith.constant 0 : index
    %90 = vector.load %arg8[%c8, %c0_69, %c0_70] : memref<16x32x128xbf16, #tpu.memory_space<vmem>>, vector<1x32x128xbf16>
    %91 = vector.shape_cast %90 : vector<1x32x128xbf16> to vector<32x128xbf16>
    %cst_71 = arith.constant dense<0.000000e+00> : vector<32x64xf32>
    %92 = tpu.matmul %91, %32, %cst_71 {dimension_numbers = #tpu.dot_dimension_numbers<[1], [0], [0], [1], [0, 0, 1, 1], [], []>} : vector<32x128xbf16>, vector<128x64xbf16>, vector<32x64xf32> -> vector<32x64xf32>
    %c512 = arith.constant 512 : index
    %c0_72 = arith.constant 0 : index
    %93 = vector.load %arg9[%c512, %c0_72] : memref<1024x128xbf16, #tpu.memory_space<vmem>>, vector<64x128xbf16>
    %94 = arith.truncf %92 : vector<32x64xf32> to vector<32x64xbf16>
    %cst_73 = arith.constant dense<0.000000e+00> : vector<32x128xf32>
    %95 = tpu.matmul %94, %93, %cst_73 {dimension_numbers = #tpu.dot_dimension_numbers<[1], [0], [0], [1], [0, 0, 1, 1], [], []>} : vector<32x64xbf16>, vector<64x128xbf16>, vector<32x128xf32> -> vector<32x128xf32>
    %96 = arith.addf %89, %95 : vector<32x128xf32>
    %c9 = arith.constant 9 : index
    %c0_74 = arith.constant 0 : index
    %c0_75 = arith.constant 0 : index
    %97 = vector.load %arg8[%c9, %c0_74, %c0_75] : memref<16x32x128xbf16, #tpu.memory_space<vmem>>, vector<1x32x128xbf16>
    %98 = vector.shape_cast %97 : vector<1x32x128xbf16> to vector<32x128xbf16>
    %cst_76 = arith.constant dense<0.000000e+00> : vector<32x64xf32>
    %99 = tpu.matmul %98, %32, %cst_76 {dimension_numbers = #tpu.dot_dimension_numbers<[1], [0], [0], [1], [0, 0, 1, 1], [], []>} : vector<32x128xbf16>, vector<128x64xbf16>, vector<32x64xf32> -> vector<32x64xf32>
    %c576 = arith.constant 576 : index
    %c0_77 = arith.constant 0 : index
    %100 = vector.load %arg9[%c576, %c0_77] : memref<1024x128xbf16, #tpu.memory_space<vmem>>, vector<64x128xbf16>
    %101 = arith.truncf %99 : vector<32x64xf32> to vector<32x64xbf16>
    %cst_78 = arith.constant dense<0.000000e+00> : vector<32x128xf32>
    %102 = tpu.matmul %101, %100, %cst_78 {dimension_numbers = #tpu.dot_dimension_numbers<[1], [0], [0], [1], [0, 0, 1, 1], [], []>} : vector<32x64xbf16>, vector<64x128xbf16>, vector<32x128xf32> -> vector<32x128xf32>
    %103 = arith.addf %96, %102 : vector<32x128xf32>
    %c10 = arith.constant 10 : index
    %c0_79 = arith.constant 0 : index
    %c0_80 = arith.constant 0 : index
    %104 = vector.load %arg8[%c10, %c0_79, %c0_80] : memref<16x32x128xbf16, #tpu.memory_space<vmem>>, vector<1x32x128xbf16>
    %105 = vector.shape_cast %104 : vector<1x32x128xbf16> to vector<32x128xbf16>
    %cst_81 = arith.constant dense<0.000000e+00> : vector<32x64xf32>
    %106 = tpu.matmul %105, %32, %cst_81 {dimension_numbers = #tpu.dot_dimension_numbers<[1], [0], [0], [1], [0, 0, 1, 1], [], []>} : vector<32x128xbf16>, vector<128x64xbf16>, vector<32x64xf32> -> vector<32x64xf32>
    %c640 = arith.constant 640 : index
    %c0_82 = arith.constant 0 : index
    %107 = vector.load %arg9[%c640, %c0_82] : memref<1024x128xbf16, #tpu.memory_space<vmem>>, vector<64x128xbf16>
    %108 = arith.truncf %106 : vector<32x64xf32> to vector<32x64xbf16>
    %cst_83 = arith.constant dense<0.000000e+00> : vector<32x128xf32>
    %109 = tpu.matmul %108, %107, %cst_83 {dimension_numbers = #tpu.dot_dimension_numbers<[1], [0], [0], [1], [0, 0, 1, 1], [], []>} : vector<32x64xbf16>, vector<64x128xbf16>, vector<32x128xf32> -> vector<32x128xf32>
    %110 = arith.addf %103, %109 : vector<32x128xf32>
    %c11 = arith.constant 11 : index
    %c0_84 = arith.constant 0 : index
    %c0_85 = arith.constant 0 : index
    %111 = vector.load %arg8[%c11, %c0_84, %c0_85] : memref<16x32x128xbf16, #tpu.memory_space<vmem>>, vector<1x32x128xbf16>
    %112 = vector.shape_cast %111 : vector<1x32x128xbf16> to vector<32x128xbf16>
    %cst_86 = arith.constant dense<0.000000e+00> : vector<32x64xf32>
    %113 = tpu.matmul %112, %32, %cst_86 {dimension_numbers = #tpu.dot_dimension_numbers<[1], [0], [0], [1], [0, 0, 1, 1], [], []>} : vector<32x128xbf16>, vector<128x64xbf16>, vector<32x64xf32> -> vector<32x64xf32>
    %c704 = arith.constant 704 : index
    %c0_87 = arith.constant 0 : index
    %114 = vector.load %arg9[%c704, %c0_87] : memref<1024x128xbf16, #tpu.memory_space<vmem>>, vector<64x128xbf16>
    %115 = arith.truncf %113 : vector<32x64xf32> to vector<32x64xbf16>
    %cst_88 = arith.constant dense<0.000000e+00> : vector<32x128xf32>
    %116 = tpu.matmul %115, %114, %cst_88 {dimension_numbers = #tpu.dot_dimension_numbers<[1], [0], [0], [1], [0, 0, 1, 1], [], []>} : vector<32x64xbf16>, vector<64x128xbf16>, vector<32x128xf32> -> vector<32x128xf32>
    %117 = arith.addf %110, %116 : vector<32x128xf32>
    %c12 = arith.constant 12 : index
    %c0_89 = arith.constant 0 : index
    %c0_90 = arith.constant 0 : index
    %118 = vector.load %arg8[%c12, %c0_89, %c0_90] : memref<16x32x128xbf16, #tpu.memory_space<vmem>>, vector<1x32x128xbf16>
    %119 = vector.shape_cast %118 : vector<1x32x128xbf16> to vector<32x128xbf16>
    %cst_91 = arith.constant dense<0.000000e+00> : vector<32x64xf32>
    %120 = tpu.matmul %119, %32, %cst_91 {dimension_numbers = #tpu.dot_dimension_numbers<[1], [0], [0], [1], [0, 0, 1, 1], [], []>} : vector<32x128xbf16>, vector<128x64xbf16>, vector<32x64xf32> -> vector<32x64xf32>
    %c768 = arith.constant 768 : index
    %c0_92 = arith.constant 0 : index
    %121 = vector.load %arg9[%c768, %c0_92] : memref<1024x128xbf16, #tpu.memory_space<vmem>>, vector<64x128xbf16>
    %122 = arith.truncf %120 : vector<32x64xf32> to vector<32x64xbf16>
    %cst_93 = arith.constant dense<0.000000e+00> : vector<32x128xf32>
    %123 = tpu.matmul %122, %121, %cst_93 {dimension_numbers = #tpu.dot_dimension_numbers<[1], [0], [0], [1], [0, 0, 1, 1], [], []>} : vector<32x64xbf16>, vector<64x128xbf16>, vector<32x128xf32> -> vector<32x128xf32>
    %124 = arith.addf %117, %123 : vector<32x128xf32>
    %c13 = arith.constant 13 : index
    %c0_94 = arith.constant 0 : index
    %c0_95 = arith.constant 0 : index
    %125 = vector.load %arg8[%c13, %c0_94, %c0_95] : memref<16x32x128xbf16, #tpu.memory_space<vmem>>, vector<1x32x128xbf16>
    %126 = vector.shape_cast %125 : vector<1x32x128xbf16> to vector<32x128xbf16>
    %cst_96 = arith.constant dense<0.000000e+00> : vector<32x64xf32>
    %127 = tpu.matmul %126, %32, %cst_96 {dimension_numbers = #tpu.dot_dimension_numbers<[1], [0], [0], [1], [0, 0, 1, 1], [], []>} : vector<32x128xbf16>, vector<128x64xbf16>, vector<32x64xf32> -> vector<32x64xf32>
    %c832 = arith.constant 832 : index
    %c0_97 = arith.constant 0 : index
    %128 = vector.load %arg9[%c832, %c0_97] : memref<1024x128xbf16, #tpu.memory_space<vmem>>, vector<64x128xbf16>
    %129 = arith.truncf %127 : vector<32x64xf32> to vector<32x64xbf16>
    %cst_98 = arith.constant dense<0.000000e+00> : vector<32x128xf32>
    %130 = tpu.matmul %129, %128, %cst_98 {dimension_numbers = #tpu.dot_dimension_numbers<[1], [0], [0], [1], [0, 0, 1, 1], [], []>} : vector<32x64xbf16>, vector<64x128xbf16>, vector<32x128xf32> -> vector<32x128xf32>
    %131 = arith.addf %124, %130 : vector<32x128xf32>
    %c14 = arith.constant 14 : index
    %c0_99 = arith.constant 0 : index
    %c0_100 = arith.constant 0 : index
    %132 = vector.load %arg8[%c14, %c0_99, %c0_100] : memref<16x32x128xbf16, #tpu.memory_space<vmem>>, vector<1x32x128xbf16>
    %133 = vector.shape_cast %132 : vector<1x32x128xbf16> to vector<32x128xbf16>
    %cst_101 = arith.constant dense<0.000000e+00> : vector<32x64xf32>
    %134 = tpu.matmul %133, %32, %cst_101 {dimension_numbers = #tpu.dot_dimension_numbers<[1], [0], [0], [1], [0, 0, 1, 1], [], []>} : vector<32x128xbf16>, vector<128x64xbf16>, vector<32x64xf32> -> vector<32x64xf32>
    %c896 = arith.constant 896 : index
    %c0_102 = arith.constant 0 : index
    %135 = vector.load %arg9[%c896, %c0_102] : memref<1024x128xbf16, #tpu.memory_space<vmem>>, vector<64x128xbf16>
    %136 = arith.truncf %134 : vector<32x64xf32> to vector<32x64xbf16>
    %cst_103 = arith.constant dense<0.000000e+00> : vector<32x128xf32>
    %137 = tpu.matmul %136, %135, %cst_103 {dimension_numbers = #tpu.dot_dimension_numbers<[1], [0], [0], [1], [0, 0, 1, 1], [], []>} : vector<32x64xbf16>, vector<64x128xbf16>, vector<32x128xf32> -> vector<32x128xf32>
    %138 = arith.addf %131, %137 : vector<32x128xf32>
    %c15 = arith.constant 15 : index
    %c0_104 = arith.constant 0 : index
    %c0_105 = arith.constant 0 : index
    %139 = vector.load %arg8[%c15, %c0_104, %c0_105] : memref<16x32x128xbf16, #tpu.memory_space<vmem>>, vector<1x32x128xbf16>
    %140 = vector.shape_cast %139 : vector<1x32x128xbf16> to vector<32x128xbf16>
    %cst_106 = arith.constant dense<0.000000e+00> : vector<32x64xf32>
    %141 = tpu.matmul %140, %32, %cst_106 {dimension_numbers = #tpu.dot_dimension_numbers<[1], [0], [0], [1], [0, 0, 1, 1], [], []>} : vector<32x128xbf16>, vector<128x64xbf16>, vector<32x64xf32> -> vector<32x64xf32>
    %c960 = arith.constant 960 : index
    %c0_107 = arith.constant 0 : index
    %142 = vector.load %arg9[%c960, %c0_107] : memref<1024x128xbf16, #tpu.memory_space<vmem>>, vector<64x128xbf16>
    %143 = arith.truncf %141 : vector<32x64xf32> to vector<32x64xbf16>
    %cst_108 = arith.constant dense<0.000000e+00> : vector<32x128xf32>
    %144 = tpu.matmul %143, %142, %cst_108 {dimension_numbers = #tpu.dot_dimension_numbers<[1], [0], [0], [1], [0, 0, 1, 1], [], []>} : vector<32x64xbf16>, vector<64x128xbf16>, vector<32x128xf32> -> vector<32x128xf32>
    %145 = arith.addf %138, %144 : vector<32x128xf32>
    %c0_109 = arith.constant 0 : index
    %c0_110 = arith.constant 0 : index
    %146 = vector.load %arg14[%c0_109, %c0_110] : memref<2x32xf32, #tpu.memory_space<vmem>>, vector<2x32xf32>
    %c0_111 = arith.constant 0 : index
    %c0_112 = arith.constant 0 : index
    %147 = vector.load %arg15[%c0_111, %c0_112] : memref<32x2xf32, #tpu.memory_space<vmem>>, vector<32x2xf32>
    %c0_113 = arith.constant 0 : index
    %c0_114 = arith.constant 0 : index
    %148 = vector.load %arg12[%c0_113, %c0_114] : memref<128x8xf32, #tpu.memory_space<vmem>>, vector<128x8xf32>
    %c0_115 = arith.constant 0 : index
    %c0_116 = arith.constant 0 : index
    %149 = vector.load %arg13[%c0_115, %c0_116] : memref<8x128xf32, #tpu.memory_space<vmem>>, vector<8x128xf32>
    %cst_117 = arith.constant dense<0.000000e+00> : vector<2x128xf32>
    %150 = tpu.matmul %146, %145, %cst_117 {dimension_numbers = #tpu.dot_dimension_numbers<[1], [0], [0], [1], [0, 0, 1, 1], [], []>} : vector<2x32xf32>, vector<32x128xf32>, vector<2x128xf32> -> vector<2x128xf32>
    %cst_118 = arith.constant dense<0.000000e+00> : vector<2x8xf32>
    %151 = tpu.matmul %150, %148, %cst_118 {dimension_numbers = #tpu.dot_dimension_numbers<[1], [0], [0], [1], [0, 0, 1, 1], [], []>} : vector<2x128xf32>, vector<128x8xf32>, vector<2x8xf32> -> vector<2x8xf32>
    %cst_119 = arith.constant dense<0.000000e+00> : vector<2x128xf32>
    %152 = tpu.matmul %151, %149, %cst_119 {dimension_numbers = #tpu.dot_dimension_numbers<[1], [0], [0], [1], [0, 0, 1, 1], [], []>} : vector<2x8xf32>, vector<8x128xf32>, vector<2x128xf32> -> vector<2x128xf32>
    %cst_120 = arith.constant dense<0.000000e+00> : vector<32x128xf32>
    %153 = tpu.matmul %147, %152, %cst_120 {dimension_numbers = #tpu.dot_dimension_numbers<[1], [0], [0], [1], [0, 0, 1, 1], [], []>} : vector<32x2xf32>, vector<2x128xf32>, vector<32x128xf32> -> vector<32x128xf32>
    %154 = arith.subf %145, %153 : vector<32x128xf32>
    %155 = arith.mulf %154, %154 : vector<32x128xf32>
    %cst_121 = arith.constant dense<0.000000e+00> : vector<2x128xf32>
    %156 = tpu.matmul %146, %155, %cst_121 {dimension_numbers = #tpu.dot_dimension_numbers<[1], [0], [0], [1], [0, 0, 1, 1], [], []>} : vector<2x32xf32>, vector<32x128xf32>, vector<2x128xf32> -> vector<2x128xf32>
    %cst_122 = arith.constant dense<0.000000e+00> : vector<2x8xf32>
    %157 = tpu.matmul %156, %148, %cst_122 {dimension_numbers = #tpu.dot_dimension_numbers<[1], [0], [0], [1], [0, 0, 1, 1], [], []>} : vector<2x128xf32>, vector<128x8xf32>, vector<2x8xf32> -> vector<2x8xf32>
    %cst_123 = arith.constant 9.99999974E-6 : f32
    %158 = vector.broadcast %cst_123 : f32 to vector<2x8xf32>
    %159 = arith.addf %157, %158 : vector<2x8xf32>
    %160 = math.rsqrt %159 : vector<2x8xf32>
    %cst_124 = arith.constant dense<0.000000e+00> : vector<2x128xf32>
    %161 = tpu.matmul %160, %149, %cst_124 {dimension_numbers = #tpu.dot_dimension_numbers<[1], [0], [0], [1], [0, 0, 1, 1], [], []>} : vector<2x8xf32>, vector<8x128xf32>, vector<2x128xf32> -> vector<2x128xf32>
    %c0_125 = arith.constant 0 : index
    %c0_126 = arith.constant 0 : index
    %162 = vector.load %arg10[%c0_125, %c0_126] : memref<1x128xf32, #tpu.memory_space<vmem>>, vector<1x128xf32>
    %163 = vector.broadcast %162 : vector<1x128xf32> to vector<2x128xf32>
    %164 = arith.mulf %161, %163 : vector<2x128xf32>
    %cst_127 = arith.constant dense<0.000000e+00> : vector<32x128xf32>
    %165 = tpu.matmul %147, %164, %cst_127 {dimension_numbers = #tpu.dot_dimension_numbers<[1], [0], [0], [1], [0, 0, 1, 1], [], []>} : vector<32x2xf32>, vector<2x128xf32>, vector<32x128xf32> -> vector<32x128xf32>
    %166 = arith.mulf %154, %165 : vector<32x128xf32>
    %c0_128 = arith.constant 0 : index
    %c0_129 = arith.constant 0 : index
    %167 = vector.load %arg11[%c0_128, %c0_129] : memref<1x128xf32, #tpu.memory_space<vmem>>, vector<1x128xf32>
    %168 = vector.broadcast %167 : vector<1x128xf32> to vector<32x128xf32>
    %169 = arith.addf %166, %168 : vector<32x128xf32>
    %cst_130 = arith.constant 0.000000e+00 : f32
    %170 = vector.broadcast %cst_130 : f32 to vector<32x128xf32>
    %171 = arith.cmpf ogt, %169, %170 : vector<32x128xf32>
    %cst_131 = arith.constant 0.00999999977 : f32
    %172 = vector.broadcast %cst_131 : f32 to vector<32x128xf32>
    %173 = arith.mulf %172, %169 : vector<32x128xf32>
    %174 = arith.select %171, %169, %173 : vector<32x128xi1>, vector<32x128xf32>
    %175 = arith.truncf %174 : vector<32x128xf32> to vector<32x128xbf16>
    %cst_132 = arith.constant 0.000000e+00 : f32
    %176 = vector.broadcast %cst_132 : f32 to vector<1x1xf32>
    %c0_133 = arith.constant 0 : index
    %c0_134 = arith.constant 0 : index
    %c0_135 = arith.constant 0 : index
    %177 = vector.load %arg16[%c0_133, %c0_134, %c0_135] : memref<16x1x32xbf16, #tpu.memory_space<vmem>>, vector<1x1x32xbf16>
    %178 = vector.shape_cast %177 : vector<1x1x32xbf16> to vector<1x32xbf16>
    %cst_136 = arith.constant dense<0.000000e+00> : vector<1x128xf32>
    %179 = tpu.matmul %178, %175, %cst_136 {dimension_numbers = #tpu.dot_dimension_numbers<[1], [0], [0], [1], [0, 0, 1, 1], [], []>} : vector<1x32xbf16>, vector<32x128xbf16>, vector<1x128xf32> -> vector<1x128xf32>
    %c0_137 = arith.constant 0 : index
    %c0_138 = arith.constant 0 : index
    %180 = vector.load %arg17[%c0_137, %c0_138] : memref<2048x1xbf16, #tpu.memory_space<vmem>>, vector<128x1xbf16>
    %181 = arith.extf %180 : vector<128x1xbf16> to vector<128x1xf32>
    %cst_139 = arith.constant dense<0.000000e+00> : vector<1x1xf32>
    %182 = tpu.matmul %179, %181, %cst_139 {dimension_numbers = #tpu.dot_dimension_numbers<[1], [0], [0], [1], [0, 0, 1, 1], [], []>} : vector<1x128xf32>, vector<128x1xf32>, vector<1x1xf32> -> vector<1x1xf32>
    %183 = arith.addf %176, %182 : vector<1x1xf32>
    %c1_140 = arith.constant 1 : index
    %c0_141 = arith.constant 0 : index
    %c0_142 = arith.constant 0 : index
    %184 = vector.load %arg16[%c1_140, %c0_141, %c0_142] : memref<16x1x32xbf16, #tpu.memory_space<vmem>>, vector<1x1x32xbf16>
    %185 = vector.shape_cast %184 : vector<1x1x32xbf16> to vector<1x32xbf16>
    %cst_143 = arith.constant dense<0.000000e+00> : vector<1x128xf32>
    %186 = tpu.matmul %185, %175, %cst_143 {dimension_numbers = #tpu.dot_dimension_numbers<[1], [0], [0], [1], [0, 0, 1, 1], [], []>} : vector<1x32xbf16>, vector<32x128xbf16>, vector<1x128xf32> -> vector<1x128xf32>
    %c128_144 = arith.constant 128 : index
    %c0_145 = arith.constant 0 : index
    %187 = vector.load %arg17[%c128_144, %c0_145] : memref<2048x1xbf16, #tpu.memory_space<vmem>>, vector<128x1xbf16>
    %188 = arith.extf %187 : vector<128x1xbf16> to vector<128x1xf32>
    %cst_146 = arith.constant dense<0.000000e+00> : vector<1x1xf32>
    %189 = tpu.matmul %186, %188, %cst_146 {dimension_numbers = #tpu.dot_dimension_numbers<[1], [0], [0], [1], [0, 0, 1, 1], [], []>} : vector<1x128xf32>, vector<128x1xf32>, vector<1x1xf32> -> vector<1x1xf32>
    %190 = arith.addf %183, %189 : vector<1x1xf32>
    %c2_147 = arith.constant 2 : index
    %c0_148 = arith.constant 0 : index
    %c0_149 = arith.constant 0 : index
    %191 = vector.load %arg16[%c2_147, %c0_148, %c0_149] : memref<16x1x32xbf16, #tpu.memory_space<vmem>>, vector<1x1x32xbf16>
    %192 = vector.shape_cast %191 : vector<1x1x32xbf16> to vector<1x32xbf16>
    %cst_150 = arith.constant dense<0.000000e+00> : vector<1x128xf32>
    %193 = tpu.matmul %192, %175, %cst_150 {dimension_numbers = #tpu.dot_dimension_numbers<[1], [0], [0], [1], [0, 0, 1, 1], [], []>} : vector<1x32xbf16>, vector<32x128xbf16>, vector<1x128xf32> -> vector<1x128xf32>
    %c256_151 = arith.constant 256 : index
    %c0_152 = arith.constant 0 : index
    %194 = vector.load %arg17[%c256_151, %c0_152] : memref<2048x1xbf16, #tpu.memory_space<vmem>>, vector<128x1xbf16>
    %195 = arith.extf %194 : vector<128x1xbf16> to vector<128x1xf32>
    %cst_153 = arith.constant dense<0.000000e+00> : vector<1x1xf32>
    %196 = tpu.matmul %193, %195, %cst_153 {dimension_numbers = #tpu.dot_dimension_numbers<[1], [0], [0], [1], [0, 0, 1, 1], [], []>} : vector<1x128xf32>, vector<128x1xf32>, vector<1x1xf32> -> vector<1x1xf32>
    %197 = arith.addf %190, %196 : vector<1x1xf32>
    %c3_154 = arith.constant 3 : index
    %c0_155 = arith.constant 0 : index
    %c0_156 = arith.constant 0 : index
    %198 = vector.load %arg16[%c3_154, %c0_155, %c0_156] : memref<16x1x32xbf16, #tpu.memory_space<vmem>>, vector<1x1x32xbf16>
    %199 = vector.shape_cast %198 : vector<1x1x32xbf16> to vector<1x32xbf16>
    %cst_157 = arith.constant dense<0.000000e+00> : vector<1x128xf32>
    %200 = tpu.matmul %199, %175, %cst_157 {dimension_numbers = #tpu.dot_dimension_numbers<[1], [0], [0], [1], [0, 0, 1, 1], [], []>} : vector<1x32xbf16>, vector<32x128xbf16>, vector<1x128xf32> -> vector<1x128xf32>
    %c384_158 = arith.constant 384 : index
    %c0_159 = arith.constant 0 : index
    %201 = vector.load %arg17[%c384_158, %c0_159] : memref<2048x1xbf16, #tpu.memory_space<vmem>>, vector<128x1xbf16>
    %202 = arith.extf %201 : vector<128x1xbf16> to vector<128x1xf32>
    %cst_160 = arith.constant dense<0.000000e+00> : vector<1x1xf32>
    %203 = tpu.matmul %200, %202, %cst_160 {dimension_numbers = #tpu.dot_dimension_numbers<[1], [0], [0], [1], [0, 0, 1, 1], [], []>} : vector<1x128xf32>, vector<128x1xf32>, vector<1x1xf32> -> vector<1x1xf32>
    %204 = arith.addf %197, %203 : vector<1x1xf32>
    %c4_161 = arith.constant 4 : index
    %c0_162 = arith.constant 0 : index
    %c0_163 = arith.constant 0 : index
    %205 = vector.load %arg16[%c4_161, %c0_162, %c0_163] : memref<16x1x32xbf16, #tpu.memory_space<vmem>>, vector<1x1x32xbf16>
    %206 = vector.shape_cast %205 : vector<1x1x32xbf16> to vector<1x32xbf16>
    %cst_164 = arith.constant dense<0.000000e+00> : vector<1x128xf32>
    %207 = tpu.matmul %206, %175, %cst_164 {dimension_numbers = #tpu.dot_dimension_numbers<[1], [0], [0], [1], [0, 0, 1, 1], [], []>} : vector<1x32xbf16>, vector<32x128xbf16>, vector<1x128xf32> -> vector<1x128xf32>
    %c512_165 = arith.constant 512 : index
    %c0_166 = arith.constant 0 : index
    %208 = vector.load %arg17[%c512_165, %c0_166] : memref<2048x1xbf16, #tpu.memory_space<vmem>>, vector<128x1xbf16>
    %209 = arith.extf %208 : vector<128x1xbf16> to vector<128x1xf32>
    %cst_167 = arith.constant dense<0.000000e+00> : vector<1x1xf32>
    %210 = tpu.matmul %207, %209, %cst_167 {dimension_numbers = #tpu.dot_dimension_numbers<[1], [0], [0], [1], [0, 0, 1, 1], [], []>} : vector<1x128xf32>, vector<128x1xf32>, vector<1x1xf32> -> vector<1x1xf32>
    %211 = arith.addf %204, %210 : vector<1x1xf32>
    %c5_168 = arith.constant 5 : index
    %c0_169 = arith.constant 0 : index
    %c0_170 = arith.constant 0 : index
    %212 = vector.load %arg16[%c5_168, %c0_169, %c0_170] : memref<16x1x32xbf16, #tpu.memory_space<vmem>>, vector<1x1x32xbf16>
    %213 = vector.shape_cast %212 : vector<1x1x32xbf16> to vector<1x32xbf16>
    %cst_171 = arith.constant dense<0.000000e+00> : vector<1x128xf32>
    %214 = tpu.matmul %213, %175, %cst_171 {dimension_numbers = #tpu.dot_dimension_numbers<[1], [0], [0], [1], [0, 0, 1, 1], [], []>} : vector<1x32xbf16>, vector<32x128xbf16>, vector<1x128xf32> -> vector<1x128xf32>
    %c640_172 = arith.constant 640 : index
    %c0_173 = arith.constant 0 : index
    %215 = vector.load %arg17[%c640_172, %c0_173] : memref<2048x1xbf16, #tpu.memory_space<vmem>>, vector<128x1xbf16>
    %216 = arith.extf %215 : vector<128x1xbf16> to vector<128x1xf32>
    %cst_174 = arith.constant dense<0.000000e+00> : vector<1x1xf32>
    %217 = tpu.matmul %214, %216, %cst_174 {dimension_numbers = #tpu.dot_dimension_numbers<[1], [0], [0], [1], [0, 0, 1, 1], [], []>} : vector<1x128xf32>, vector<128x1xf32>, vector<1x1xf32> -> vector<1x1xf32>
    %218 = arith.addf %211, %217 : vector<1x1xf32>
    %c6_175 = arith.constant 6 : index
    %c0_176 = arith.constant 0 : index
    %c0_177 = arith.constant 0 : index
    %219 = vector.load %arg16[%c6_175, %c0_176, %c0_177] : memref<16x1x32xbf16, #tpu.memory_space<vmem>>, vector<1x1x32xbf16>
    %220 = vector.shape_cast %219 : vector<1x1x32xbf16> to vector<1x32xbf16>
    %cst_178 = arith.constant dense<0.000000e+00> : vector<1x128xf32>
    %221 = tpu.matmul %220, %175, %cst_178 {dimension_numbers = #tpu.dot_dimension_numbers<[1], [0], [0], [1], [0, 0, 1, 1], [], []>} : vector<1x32xbf16>, vector<32x128xbf16>, vector<1x128xf32> -> vector<1x128xf32>
    %c768_179 = arith.constant 768 : index
    %c0_180 = arith.constant 0 : index
    %222 = vector.load %arg17[%c768_179, %c0_180] : memref<2048x1xbf16, #tpu.memory_space<vmem>>, vector<128x1xbf16>
    %223 = arith.extf %222 : vector<128x1xbf16> to vector<128x1xf32>
    %cst_181 = arith.constant dense<0.000000e+00> : vector<1x1xf32>
    %224 = tpu.matmul %221, %223, %cst_181 {dimension_numbers = #tpu.dot_dimension_numbers<[1], [0], [0], [1], [0, 0, 1, 1], [], []>} : vector<1x128xf32>, vector<128x1xf32>, vector<1x1xf32> -> vector<1x1xf32>
    %225 = arith.addf %218, %224 : vector<1x1xf32>
    %c7_182 = arith.constant 7 : index
    %c0_183 = arith.constant 0 : index
    %c0_184 = arith.constant 0 : index
    %226 = vector.load %arg16[%c7_182, %c0_183, %c0_184] : memref<16x1x32xbf16, #tpu.memory_space<vmem>>, vector<1x1x32xbf16>
    %227 = vector.shape_cast %226 : vector<1x1x32xbf16> to vector<1x32xbf16>
    %cst_185 = arith.constant dense<0.000000e+00> : vector<1x128xf32>
    %228 = tpu.matmul %227, %175, %cst_185 {dimension_numbers = #tpu.dot_dimension_numbers<[1], [0], [0], [1], [0, 0, 1, 1], [], []>} : vector<1x32xbf16>, vector<32x128xbf16>, vector<1x128xf32> -> vector<1x128xf32>
    %c896_186 = arith.constant 896 : index
    %c0_187 = arith.constant 0 : index
    %229 = vector.load %arg17[%c896_186, %c0_187] : memref<2048x1xbf16, #tpu.memory_space<vmem>>, vector<128x1xbf16>
    %230 = arith.extf %229 : vector<128x1xbf16> to vector<128x1xf32>
    %cst_188 = arith.constant dense<0.000000e+00> : vector<1x1xf32>
    %231 = tpu.matmul %228, %230, %cst_188 {dimension_numbers = #tpu.dot_dimension_numbers<[1], [0], [0], [1], [0, 0, 1, 1], [], []>} : vector<1x128xf32>, vector<128x1xf32>, vector<1x1xf32> -> vector<1x1xf32>
    %232 = arith.addf %225, %231 : vector<1x1xf32>
    %c8_189 = arith.constant 8 : index
    %c0_190 = arith.constant 0 : index
    %c0_191 = arith.constant 0 : index
    %233 = vector.load %arg16[%c8_189, %c0_190, %c0_191] : memref<16x1x32xbf16, #tpu.memory_space<vmem>>, vector<1x1x32xbf16>
    %234 = vector.shape_cast %233 : vector<1x1x32xbf16> to vector<1x32xbf16>
    %cst_192 = arith.constant dense<0.000000e+00> : vector<1x128xf32>
    %235 = tpu.matmul %234, %175, %cst_192 {dimension_numbers = #tpu.dot_dimension_numbers<[1], [0], [0], [1], [0, 0, 1, 1], [], []>} : vector<1x32xbf16>, vector<32x128xbf16>, vector<1x128xf32> -> vector<1x128xf32>
    %c1024 = arith.constant 1024 : index
    %c0_193 = arith.constant 0 : index
    %236 = vector.load %arg17[%c1024, %c0_193] : memref<2048x1xbf16, #tpu.memory_space<vmem>>, vector<128x1xbf16>
    %237 = arith.extf %236 : vector<128x1xbf16> to vector<128x1xf32>
    %cst_194 = arith.constant dense<0.000000e+00> : vector<1x1xf32>
    %238 = tpu.matmul %235, %237, %cst_194 {dimension_numbers = #tpu.dot_dimension_numbers<[1], [0], [0], [1], [0, 0, 1, 1], [], []>} : vector<1x128xf32>, vector<128x1xf32>, vector<1x1xf32> -> vector<1x1xf32>
    %239 = arith.addf %232, %238 : vector<1x1xf32>
    %c9_195 = arith.constant 9 : index
    %c0_196 = arith.constant 0 : index
    %c0_197 = arith.constant 0 : index
    %240 = vector.load %arg16[%c9_195, %c0_196, %c0_197] : memref<16x1x32xbf16, #tpu.memory_space<vmem>>, vector<1x1x32xbf16>
    %241 = vector.shape_cast %240 : vector<1x1x32xbf16> to vector<1x32xbf16>
    %cst_198 = arith.constant dense<0.000000e+00> : vector<1x128xf32>
    %242 = tpu.matmul %241, %175, %cst_198 {dimension_numbers = #tpu.dot_dimension_numbers<[1], [0], [0], [1], [0, 0, 1, 1], [], []>} : vector<1x32xbf16>, vector<32x128xbf16>, vector<1x128xf32> -> vector<1x128xf32>
    %c1152 = arith.constant 1152 : index
    %c0_199 = arith.constant 0 : index
    %243 = vector.load %arg17[%c1152, %c0_199] : memref<2048x1xbf16, #tpu.memory_space<vmem>>, vector<128x1xbf16>
    %244 = arith.extf %243 : vector<128x1xbf16> to vector<128x1xf32>
    %cst_200 = arith.constant dense<0.000000e+00> : vector<1x1xf32>
    %245 = tpu.matmul %242, %244, %cst_200 {dimension_numbers = #tpu.dot_dimension_numbers<[1], [0], [0], [1], [0, 0, 1, 1], [], []>} : vector<1x128xf32>, vector<128x1xf32>, vector<1x1xf32> -> vector<1x1xf32>
    %246 = arith.addf %239, %245 : vector<1x1xf32>
    %c10_201 = arith.constant 10 : index
    %c0_202 = arith.constant 0 : index
    %c0_203 = arith.constant 0 : index
    %247 = vector.load %arg16[%c10_201, %c0_202, %c0_203] : memref<16x1x32xbf16, #tpu.memory_space<vmem>>, vector<1x1x32xbf16>
    %248 = vector.shape_cast %247 : vector<1x1x32xbf16> to vector<1x32xbf16>
    %cst_204 = arith.constant dense<0.000000e+00> : vector<1x128xf32>
    %249 = tpu.matmul %248, %175, %cst_204 {dimension_numbers = #tpu.dot_dimension_numbers<[1], [0], [0], [1], [0, 0, 1, 1], [], []>} : vector<1x32xbf16>, vector<32x128xbf16>, vector<1x128xf32> -> vector<1x128xf32>
    %c1280 = arith.constant 1280 : index
    %c0_205 = arith.constant 0 : index
    %250 = vector.load %arg17[%c1280, %c0_205] : memref<2048x1xbf16, #tpu.memory_space<vmem>>, vector<128x1xbf16>
    %251 = arith.extf %250 : vector<128x1xbf16> to vector<128x1xf32>
    %cst_206 = arith.constant dense<0.000000e+00> : vector<1x1xf32>
    %252 = tpu.matmul %249, %251, %cst_206 {dimension_numbers = #tpu.dot_dimension_numbers<[1], [0], [0], [1], [0, 0, 1, 1], [], []>} : vector<1x128xf32>, vector<128x1xf32>, vector<1x1xf32> -> vector<1x1xf32>
    %253 = arith.addf %246, %252 : vector<1x1xf32>
    %c11_207 = arith.constant 11 : index
    %c0_208 = arith.constant 0 : index
    %c0_209 = arith.constant 0 : index
    %254 = vector.load %arg16[%c11_207, %c0_208, %c0_209] : memref<16x1x32xbf16, #tpu.memory_space<vmem>>, vector<1x1x32xbf16>
    %255 = vector.shape_cast %254 : vector<1x1x32xbf16> to vector<1x32xbf16>
    %cst_210 = arith.constant dense<0.000000e+00> : vector<1x128xf32>
    %256 = tpu.matmul %255, %175, %cst_210 {dimension_numbers = #tpu.dot_dimension_numbers<[1], [0], [0], [1], [0, 0, 1, 1], [], []>} : vector<1x32xbf16>, vector<32x128xbf16>, vector<1x128xf32> -> vector<1x128xf32>
    %c1408 = arith.constant 1408 : index
    %c0_211 = arith.constant 0 : index
    %257 = vector.load %arg17[%c1408, %c0_211] : memref<2048x1xbf16, #tpu.memory_space<vmem>>, vector<128x1xbf16>
    %258 = arith.extf %257 : vector<128x1xbf16> to vector<128x1xf32>
    %cst_212 = arith.constant dense<0.000000e+00> : vector<1x1xf32>
    %259 = tpu.matmul %256, %258, %cst_212 {dimension_numbers = #tpu.dot_dimension_numbers<[1], [0], [0], [1], [0, 0, 1, 1], [], []>} : vector<1x128xf32>, vector<128x1xf32>, vector<1x1xf32> -> vector<1x1xf32>
    %260 = arith.addf %253, %259 : vector<1x1xf32>
    %c12_213 = arith.constant 12 : index
    %c0_214 = arith.constant 0 : index
    %c0_215 = arith.constant 0 : index
    %261 = vector.load %arg16[%c12_213, %c0_214, %c0_215] : memref<16x1x32xbf16, #tpu.memory_space<vmem>>, vector<1x1x32xbf16>
    %262 = vector.shape_cast %261 : vector<1x1x32xbf16> to vector<1x32xbf16>
    %cst_216 = arith.constant dense<0.000000e+00> : vector<1x128xf32>
    %263 = tpu.matmul %262, %175, %cst_216 {dimension_numbers = #tpu.dot_dimension_numbers<[1], [0], [0], [1], [0, 0, 1, 1], [], []>} : vector<1x32xbf16>, vector<32x128xbf16>, vector<1x128xf32> -> vector<1x128xf32>
    %c1536 = arith.constant 1536 : index
    %c0_217 = arith.constant 0 : index
    %264 = vector.load %arg17[%c1536, %c0_217] : memref<2048x1xbf16, #tpu.memory_space<vmem>>, vector<128x1xbf16>
    %265 = arith.extf %264 : vector<128x1xbf16> to vector<128x1xf32>
    %cst_218 = arith.constant dense<0.000000e+00> : vector<1x1xf32>
    %266 = tpu.matmul %263, %265, %cst_218 {dimension_numbers = #tpu.dot_dimension_numbers<[1], [0], [0], [1], [0, 0, 1, 1], [], []>} : vector<1x128xf32>, vector<128x1xf32>, vector<1x1xf32> -> vector<1x1xf32>
    %267 = arith.addf %260, %266 : vector<1x1xf32>
    %c13_219 = arith.constant 13 : index
    %c0_220 = arith.constant 0 : index
    %c0_221 = arith.constant 0 : index
    %268 = vector.load %arg16[%c13_219, %c0_220, %c0_221] : memref<16x1x32xbf16, #tpu.memory_space<vmem>>, vector<1x1x32xbf16>
    %269 = vector.shape_cast %268 : vector<1x1x32xbf16> to vector<1x32xbf16>
    %cst_222 = arith.constant dense<0.000000e+00> : vector<1x128xf32>
    %270 = tpu.matmul %269, %175, %cst_222 {dimension_numbers = #tpu.dot_dimension_numbers<[1], [0], [0], [1], [0, 0, 1, 1], [], []>} : vector<1x32xbf16>, vector<32x128xbf16>, vector<1x128xf32> -> vector<1x128xf32>
    %c1664 = arith.constant 1664 : index
    %c0_223 = arith.constant 0 : index
    %271 = vector.load %arg17[%c1664, %c0_223] : memref<2048x1xbf16, #tpu.memory_space<vmem>>, vector<128x1xbf16>
    %272 = arith.extf %271 : vector<128x1xbf16> to vector<128x1xf32>
    %cst_224 = arith.constant dense<0.000000e+00> : vector<1x1xf32>
    %273 = tpu.matmul %270, %272, %cst_224 {dimension_numbers = #tpu.dot_dimension_numbers<[1], [0], [0], [1], [0, 0, 1, 1], [], []>} : vector<1x128xf32>, vector<128x1xf32>, vector<1x1xf32> -> vector<1x1xf32>
    %274 = arith.addf %267, %273 : vector<1x1xf32>
    %c14_225 = arith.constant 14 : index
    %c0_226 = arith.constant 0 : index
    %c0_227 = arith.constant 0 : index
    %275 = vector.load %arg16[%c14_225, %c0_226, %c0_227] : memref<16x1x32xbf16, #tpu.memory_space<vmem>>, vector<1x1x32xbf16>
    %276 = vector.shape_cast %275 : vector<1x1x32xbf16> to vector<1x32xbf16>
    %cst_228 = arith.constant dense<0.000000e+00> : vector<1x128xf32>
    %277 = tpu.matmul %276, %175, %cst_228 {dimension_numbers = #tpu.dot_dimension_numbers<[1], [0], [0], [1], [0, 0, 1, 1], [], []>} : vector<1x32xbf16>, vector<32x128xbf16>, vector<1x128xf32> -> vector<1x128xf32>
    %c1792 = arith.constant 1792 : index
    %c0_229 = arith.constant 0 : index
    %278 = vector.load %arg17[%c1792, %c0_229] : memref<2048x1xbf16, #tpu.memory_space<vmem>>, vector<128x1xbf16>
    %279 = arith.extf %278 : vector<128x1xbf16> to vector<128x1xf32>
    %cst_230 = arith.constant dense<0.000000e+00> : vector<1x1xf32>
    %280 = tpu.matmul %277, %279, %cst_230 {dimension_numbers = #tpu.dot_dimension_numbers<[1], [0], [0], [1], [0, 0, 1, 1], [], []>} : vector<1x128xf32>, vector<128x1xf32>, vector<1x1xf32> -> vector<1x1xf32>
    %281 = arith.addf %274, %280 : vector<1x1xf32>
    %c15_231 = arith.constant 15 : index
    %c0_232 = arith.constant 0 : index
    %c0_233 = arith.constant 0 : index
    %282 = vector.load %arg16[%c15_231, %c0_232, %c0_233] : memref<16x1x32xbf16, #tpu.memory_space<vmem>>, vector<1x1x32xbf16>
    %283 = vector.shape_cast %282 : vector<1x1x32xbf16> to vector<1x32xbf16>
    %cst_234 = arith.constant dense<0.000000e+00> : vector<1x128xf32>
    %284 = tpu.matmul %283, %175, %cst_234 {dimension_numbers = #tpu.dot_dimension_numbers<[1], [0], [0], [1], [0, 0, 1, 1], [], []>} : vector<1x32xbf16>, vector<32x128xbf16>, vector<1x128xf32> -> vector<1x128xf32>
    %c1920 = arith.constant 1920 : index
    %c0_235 = arith.constant 0 : index
    %285 = vector.load %arg17[%c1920, %c0_235] : memref<2048x1xbf16, #tpu.memory_space<vmem>>, vector<128x1xbf16>
    %286 = arith.extf %285 : vector<128x1xbf16> to vector<128x1xf32>
    %cst_236 = arith.constant dense<0.000000e+00> : vector<1x1xf32>
    %287 = tpu.matmul %284, %286, %cst_236 {dimension_numbers = #tpu.dot_dimension_numbers<[1], [0], [0], [1], [0, 0, 1, 1], [], []>} : vector<1x128xf32>, vector<128x1xf32>, vector<1x1xf32> -> vector<1x1xf32>
    %288 = arith.addf %281, %287 : vector<1x1xf32>
    %cst_237 = arith.constant 5.000000e-01 : f32
    %289 = vector.broadcast %cst_237 : f32 to vector<1x1xf32>
    %290 = arith.mulf %288, %289 : vector<1x1xf32>
    %c0_238 = arith.constant 0 : index
    %c0_239 = arith.constant 0 : index
    %291 = vector.load %arg18[%c0_238, %c0_239] : memref<1x1xf32, #tpu.memory_space<vmem>>, vector<1x1xf32>
    tpu.vector_store %arg18[%c0_238, %c0_239], %290 {strides = array<i32>} : memref<1x1xf32, #tpu.memory_space<vmem>>, vector<1x1xf32>,
    return
  }
}

</mosaic_0001>

<bundles_post_ra>
// kernel: critic_forward.1
= control target key start
LH: loop header
LB: loop body
LE: loop exit
PB: predicated region body
PF: predicated region fallthrough
CT: control target
= control target key end

     0   :  { %s12765_s0 = inlined_call_operand.vmem [shape: bf16[128,48], index: 0, kind: input, shape index: {}]   ;;  %s12766_s1 = inlined_call_operand.vmem [shape: bf16[48,64], index: 1, kind: input, shape index: {}]   ;;  %s12767_s2 = inlined_call_operand.vmem [shape: f32[1,64], index: 2, kind: input, shape index: {}]   ;;  %s12768_s3 = inlined_call_operand.vmem [shape: f32[1,64], index: 3, kind: input, shape index: {}]   ;;  %s12769_s4 = inlined_call_operand.vmem [shape: f32[64,4], index: 4, kind: input, shape index: {}]   ;;  %s12770_s5 = inlined_call_operand.vmem [shape: f32[4,64], index: 5, kind: input, shape index: {}]   ;;  %s12771_s6 = inlined_call_operand.vmem [shape: f32[2,128], index: 6, kind: input, shape index: {}]   ;;  %s12772_s7 = inlined_call_operand.vmem [shape: f32[128,2], index: 7, kind: input, shape index: {}]   ;;  %s12773_s8 = inlined_call_operand.vmem [shape: bf16[16,32,128], index: 8, kind: input, shape index: {}]   ;;  %s12774_s9 = inlined_call_operand.vmem [shape: bf16[1024,128], index: 9, kind: input, shape index: {}]   ;;  %s12775_s10 = inlined_call_operand.vmem [shape: f32[1,128], index: 10, kind: input, shape index: {}]   ;;  %s12776_s11 = inlined_call_operand.vmem [shape: f32[1,128], index: 11, kind: input, shape index: {}]   ;;  %s12777_s12 = inlined_call_operand.vmem [shape: f32[128,8], index: 12, kind: input, shape index: {}]   ;;  %s12778_s13 = inlined_call_operand.vmem [shape: f32[8,128], index: 13, kind: input, shape index: {}]   ;;  %s12779_s14 = inlined_call_operand.vmem [shape: f32[2,32], index: 14, kind: input, shape index: {}]   ;;  %s12780_s15 = inlined_call_operand.vmem [shape: f32[32,2], index: 15, kind: input, shape index: {}]   ;;  %s12781_s16 = inlined_call_operand.vmem [shape: bf16[16,1,32], index: 16, kind: input, shape index: {}]   ;;  %s12782_s17 = inlined_call_operand.vmem [shape: bf16[2048,1], index: 17, kind: input, shape index: {}]   ;;  %s12783_s18 = inlined_call_operand.hbm [shape: f32[1,1], index: 18, kind: output, shape index: {}]  }
   0x1   :  { %12786 = sst [smem:[#allocation5_spill]] %s12765_s0 }
   0x2   :  { %12787 = sst [smem:[#allocation6_spill]] %s12766_s1 }
   0x3   :  { %12788 = sst [smem:[#allocation7_spill]] %s12767_s2 }
   0x4   :  { %s12789_s29 = sld [smem:[#allocation6_spill]]  ;;  %vm141_vm0 = vcmask 392192   ;;  %s12790_s20 = sld [smem:[#allocation5_spill]] }
   0xa   :  { %v10602_v0 = vld [vmem:[%s12789_s29] sm:$0xff]   ;;  %v10603_v1 = vld [vmem:[%s12789_s29 + $0x8] sm:$0xff]   ;;  %v10604_v3 = vld [vmem:[%s12789_s29 + $0x10] sm:$0xff]  }
   0xb   :  { %8483 = vmatprep.subr.bf16.mxu0 %v10602_v0  ;;  %v10605_v2 = vld [vmem:[%s12790_s20] sm:$0xff]   ;;  %v10606_v4 = vld [vmem:[%s12790_s20 + $0x8] sm:$0xff]   ;;  %v10607_v5 = vld [vmem:[%s12790_s20 + $0x10] sm:$0xff]  }
   0xc   :  { %8484 = vmatpush3.bf16.msra.mxu0 %v10602_v0  ;;  %8489 = vmatprep.mubr.msk.bf16.mxu0 %vm141_vm0, %v10605_v2  ;;  %v10608_v6 = vld [vmem:[%s12790_s20 + $0x18] sm:$0xff]   ;;  %v10609_v7 = vld [vmem:[%s12790_s20 + $0x20] sm:$0xff]   ;;  %v10610_v8 = vld [vmem:[%s12790_s20 + $0x28] sm:$0xff]  }
   0xd   :  { %8485 = vmatprep.subr.bf16.mxu0 %v10603_v1  ;;  %v10611_v9 = vld [vmem:[%s12790_s20 + $0x30] sm:$0xff]   ;;  %v10612_v10 = vld [vmem:[%s12790_s20 + $0x38] sm:$0xff]  }
  0x10   :  { %8486 = vmatpush3.bf16.msra.mxu0 %v10603_v1 }
  0x11   :  { %8487 = vmatprep.subr.bf16.mxu0 %v10604_v3 }
  0x14   :  { %8488 = vmatpush3.bf16.msra.mxu0 %v10604_v3 }
  0x17   :  { %8490 = vmatmul.mubr.msk.bf16.vlgmr.msra.gmra.mrb[0].mxu0 %vm141_vm0, %v10606_v4 }
  0x18   :  { %8493 = vmatprep.mubr.msk.bf16.mxu0 %vm141_vm0, %v10607_v5 }
  0x1f   :  { %8494 = vmatmul.mubr.msk.bf16.gmra.mrb[4].mxu0 %vm141_vm0, %v10608_v6 }
  0x20   :  { %8497 = vmatprep.mubr.msk.bf16.mxu0 %vm141_vm0, %v10609_v7 }
  0x27   :  { %8498 = vmatmul.mubr.msk.bf16.gmra.mrb[8].mxu0 %vm141_vm0, %v10610_v8 }
  0x28   :  { %8501 = vmatprep.mubr.msk.bf16.mxu0 %vm141_vm0, %v10611_v9 }
  0x2f   :  { %8502 = vmatmul.mubr.msk.bf16.gmra.mrb[12].mxu0 %vm141_vm0, %v10612_v10 }
  0x30   :  { %23 = vsyncpa [#allocation3], 0  ;;  %v10737_v11 = vmov 0.0|0.0   ;;  %vm10738_vm1 = vmmov 0   ;;  %v10739_v12 = vmov 0.0   ;;  %v280_v13 = vld [vmem:[%s12769_s4] sm:$0xff] }
  0x31   :  { %9993 = vmatprep.subr.bf16.mxu1 %v10737_v11  ;;  %10017 = vmatprep.subr.bf16.mxu0 %v10737_v11  ;;  %v281_v14 = vld [vmem:[%s12769_s4 + $0x8] sm:$0xff]  ;;  %v282_v15 = vld [vmem:[%s12769_s4 + $0x10] sm:$0xff]  ;;  %v283_v17 = vld [vmem:[%s12769_s4 + $0x18] sm:$0xff]  ;;  %vm359_vm2 = vcmask 523264   ;;  %vm437_vm3 = vcmask 1043456   ;;  %vm433_vm4 = vcmask 31744  }
  0x32   :  { %8537 = vmatprep.mubr.msk.f32.mxu1 %vm10738_vm1, %v10739_v12  ;;  %8556 = vmatprep.mubr.msk.f32.mxu0 %vm10738_vm1, %v10739_v12  ;;  %v10892_v16 = vpack.c.bf16 %v281_v14, %v280_v13  ;;  %v10898_v18 = vpack.c.bf16 %v283_v17, %v282_v15  ;;  %v284_v19 = vld [vmem:[%s12769_s4 + $0x20] sm:$0xff]  ;;  %v285_v20 = vld [vmem:[%s12769_s4 + $0x28] sm:$0xff]  ;;  %v286_v22 = vld [vmem:[%s12769_s4 + $0x30] sm:$0xff]  ;;  %vm511_vm5 = vcmask 15360   ;;  %vm560_vm6 = vcmask 1041408   ;;  %s12791_s23 = sld [smem:[#allocation7_spill]] }
  0x33   :  { %v10024_v21 = vpack.c.bf16 %v285_v20, %v284_v19  ;;  %v287_v23 = vld [vmem:[%s12769_s4 + $0x38] sm:$0xff]  ;;  %v10975_v49 = vld [vmem:[%s12771_s6] sm:$0x3]  ;;  %v11007_v57 = vld [vmem:[%s12772_s7 + $0x8] sm:$0xff]  ;;  %s10740_s0 = smov [#allocation2]  }
  0x34   :  { %10019 = vmatpush3.bf16.msra.mxu0 %v10892_v16  ;;  %v10027_v24 = vpack.c.bf16 %v287_v23, %v286_v22  ;;  %v10992_v52 = vld [vmem:[%s12770_s5] sm:$0xf]  ;;  %v11013_v59 = vld [vmem:[%s12772_s7 + $0x10] sm:$0xff]  ;;  %v11024_v60 = vld [vmem:[%s12772_s7 + $0x18] sm:$0xff] }
  0x35   :  { %10020 = vmatprep.subr.bf16.mxu0 %v10737_v11  ;;  %v11000_v55 = vld [vmem:[%s12772_s7] sm:$0xff]  ;;  %v11038_v62 = vld [vmem:[%s12772_s7 + $0x28] sm:$0xff]  ;;  %v11043_v63 = vld [vmem:[%s12772_s7 + $0x30] sm:$0xff] }
  0x36   :  { %v11029_v61 = vld [vmem:[%s12772_s7 + $0x20] sm:$0xff]  ;;  %v11052_v0 = vld [vmem:[%s12772_s7 + $0x38] sm:$0xff]  ;;  %v11066_v2 = vld [vmem:[%s12772_s7 + $0x48] sm:$0xff] }
  0x37   :  { %v11057_v1 = vld [vmem:[%s12772_s7 + $0x40] sm:$0xff]  ;;  %v11071_v3 = vld [vmem:[%s12772_s7 + $0x50] sm:$0xff]  ;;  %v11080_v4 = vld [vmem:[%s12772_s7 + $0x58] sm:$0xff] }
  0x38   :  { %10022 = vmatpush3.bf16.msra.mxu0 %v10898_v18  ;;  %v11085_v5 = vld [vmem:[%s12772_s7 + $0x60] sm:$0xff]  ;;  %v11094_v6 = vld [vmem:[%s12772_s7 + $0x68] sm:$0xff]  ;;  %v11099_v7 = vld [vmem:[%s12772_s7 + $0x70] sm:$0xff] }
  0x39   :  { %10023 = vmatprep.subr.bf16.mxu0 %v10737_v11  ;;  %v11108_v8 = vld [vmem:[%s12772_s7 + $0x78] sm:$0xff] }
  0x3c   :  { %10025 = vmatpush3.bf16.msra.mxu0 %v10024_v21 }
  0x3d   :  { %10026 = vmatprep.subr.bf16.mxu0 %v10737_v11 }
  0x40   :  { %10028 = vmatpush3.bf16.msra.mxu0 %v10027_v24 }
  0x41   :  { %10053 = vmatprep.subr.bf16.mxu0 %v10737_v11 }
  0xea   :  { %v10917_v25 = vpop.f32.mrb[0].mxu0 }
  0xeb   :  { %v10919_v26 = vpop.f32.mrb[1].mxu0 }
  0xec   :  { %v10921_v27 = vpop.f32.mrb[2].mxu0 }
  0xed   :  { %v9997_v28 = vpack.c.bf16 %v10921_v27, %v10917_v25  ;;  %v10925_v29 = vpop.f32.mrb[3].mxu0 }
  0xee   :  { %v9994_v30 = vpack.c.bf16 %v10925_v29, %v10919_v26 }
  0xf0   :  { %9995 = vmatpush3.bf16.msra.mxu1 %v9994_v30 }
  0xf1   :  { %9996 = vmatprep.subr.bf16.mxu1 %v10737_v11 }
  0xf2   :  { %v10930_v31 = vpop.f32.mrb[4].mxu0 }
  0xf3   :  { %v10932_v32 = vpop.f32.mrb[5].mxu0 }
  0xf4   :  { %v10934_v33 = vpop.f32.mrb[6].mxu0  ;;  %9998 = vmatpush3.bf16.msra.mxu1 %v9997_v28 }
  0xf5   :  { %v10003_v34 = vpack.c.bf16 %v10934_v33, %v10930_v31  ;;  %v10938_v35 = vpop.f32.mrb[7].mxu0  ;;  %9999 = vmatprep.subr.bf16.mxu1 %v10737_v11 }
  0xf6   :  { %v10000_v36 = vpack.c.bf16 %v10938_v35, %v10932_v32 }
  0xf8   :  { %10001 = vmatpush3.bf16.msra.mxu1 %v10000_v36 }
  0xf9   :  { %10002 = vmatprep.subr.bf16.mxu1 %v10737_v11 }
  0xfa   :  { %v10944_v37 = vpop.f32.mrb[8].mxu0 }
  0xfb   :  { %v10946_v38 = vpop.f32.mrb[9].mxu0 }
  0xfc   :  { %v10948_v39 = vpop.f32.mrb[10].mxu0  ;;  %10004 = vmatpush3.bf16.msra.mxu1 %v10003_v34 }
  0xfd   :  { %v10009_v40 = vpack.c.bf16 %v10948_v39, %v10944_v37  ;;  %v10952_v41 = vpop.f32.mrb[11].mxu0  ;;  %10005 = vmatprep.subr.bf16.mxu1 %v10737_v11 }
  0xfe   :  { %v10006_v42 = vpack.c.bf16 %v10952_v41, %v10946_v38 }
 0x100   :  { %10007 = vmatpush3.bf16.msra.mxu1 %v10006_v42 }
 0x101   :  { %10008 = vmatprep.subr.bf16.mxu1 %v10737_v11 }
 0x102   :  { %v10958_v43 = vpop.f32.mrb[12].mxu0 }
 0x103   :  { %v10960_v44 = vpop.f32.mrb[13].mxu0 }
 0x104   :  { %v10962_v45 = vpop.f32.mrb[14].mxu0  ;;  %10010 = vmatpush3.bf16.msra.mxu1 %v10009_v40 }
 0x105   :  { %v10015_v46 = vpack.c.bf16 %v10962_v45, %v10958_v43  ;;  %v10966_v47 = vpop.f32.mrb[15].mxu0  ;;  %10011 = vmatprep.subr.bf16.mxu1 %v10737_v11 }
 0x106   :  { %v10012_v48 = vpack.c.bf16 %v10966_v47, %v10960_v44 }
 0x108   :  { %10013 = vmatpush3.bf16.msra.mxu1 %v10012_v48 }
 0x109   :  { %10014 = vmatprep.subr.bf16.mxu1 %v10737_v11 }
 0x10c   :  { %10016 = vmatpush3.bf16.msra.mxu1 %v10015_v46 }
 0x10d   :  { %8559 = vmatprep.subr.mxu1 %v10739_v12 }
 0x10f   :  { %8538 = vmatmul.mubr.f32.vlgmr.msra.gmra.mrb[0].mxu1 %v10975_v49 }
 0x110   :  { %8561 = vmatprep.mubr.msk.f32.mxu1 %vm10738_vm1, %v10739_v12  ;;  %8560 = vmatpush3.msk.msra.mxu1 %vm437_vm3, %v10992_v52 }
 0x1e2   :  { %v355_v50 = vpop.f32.mrb[0].mxu1 }
 0x1e3   :  { %v8539_v51 = vpop.f32.mrb[1].mxu1  ;;  %8557 = vmatmul.mubr.msk.f32.vlgmr.msra.gmra.mrb[16].mxu0 %vm359_vm2, %v355_v50 }
 0x1e4   :  { %10055 = vmatpush3.bf16.msra.mxu0 %v10892_v16  ;;  %8641 = vmatprep.mubr.msk.f32.mxu0 %vm10738_vm1, %v10739_v12 }
 0x1e5   :  { %10056 = vmatprep.subr.bf16.mxu0 %v10737_v11 }
 0x1e8   :  { %10058 = vmatpush3.bf16.msra.mxu0 %v10898_v18 }
 0x1e9   :  { %10059 = vmatprep.subr.bf16.mxu0 %v10737_v11 }
 0x1ec   :  { %10061 = vmatpush3.bf16.msra.mxu0 %v10024_v21 }
 0x1ed   :  { %10062 = vmatprep.subr.bf16.mxu0 %v10737_v11 }
 0x1f0   :  { %10064 = vmatpush3.bf16.msra.mxu0 %v10027_v24 }
 0x2b6   :  { %v429_v53 = vpop.f32.mrb[16].mxu0 }
 0x2b7   :  { %v8558_v54 = vpop.f32.mrb[17].mxu0  ;;  %8562 = vmatmul.mubr.msk.f32.vlgmr.msra.gmra.mrb[2].mxu1 %vm433_vm4, %v429_v53 }
 0x2b8   :  { %8566 = vmatprep.mubr.msk.f32.mxu1 %vm511_vm5, %v11000_v55 }
 0x38a   :  { %v507_v56 = vpop.f32.mrb[2].mxu1 }
 0x38b   :  { %v8563_v58 = vpop.f32.mrb[3].mxu1  ;;  %8564 = vmatprep.subr.msk.mxu1 %vm560_vm6, %v507_v56 }
 0x38c   :  { %8565 = vmatpush3.msk.msra.mxu1 %vm560_vm6, %v507_v56 }
 0x38d   :  { %8567 = vmatmul.mubr.msk.f32.vlgmr.msra.gmra.mrb[4].mxu1 %vm511_vm5, %v11007_v57  ;;  %10029 = vmatprep.subr.bf16.mxu1 %v10737_v11 }
 0x38e   :  { %8569 = vmatprep.mubr.msk.f32.mxu1 %vm511_vm5, %v11013_v59 }
 0x391   :  { %8570 = vmatmul.mubr.msk.f32.gmra.mrb[6].mxu1 %vm511_vm5, %v11024_v60 }
 0x392   :  { %8572 = vmatprep.mubr.msk.f32.mxu1 %vm511_vm5, %v11029_v61 }
 0x395   :  { %8573 = vmatmul.mubr.msk.f32.gmra.mrb[8].mxu1 %vm511_vm5, %v11038_v62 }
 0x396   :  { %8575 = vmatprep.mubr.msk.f32.mxu1 %vm511_vm5, %v11043_v63 }
 0x399   :  { %8576 = vmatmul.mubr.msk.f32.gmra.mrb[10].mxu1 %vm511_vm5, %v11052_v0 }
 0x39a   :  { %8578 = vmatprep.mubr.msk.f32.mxu1 %vm511_vm5, %v11057_v1 }
 0x39d   :  { %8579 = vmatmul.mubr.msk.f32.gmra.mrb[12].mxu1 %vm511_vm5, %v11066_v2 }
 0x39e   :  { %8581 = vmatprep.mubr.msk.f32.mxu1 %vm511_vm5, %v11071_v3 }
 0x3a1   :  { %8582 = vmatmul.mubr.msk.f32.gmra.mrb[14].mxu1 %vm511_vm5, %v11080_v4 }
 0x3a2   :  { %8584 = vmatprep.mubr.msk.f32.mxu1 %vm511_vm5, %v11085_v5 }
 0x3a5   :  { %8585 = vmatmul.mubr.msk.f32.gmra.mrb[16].mxu1 %vm511_vm5, %v11094_v6 }
 0x3a6   :  { %8587 = vmatprep.mubr.msk.f32.mxu1 %vm511_vm5, %v11099_v7 }
 0x3a9   :  { %8588 = vmatmul.mubr.msk.f32.gmra.mrb[18].mxu1 %vm511_vm5, %v11108_v8 }
 0x3aa   :  { %8622 = vmatprep.mubr.msk.f32.mxu1 %vm10738_vm1, %v10739_v12 }
 0x460   :  { %v8568_v9 = vpop.f32.mrb[4].mxu1 }
 0x461   :  { %v11115_v10 = vsub.f32 %v10925_v29, %v8568_v9  ;;  %v630_v13 = vpop.f32.mrb[5].mxu1 }
 0x462   :  { %v11118_v14 = vsub.f32 %v10919_v26, %v630_v13 }
 0x463   :  { %v726_v15 = vmul.f32 %v11115_v10, %v11115_v10 }
 0x464   :  { %v725_v16 = vmul.f32 %v11118_v14, %v11118_v14  ;;  %v8571_v17 = vpop.f32.mrb[6].mxu1 }
 0x465   :  { %v11125_v18 = vsub.f32 %v10921_v27, %v8571_v17  ;;  %v640_v19 = vpop.f32.mrb[7].mxu1 }
 0x466   :  { %v10030_v20 = vpack.c.bf16 %v726_v15, %v725_v16  ;;  %v11128_v21 = vsub.f32 %v10917_v25, %v640_v19 }
 0x467   :  { %v728_v22 = vmul.f32 %v11125_v18, %v11125_v18 }
 0x468   :  { %v727_v23 = vmul.f32 %v11128_v21, %v11128_v21  ;;  %v8574_v24 = vpop.f32.mrb[8].mxu1  ;;  %10031 = vmatpush3.bf16.msra.mxu1 %v10030_v20 }
 0x469   :  { %v11135_v26 = vsub.f32 %v10938_v35, %v8574_v24  ;;  %v650_v28 = vpop.f32.mrb[9].mxu1  ;;  %10032 = vmatprep.subr.bf16.mxu1 %v10737_v11 }
 0x46a   :  { %v10033_v27 = vpack.c.bf16 %v728_v22, %v727_v23  ;;  %v11139_v29 = vsub.f32 %v10932_v32, %v650_v28 }
 0x46b   :  { %v730_v25 = vmul.f32 %v11135_v26, %v11135_v26 }
 0x46c   :  { %v729_v30 = vmul.f32 %v11139_v29, %v11139_v29  ;;  %v8577_v34 = vpop.f32.mrb[10].mxu1  ;;  %10034 = vmatpush3.bf16.msra.mxu1 %v10033_v27 }
 0x46d   :  { %v11146_v36 = vsub.f32 %v10934_v33, %v8577_v34  ;;  %v660_v35 = vpop.f32.mrb[11].mxu1  ;;  %10035 = vmatprep.subr.bf16.mxu1 %v10737_v11 }
 0x46e   :  { %v10036_v40 = vpack.c.bf16 %v730_v25, %v729_v30  ;;  %v11150_v42 = vsub.f32 %v10930_v31, %v660_v35 }
 0x46f   :  { %v732_v32 = vmul.f32 %v11146_v36, %v11146_v36 }
 0x470   :  { %v731_v46 = vmul.f32 %v11150_v42, %v11150_v42  ;;  %v8580_v48 = vpop.f32.mrb[12].mxu1  ;;  %10037 = vmatpush3.bf16.msra.mxu1 %v10036_v40 }
 0x471   :  { %v11157_v50 = vsub.f32 %v10952_v41, %v8580_v48  ;;  %v670_v33 = vpop.f32.mrb[13].mxu1  ;;  %10038 = vmatprep.subr.bf16.mxu1 %v10737_v11 }
 0x472   :  { %v10039_v51 = vpack.c.bf16 %v732_v32, %v731_v46  ;;  %v11161_v53 = vsub.f32 %v10946_v38, %v670_v33 }
 0x473   :  { %v734_v31 = vmul.f32 %v11157_v50, %v11157_v50 }
 0x474   :  { %v733_v54 = vmul.f32 %v11161_v53, %v11161_v53  ;;  %v8583_v56 = vpop.f32.mrb[14].mxu1  ;;  %10040 = vmatpush3.bf16.msra.mxu1 %v10039_v51 }
 0x475   :  { %v11168_v58 = vsub.f32 %v10948_v39, %v8583_v56  ;;  %v680_v41 = vpop.f32.mrb[15].mxu1  ;;  %10041 = vmatprep.subr.bf16.mxu1 %v10737_v11 }
 0x476   :  { %v10042_v9 = vpack.c.bf16 %v734_v31, %v733_v54  ;;  %v11172_v13 = vsub.f32 %v10944_v37, %v680_v41 }
 0x477   :  { %v736_v38 = vmul.f32 %v11168_v58, %v11168_v58 }
 0x478   :  { %v735_v15 = vmul.f32 %v11172_v13, %v11172_v13  ;;  %v8586_v16 = vpop.f32.mrb[16].mxu1  ;;  %10043 = vmatpush3.bf16.msra.mxu1 %v10042_v9 }
 0x479   :  { %v11179_v17 = vsub.f32 %v10966_v47, %v8586_v16  ;;  %v690_v39 = vpop.f32.mrb[17].mxu1  ;;  %10044 = vmatprep.subr.bf16.mxu1 %v10737_v11 }
 0x47a   :  { %v10045_v19 = vpack.c.bf16 %v736_v38, %v735_v15  ;;  %v11183_v20 = vsub.f32 %v10960_v44, %v690_v39 }
 0x47b   :  { %v738_v37 = vmul.f32 %v11179_v17, %v11179_v17 }
 0x47c   :  { %v737_v22 = vmul.f32 %v11183_v20, %v11183_v20  ;;  %v8589_v23 = vpop.f32.mrb[18].mxu1  ;;  %10046 = vmatpush3.bf16.msra.mxu1 %v10045_v19 }
 0x47d   :  { %v11190_v24 = vsub.f32 %v10962_v45, %v8589_v23  ;;  %v700_v47 = vpop.f32.mrb[19].mxu1  ;;  %10047 = vmatprep.subr.bf16.mxu1 %v10737_v11 }
 0x47e   :  { %v10048_v28 = vpack.c.bf16 %v738_v37, %v737_v22  ;;  %v11194_v27 = vsub.f32 %v10958_v43, %v700_v47 }
 0x47f   :  { %v740_v44 = vmul.f32 %v11190_v24, %v11190_v24 }
 0x480   :  { %v739_v25 = vmul.f32 %v11194_v27, %v11194_v27  ;;  %10049 = vmatpush3.bf16.msra.mxu1 %v10048_v28 }
 0x481   :  { %10050 = vmatprep.subr.bf16.mxu1 %v10737_v11 }
 0x482   :  { %v10051_v30 = vpack.c.bf16 %v740_v44, %v739_v25 }
 0x484   :  { %10052 = vmatpush3.bf16.msra.mxu1 %v10051_v30 }
 0x485   :  { %8644 = vmatprep.subr.mxu1 %v10739_v12 }
 0x487   :  { %8623 = vmatmul.mubr.f32.vlgmr.msra.gmra.mrb[20].mxu1 %v10975_v49  ;;  %v6855_v49 = vld [vmem:[%s12791_s23] ss:$0 sm:$0xff] }
 0x488   :  { %8645 = vmatpush3.msk.msra.mxu1 %vm437_vm3, %v10992_v52  ;;  %8646 = vmatprep.mubr.msk.f32.mxu1 %vm10738_vm1, %v10739_v12 }
 0x55a   :  { %v807_v43 = vpop.f32.mrb[20].mxu1 }
 0x55b   :  { %v8624_v45 = vpop.f32.mrb[21].mxu1  ;;  %8642 = vmatmul.mubr.msk.f32.vlgmr.msra.gmra.mrb[18].mxu0 %vm359_vm2, %v807_v43 }
 0x55c   :  { %8651 = vmatprep.mubr.msk.f32.mxu0 %vm511_vm5, %v11000_v55  ;;  %v10613_v55 = vld [vmem:[%s12773_s8 + $0x10] sm:$0xff]  }
 0x62e   :  { %v880_v34 = vpop.f32.mrb[18].mxu0 }
 0x62f   :  { %v881_v35 = vadd.f32 1e-05, %v880_v34  ;;  %v8643_v40 = vpop.f32.mrb[19].mxu0 }
 0x631   :  { %10709 = vrsqrt.f32 %v881_v35 }
 0x63b   :  { %v10710_v32 = vpop.eup %10709 }
 0x63c   :  { %8647 = vmatmul.mubr.msk.f32.vlgmr.msra.gmra.mrb[22].mxu1 %vm433_vm4, %v10710_v32 }
 0x63d   :  { %8711 = vmatprep.mubr.bf16.mxu1 %v10613_v55 }
 0x70f   :  { %v954_v52 = vpop.f32.mrb[22].mxu1 }
 0x710   :  { %v965_v46 = vmul.f32 %v6855_v49, %v954_v52  ;;  %v8648_v48 = vpop.f32.mrb[23].mxu1 }
 0x712   :  { %8649 = vmatprep.subr.msk.mxu0 %vm560_vm6, %v965_v46 }
 0x713   :  { %8650 = vmatpush3.msk.msra.mxu0 %vm560_vm6, %v965_v46 }
 0x714   :  { %8652 = vmatmul.mubr.msk.f32.vlgmr.msra.gmra.mrb[20].mxu0 %vm511_vm5, %v11007_v57  ;;  %v10615_v57 = vld [vmem:[%s12773_s8] sm:$0xff]  }
 0x715   :  { %8654 = vmatprep.mubr.msk.f32.mxu0 %vm511_vm5, %v11013_v59 }
 0x718   :  { %8655 = vmatmul.mubr.msk.f32.gmra.mrb[22].mxu0 %vm511_vm5, %v11024_v60  ;;  %v11255_v60 = vld [vmem:[%s12768_s3] ss:$0 sm:$0xff] }
 0x719   :  { %8657 = vmatprep.mubr.msk.f32.mxu0 %vm511_vm5, %v11029_v61 }
 0x71c   :  { %8658 = vmatmul.mubr.msk.f32.gmra.mrb[24].mxu0 %vm511_vm5, %v11038_v62 }
 0x71d   :  { %8660 = vmatprep.mubr.msk.f32.mxu0 %vm511_vm5, %v11043_v63 }
 0x720   :  { %8661 = vmatmul.mubr.msk.f32.gmra.mrb[26].mxu0 %vm511_vm5, %v11052_v0 }
 0x721   :  { %8663 = vmatprep.mubr.msk.f32.mxu0 %vm511_vm5, %v11057_v1 }
 0x724   :  { %8664 = vmatmul.mubr.msk.f32.gmra.mrb[28].mxu0 %vm511_vm5, %v11066_v2 }
 0x725   :  { %8666 = vmatprep.mubr.msk.f32.mxu0 %vm511_vm5, %v11071_v3 }
 0x728   :  { %8667 = vmatmul.mubr.msk.f32.gmra.mrb[30].mxu0 %vm511_vm5, %v11080_v4 }
 0x729   :  { %8669 = vmatprep.mubr.msk.f32.mxu0 %vm511_vm5, %v11085_v5 }
 0x72c   :  { %8670 = vmatmul.mubr.msk.f32.gmra.mrb[32].mxu0 %vm511_vm5, %v11094_v6 }
 0x72d   :  { %8672 = vmatprep.mubr.msk.f32.mxu0 %vm511_vm5, %v11099_v7 }
 0x730   :  { %8673 = vmatmul.mubr.msk.f32.gmra.mrb[34].mxu0 %vm511_vm5, %v11108_v8 }
 0x731   :  { %8691 = vmatprep.mubr.bf16.mxu0 %v10615_v57 }
 0x7e7   :  { %v8653_v59 = vpop.f32.mrb[20].mxu0 }
 0x7e8   :  { %v1115_v61 = vmul.f32 %v8653_v59, %v11115_v10  ;;  %v1035_v62 = vpop.f32.mrb[21].mxu0 }
 0x7e9   :  { %v1114_v63 = vmul.f32 %v1035_v62, %v11118_v14 }
 0x7ea   :  { %v1138_v0 = vadd.f32 %v11255_v60, %v1115_v61 }
 0x7eb   :  { %v1137_v1 = vadd.f32 %v11255_v60, %v1114_v63  ;;  %v8656_v2 = vpop.f32.mrb[22].mxu0 }
 0x7ec   :  { %vm1154_vm7 = vcmp.gt.f32.partialorder %v1138_v0, 0.0  ;;  %v1170_v3 = vmul.f32 0.01, %v1138_v0  ;;  %v1117_v4 = vmul.f32 %v8656_v2, %v11125_v18  ;;  %v1045_v5 = vpop.f32.mrb[23].mxu0 }
 0x7ed   :  { %vm1153_vm8 = vcmp.gt.f32.partialorder %v1137_v1, 0.0  ;;  %v1169_v6 = vmul.f32 0.01, %v1137_v1  ;;  %v1116_v7 = vmul.f32 %v1045_v5, %v11128_v21 }
 0x7ee   :  { %v1186_v8 = vsel %vm1154_vm7, %v1138_v0, %v1170_v3  ;;  %v1140_v10 = vadd.f32 %v11255_v60, %v1117_v4 }
 0x7ef   :  { %v1185_v33 = vsel %vm1153_vm8, %v1137_v1, %v1169_v6  ;;  %v1139_v14 = vadd.f32 %v11255_v60, %v1116_v7  ;;  %v8659_v51 = vpop.f32.mrb[24].mxu0 }
 0x7f0   :  { %v11265_v31 = vpack.c.bf16 %v1186_v8, %v1185_v33  ;;  %vm1156_vm9 = vcmp.gt.f32.partialorder %v1140_v10, 0.0  ;;  %v1172_v54 = vmul.f32 0.01, %v1140_v10  ;;  %v1119_v56 = vmul.f32 %v8659_v51, %v11135_v26  ;;  %v1055_v41 = vpop.f32.mrb[25].mxu0 }
 0x7f1   :  { %vm1155_vm10 = vcmp.gt.f32.partialorder %v1139_v14, 0.0  ;;  %v1171_v18 = vmul.f32 0.01, %v1139_v14  ;;  %v1118_v9 = vmul.f32 %v1055_v41, %v11139_v29 }
 0x7f2   :  { %v1188_v38 = vsel %vm1156_vm9, %v1140_v10, %v1172_v54  ;;  %v1142_v21 = vadd.f32 %v11255_v60, %v1119_v56  ;;  %8675 = vmatprep.subr.bf16.mxu0 %v11265_v31  ;;  %8695 = vmatprep.subr.bf16.mxu1 %v11265_v31 }
 0x7f3   :  { %v1187_v15 = vsel %vm1155_vm10, %v1139_v14, %v1171_v18  ;;  %v1141_v16 = vadd.f32 %v11255_v60, %v1118_v9  ;;  %v8662_v39 = vpop.f32.mrb[26].mxu0  ;;  %8676 = vmatpush3.bf16.msra.mxu0 %v11265_v31  ;;  %8696 = vmatpush3.bf16.msra.mxu1 %v11265_v31 }
 0x7f4   :  { %v11275_v26 = vpack.c.bf16 %v1188_v38, %v1187_v15  ;;  %vm1158_vm11 = vcmp.gt.f32.partialorder %v1142_v21, 0.0  ;;  %v1174_v19 = vmul.f32 0.01, %v1142_v21  ;;  %v1121_v29 = vmul.f32 %v8662_v39, %v11146_v36  ;;  %v1065_v37 = vpop.f32.mrb[27].mxu0  ;;  %v10614_v39 = vld [vmem:[%s12773_s8 + $0x18] sm:$0xff]  }
 0x7f5   :  { %vm1157_vm12 = vcmp.gt.f32.partialorder %v1141_v16, 0.0  ;;  %v1173_v22 = vmul.f32 0.01, %v1141_v16  ;;  %v1120_v23 = vmul.f32 %v1065_v37, %v11150_v42  ;;  %v10618_v37 = vld [vmem:[%s12773_s8 + $0x28] sm:$0xff]  }
 0x7f6   :  { %v1190_v47 = vsel %vm1158_vm11, %v1142_v21, %v1174_v19  ;;  %v1144_v28 = vadd.f32 %v11255_v60, %v1121_v29  ;;  %8677 = vmatprep.subr.bf16.mxu0 %v11275_v26  ;;  %8697 = vmatprep.subr.bf16.mxu1 %v11275_v26  ;;  %v10616_v19 = vld [vmem:[%s12773_s8 + $0x8] sm:$0xff]   ;;  %v10617_v29 = vld [vmem:[%s12773_s8 + $0x20] sm:$0xff]   ;;  %vm3910_vm11 = vcmask 64512  }
 0x7f7   :  { %v1189_v44 = vsel %vm1157_vm12, %v1141_v16, %v1173_v22  ;;  %v1143_v25 = vadd.f32 %v11255_v60, %v1120_v23  ;;  %v8665_v30 = vpop.f32.mrb[28].mxu0  ;;  %8678 = vmatpush3.bf16.msra.mxu0 %v11275_v26  ;;  %8698 = vmatpush3.bf16.msra.mxu1 %v11275_v26  ;;  %v10619_v22 = vld [vmem:[%s12773_s8 + $0x30] sm:$0xff]   ;;  %v10620_v23 = vld [vmem:[%s12773_s8 + $0x38] sm:$0xff]  }
 0x7f8   :  { %v11285_v36 = vpack.c.bf16 %v1190_v47, %v1189_v44  ;;  %vm1160_vm13 = vcmp.gt.f32.partialorder %v1144_v28, 0.0  ;;  %v1176_v43 = vmul.f32 0.01, %v1144_v28  ;;  %v1123_v42 = vmul.f32 %v8665_v30, %v11157_v50  ;;  %v1075_v45 = vpop.f32.mrb[29].mxu0  ;;  %v10621_v47 = vld [vmem:[%s12773_s8 + $0x40] sm:$0xff]   ;;  %v10630_v44 = vld [vmem:[%s12774_s9 + $0x28] sm:$0xff]  }
 0x7f9   :  { %vm1159_vm14 = vcmp.gt.f32.partialorder %v1143_v25, 0.0  ;;  %v1175_v34 = vmul.f32 0.01, %v1143_v25  ;;  %v1122_v35 = vmul.f32 %v1075_v45, %v11161_v53  ;;  %v10632_v30 = vld [vmem:[%s12774_s9 + $0x38] sm:$0xff]   ;;  %v10623_v45 = vld [vmem:[%s12773_s8 + $0x50] sm:$0xff]  }
 0x7fa   :  { %v1192_v40 = vsel %vm1160_vm13, %v1144_v28, %v1176_v43  ;;  %v1146_v32 = vadd.f32 %v11255_v60, %v1123_v42  ;;  %8679 = vmatprep.subr.bf16.mxu0 %v11285_v36  ;;  %8699 = vmatprep.subr.bf16.mxu1 %v11285_v36  ;;  %v10629_v28 = vld [vmem:[%s12774_s9 + $0x20] sm:$0xff]   ;;  %v10622_v42 = vld [vmem:[%s12773_s8 + $0x48] sm:$0xff]  }
 0x7fb   :  { %v1191_v49 = vsel %vm1159_vm14, %v1143_v25, %v1175_v34  ;;  %v1145_v52 = vadd.f32 %v11255_v60, %v1122_v35  ;;  %v8668_v46 = vpop.f32.mrb[30].mxu0  ;;  %8680 = vmatpush3.bf16.msra.mxu0 %v11285_v36  ;;  %8700 = vmatpush3.bf16.msra.mxu1 %v11285_v36  ;;  %v10631_v25 = vld [vmem:[%s12774_s9 + $0x30] sm:$0xff]   ;;  %v11418_v43 = vld [vmem:[%s12774_s9] sm:$0xff]   ;;  %v10624_v34 = vld [vmem:[%s12773_s8 + $0x58] sm:$0xff]  }
 0x7fc   :  { %v11295_v50 = vpack.c.bf16 %v1192_v40, %v1191_v49  ;;  %vm1162_vm15 = vcmp.gt.f32.partialorder %v1146_v32, 0.0  ;;  %v1178_v48 = vmul.f32 0.01, %v1146_v32  ;;  %v1125_v53 = vmul.f32 %v8668_v46, %v11168_v58  ;;  %v1085_v55 = vpop.f32.mrb[31].mxu0  ;;  %v10625_v35 = vld [vmem:[%s12773_s8 + $0x60] sm:$0xff]   ;;  %v10626_v40 = vld [vmem:[%s12773_s8 + $0x68] sm:$0xff]  }
 0x7fd   :  { %vm1161_vm0 = vcmp.gt.f32.partialorder %v1145_v52, 0.0  ;;  %v1177_v57 = vmul.f32 0.01, %v1145_v52  ;;  %v1124_v59 = vmul.f32 %v1085_v55, %v11172_v13  ;;  %v10628_v49 = vld [vmem:[%s12773_s8 + $0x78] sm:$0xff]  }
 0x7fe   :  { %v1194_v61 = vsel %vm1162_vm15, %v1146_v32, %v1178_v48  ;;  %v1148_v62 = vadd.f32 %v11255_v60, %v1125_v53  ;;  %8681 = vmatprep.subr.bf16.mxu0 %v11295_v50  ;;  %8701 = vmatprep.subr.bf16.mxu1 %v11295_v50  ;;  %v10627_v32 = vld [vmem:[%s12773_s8 + $0x70] sm:$0xff]  }
 0x7ff   :  { %v1193_v63 = vsel %vm1161_vm0, %v1145_v52, %v1177_v57  ;;  %v1147_v0 = vadd.f32 %v11255_v60, %v1124_v59  ;;  %v8671_v1 = vpop.f32.mrb[32].mxu0  ;;  %8682 = vmatpush3.bf16.msra.mxu0 %v11295_v50  ;;  %8702 = vmatpush3.bf16.msra.mxu1 %v11295_v50  ;;  %v10635_v52 = vld [vmem:[%s12773_s8 + $0x80] sm:$0xff]  }
 0x800   :  { %v11305_v58 = vpack.c.bf16 %v1194_v61, %v1193_v63  ;;  %vm1164_vm3 = vcmp.gt.f32.partialorder %v1148_v62, 0.0  ;;  %v1180_v2 = vmul.f32 0.01, %v1148_v62  ;;  %v1127_v13 = vmul.f32 %v8671_v1, %v11179_v17  ;;  %v1095_v3 = vpop.f32.mrb[33].mxu0 }
 0x801   :  { %vm1163_vm4 = vcmp.gt.f32.partialorder %v1147_v0, 0.0  ;;  %v1179_v4 = vmul.f32 0.01, %v1147_v0  ;;  %v1126_v5 = vmul.f32 %v1095_v3, %v11183_v20  ;;  %v10636_v3 = vld [vmem:[%s12773_s8 + $0x88] sm:$0xff]  }
 0x802   :  { %v1196_v6 = vsel %vm1164_vm3, %v1148_v62, %v1180_v2  ;;  %v1150_v7 = vadd.f32 %v11255_v60, %v1127_v13  ;;  %8683 = vmatprep.subr.bf16.mxu0 %v11305_v58  ;;  %8703 = vmatprep.subr.bf16.mxu1 %v11305_v58  ;;  %v10634_v13 = vld [vmem:[%s12774_s9 + $0x8] sm:$0xff]  }
 0x803   :  { %v1195_v8 = vsel %vm1163_vm4, %v1147_v0, %v1179_v4  ;;  %v1149_v10 = vadd.f32 %v11255_v60, %v1126_v5  ;;  %v8674_v33 = vpop.f32.mrb[34].mxu0  ;;  %8684 = vmatpush3.bf16.msra.mxu0 %v11305_v58  ;;  %8704 = vmatpush3.bf16.msra.mxu1 %v11305_v58  ;;  %v10637_v4 = vld [vmem:[%s12774_s9 + $0x10] sm:$0xff]  }
 0x804   :  { %v11315_v17 = vpack.c.bf16 %v1196_v6, %v1195_v8  ;;  %vm1166_vm7 = vcmp.gt.f32.partialorder %v1150_v7, 0.0  ;;  %v1182_v14 = vmul.f32 0.01, %v1150_v7  ;;  %v1129_v20 = vmul.f32 %v8674_v33, %v11190_v24  ;;  %v1105_v51 = vpop.f32.mrb[35].mxu0  ;;  %v10643_v5 = vld [vmem:[%s12773_s8 + $0x90] sm:$0xff]   ;;  %v10638_v6 = vld [vmem:[%s12774_s9 + $0x18] sm:$0xff]  }
 0x805   :  { %vm1165_vm8 = vcmp.gt.f32.partialorder %v1149_v10, 0.0  ;;  %v1181_v54 = vmul.f32 0.01, %v1149_v10  ;;  %v1128_v56 = vmul.f32 %v1105_v51, %v11194_v27  ;;  %v10640_v8 = vld [vmem:[%s12774_s9 + $0x48] sm:$0xff]   ;;  %v10642_v33 = vld [vmem:[%s12774_s9 + $0x58] sm:$0xff]   ;;  %v10645_v51 = vld [vmem:[%s12774_s9 + $0x60] sm:$0xff]  }
 0x806   :  { %v1198_v41 = vsel %vm1166_vm7, %v1150_v7, %v1182_v14  ;;  %v1152_v18 = vadd.f32 %v11255_v60, %v1129_v20  ;;  %8685 = vmatprep.subr.bf16.mxu0 %v11315_v17  ;;  %8705 = vmatprep.subr.bf16.mxu1 %v11315_v17  ;;  %v10639_v7 = vld [vmem:[%s12774_s9 + $0x40] sm:$0xff]  }
 0x807   :  { %v1197_v9 = vsel %vm1165_vm8, %v1149_v10, %v1181_v54  ;;  %v1151_v38 = vadd.f32 %v11255_v60, %v1128_v56  ;;  %8686 = vmatpush3.bf16.msra.mxu0 %v11315_v17  ;;  %8706 = vmatpush3.bf16.msra.mxu1 %v11315_v17  ;;  %v10641_v10 = vld [vmem:[%s12774_s9 + $0x50] sm:$0xff]  }
 0x808   :  { %v11325_v24 = vpack.c.bf16 %v1198_v41, %v1197_v9  ;;  %vm1168_vm9 = vcmp.gt.f32.partialorder %v1152_v18, 0.0  ;;  %v1184_v21 = vmul.f32 0.01, %v1152_v18  ;;  %v10646_v9 = vld [vmem:[%s12774_s9 + $0x68] sm:$0xff]  }
 0x809   :  { %vm1167_vm10 = vcmp.gt.f32.partialorder %v1151_v38, 0.0  ;;  %v1183_v27 = vmul.f32 0.01, %v1151_v38 }
 0x80a   :  { %v1200_v15 = vsel %vm1168_vm9, %v1152_v18, %v1184_v21  ;;  %8687 = vmatprep.subr.bf16.mxu0 %v11325_v24  ;;  %8707 = vmatprep.subr.bf16.mxu1 %v11325_v24  ;;  %v10647_v21 = vld [vmem:[%s12774_s9 + $0x70] sm:$0xff]  }
 0x80b   :  { %v1199_v16 = vsel %vm1167_vm10, %v1151_v38, %v1183_v27  ;;  %8688 = vmatpush3.bf16.msra.mxu0 %v11325_v24  ;;  %8708 = vmatpush3.bf16.msra.mxu1 %v11325_v24  ;;  %v10644_v38 = vld [vmem:[%s12773_s8 + $0x98] sm:$0xff]   ;;  %v10649_v27 = vld [vmem:[%s12773_s8 + $0xa0] sm:$0xff]  }
 0x80c   :  { %v11331_v60 = vpack.c.bf16 %v1200_v15, %v1199_v16  ;;  %v10648_v15 = vld [vmem:[%s12774_s9 + $0x78] sm:$0xff]   ;;  %v10651_v16 = vld [vmem:[%s12774_s9 + $0x80] sm:$0xff]  }
 0x80e   :  { %8689 = vmatprep.subr.bf16.mxu0 %v11331_v60  ;;  %8709 = vmatprep.subr.bf16.mxu1 %v11331_v60 }
 0x80f   :  { %8690 = vmatpush3.bf16.msra.mxu0 %v11331_v60  ;;  %8710 = vmatpush3.bf16.msra.mxu1 %v11331_v60 }
 0x810   :  { %8739 = vmatprep.subr.bf16.mxu1 %v11265_v31  ;;  %8715 = vmatprep.subr.bf16.mxu0 %v10629_v28 }
 0x812   :  { %8712 = vmatmul.mubr.bf16.vlgmr.msra.gmra.mrb[24].mxu1 %v10614_v39  ;;  %8692 = vmatmul.mubr.bf16.vlgmr.msra.gmra.mrb[36].mxu0 %v10616_v19 }
 0x813   :  { %8740 = vmatpush3.bf16.msra.mxu1 %v11265_v31  ;;  %8755 = vmatprep.mubr.bf16.mxu1 %v10617_v29 }
 0x814   :  { %8741 = vmatprep.subr.bf16.mxu1 %v11275_v26  ;;  %8716 = vmatpush3.bf16.msra.mxu0 %v10629_v28  ;;  %v10650_v28 = vld [vmem:[%s12773_s8 + $0xa8] sm:$0xff]  }
 0x815   :  { %8717 = vmatprep.subr.bf16.mxu0 %v10630_v44 }
 0x817   :  { %8742 = vmatpush3.bf16.msra.mxu1 %v11275_v26 }
 0x818   :  { %8743 = vmatprep.subr.bf16.mxu1 %v11285_v36  ;;  %8718 = vmatpush3.bf16.msra.mxu0 %v10630_v44  ;;  %v10653_v44 = vld [vmem:[%s12774_s9 + $0x90] sm:$0xff]  }
 0x819   :  { %8719 = vmatprep.subr.bf16.mxu0 %v10631_v25 }
 0x81b   :  { %8744 = vmatpush3.bf16.msra.mxu1 %v11285_v36 }
 0x81c   :  { %8745 = vmatprep.subr.bf16.mxu1 %v11295_v50  ;;  %8720 = vmatpush3.bf16.msra.mxu0 %v10631_v25  ;;  %v10655_v25 = vld [vmem:[%s12773_s8 + $0xb0] sm:$0xff]  }
 0x81d   :  { %8721 = vmatprep.subr.bf16.mxu0 %v10632_v30 }
 0x81f   :  { %8746 = vmatpush3.bf16.msra.mxu1 %v11295_v50 }
 0x820   :  { %8747 = vmatprep.subr.bf16.mxu1 %v11305_v58  ;;  %8722 = vmatpush3.bf16.msra.mxu0 %v10632_v30  ;;  %v10654_v30 = vld [vmem:[%s12774_s9 + $0x98] sm:$0xff]  }
 0x821   :  { %8727 = vmatprep.subr.bf16.mxu0 %v11418_v43 }
 0x823   :  { %8748 = vmatpush3.bf16.msra.mxu1 %v11305_v58 }
 0x824   :  { %8749 = vmatprep.subr.bf16.mxu1 %v11315_v17 }
 0x827   :  { %8750 = vmatpush3.bf16.msra.mxu1 %v11315_v17 }
 0x828   :  { %8751 = vmatprep.subr.bf16.mxu1 %v11325_v24 }
 0x82b   :  { %8752 = vmatpush3.bf16.msra.mxu1 %v11325_v24 }
 0x82c   :  { %8753 = vmatprep.subr.bf16.mxu1 %v11331_v60 }
 0x82f   :  { %8754 = vmatpush3.bf16.msra.mxu1 %v11331_v60 }
 0x830   :  { %8771 = vmatprep.subr.bf16.mxu1 %v11265_v31 }
 0x832   :  { %8756 = vmatmul.mubr.bf16.vlgmr.msra.gmra.mrb[28].mxu1 %v10618_v37 }
 0x833   :  { %8772 = vmatpush3.bf16.msra.mxu1 %v11265_v31  ;;  %8787 = vmatprep.mubr.bf16.mxu1 %v10619_v22 }
 0x834   :  { %8773 = vmatprep.subr.bf16.mxu1 %v11275_v26 }
 0x837   :  { %8774 = vmatpush3.bf16.msra.mxu1 %v11275_v26 }
 0x838   :  { %8775 = vmatprep.subr.bf16.mxu1 %v11285_v36 }
 0x83b   :  { %8776 = vmatpush3.bf16.msra.mxu1 %v11285_v36 }
 0x83c   :  { %8777 = vmatprep.subr.bf16.mxu1 %v11295_v50 }
 0x83f   :  { %8778 = vmatpush3.bf16.msra.mxu1 %v11295_v50 }
 0x840   :  { %8779 = vmatprep.subr.bf16.mxu1 %v11305_v58 }
 0x843   :  { %8780 = vmatpush3.bf16.msra.mxu1 %v11305_v58 }
 0x844   :  { %8781 = vmatprep.subr.bf16.mxu1 %v11315_v17 }
 0x847   :  { %8782 = vmatpush3.bf16.msra.mxu1 %v11315_v17 }
 0x848   :  { %8783 = vmatprep.subr.bf16.mxu1 %v11325_v24 }
 0x84b   :  { %8784 = vmatpush3.bf16.msra.mxu1 %v11325_v24 }
 0x84c   :  { %8785 = vmatprep.subr.bf16.mxu1 %v11331_v60 }
 0x84f   :  { %8786 = vmatpush3.bf16.msra.mxu1 %v11331_v60 }
 0x850   :  { %8803 = vmatprep.subr.bf16.mxu1 %v11265_v31 }
 0x852   :  { %8788 = vmatmul.mubr.bf16.vlgmr.msra.gmra.mrb[32].mxu1 %v10620_v23 }
 0x853   :  { %8804 = vmatpush3.bf16.msra.mxu1 %v11265_v31  ;;  %8819 = vmatprep.mubr.bf16.mxu1 %v10621_v47  ;;  %v10652_v47 = vld [vmem:[%s12774_s9 + $0x88] sm:$0xff]  }
 0x854   :  { %8805 = vmatprep.subr.bf16.mxu1 %v11275_v26 }
 0x857   :  { %8806 = vmatpush3.bf16.msra.mxu1 %v11275_v26 }
 0x858   :  { %8807 = vmatprep.subr.bf16.mxu1 %v11285_v36 }
 0x85b   :  { %8808 = vmatpush3.bf16.msra.mxu1 %v11285_v36 }
 0x85c   :  { %8809 = vmatprep.subr.bf16.mxu1 %v11295_v50 }
 0x85f   :  { %8810 = vmatpush3.bf16.msra.mxu1 %v11295_v50 }
 0x860   :  { %8811 = vmatprep.subr.bf16.mxu1 %v11305_v58 }
 0x863   :  { %8812 = vmatpush3.bf16.msra.mxu1 %v11305_v58 }
 0x864   :  { %8813 = vmatprep.subr.bf16.mxu1 %v11315_v17 }
 0x867   :  { %8814 = vmatpush3.bf16.msra.mxu1 %v11315_v17 }
 0x868   :  { %8815 = vmatprep.subr.bf16.mxu1 %v11325_v24 }
 0x86b   :  { %8816 = vmatpush3.bf16.msra.mxu1 %v11325_v24 }
 0x86c   :  { %8817 = vmatprep.subr.bf16.mxu1 %v11331_v60 }
 0x86f   :  { %8818 = vmatpush3.bf16.msra.mxu1 %v11331_v60 }
 0x870   :  { %8835 = vmatprep.subr.bf16.mxu1 %v11265_v31 }
 0x872   :  { %8820 = vmatmul.mubr.bf16.vlgmr.msra.gmra.mrb[36].mxu1 %v10622_v42 }
 0x873   :  { %8836 = vmatpush3.bf16.msra.mxu1 %v11265_v31  ;;  %8851 = vmatprep.mubr.bf16.mxu1 %v10623_v45 }
 0x874   :  { %8837 = vmatprep.subr.bf16.mxu1 %v11275_v26 }
 0x877   :  { %8838 = vmatpush3.bf16.msra.mxu1 %v11275_v26 }
 0x878   :  { %8839 = vmatprep.subr.bf16.mxu1 %v11285_v36 }
 0x87b   :  { %8840 = vmatpush3.bf16.msra.mxu1 %v11285_v36 }
 0x87c   :  { %8841 = vmatprep.subr.bf16.mxu1 %v11295_v50 }
 0x87f   :  { %8842 = vmatpush3.bf16.msra.mxu1 %v11295_v50 }
 0x880   :  { %8843 = vmatprep.subr.bf16.mxu1 %v11305_v58 }
 0x883   :  { %8844 = vmatpush3.bf16.msra.mxu1 %v11305_v58 }
 0x884   :  { %8845 = vmatprep.subr.bf16.mxu1 %v11315_v17 }
 0x887   :  { %8846 = vmatpush3.bf16.msra.mxu1 %v11315_v17 }
 0x888   :  { %8847 = vmatprep.subr.bf16.mxu1 %v11325_v24 }
 0x88b   :  { %8848 = vmatpush3.bf16.msra.mxu1 %v11325_v24 }
 0x88c   :  { %8849 = vmatprep.subr.bf16.mxu1 %v11331_v60 }
 0x88f   :  { %8850 = vmatpush3.bf16.msra.mxu1 %v11331_v60 }
 0x890   :  { %8867 = vmatprep.subr.bf16.mxu1 %v11265_v31 }
 0x892   :  { %8852 = vmatmul.mubr.bf16.vlgmr.msra.gmra.mrb[40].mxu1 %v10624_v34 }
 0x893   :  { %8868 = vmatpush3.bf16.msra.mxu1 %v11265_v31  ;;  %8883 = vmatprep.mubr.bf16.mxu1 %v10625_v35 }
 0x894   :  { %8869 = vmatprep.subr.bf16.mxu1 %v11275_v26 }
 0x897   :  { %8870 = vmatpush3.bf16.msra.mxu1 %v11275_v26 }
 0x898   :  { %8871 = vmatprep.subr.bf16.mxu1 %v11285_v36 }
 0x89b   :  { %8872 = vmatpush3.bf16.msra.mxu1 %v11285_v36 }
 0x89c   :  { %8873 = vmatprep.subr.bf16.mxu1 %v11295_v50 }
 0x89f   :  { %8874 = vmatpush3.bf16.msra.mxu1 %v11295_v50 }
 0x8a0   :  { %8875 = vmatprep.subr.bf16.mxu1 %v11305_v58 }
 0x8a3   :  { %8876 = vmatpush3.bf16.msra.mxu1 %v11305_v58 }
 0x8a4   :  { %8877 = vmatprep.subr.bf16.mxu1 %v11315_v17 }
 0x8a7   :  { %8878 = vmatpush3.bf16.msra.mxu1 %v11315_v17 }
 0x8a8   :  { %8879 = vmatprep.subr.bf16.mxu1 %v11325_v24 }
 0x8ab   :  { %8880 = vmatpush3.bf16.msra.mxu1 %v11325_v24 }
 0x8ac   :  { %8881 = vmatprep.subr.bf16.mxu1 %v11331_v60 }
 0x8af   :  { %8882 = vmatpush3.bf16.msra.mxu1 %v11331_v60 }
 0x8b0   :  { %8899 = vmatprep.subr.bf16.mxu1 %v11265_v31 }
 0x8b2   :  { %8884 = vmatmul.mubr.bf16.vlgmr.msra.gmra.mrb[44].mxu1 %v10626_v40 }
 0x8b3   :  { %8900 = vmatpush3.bf16.msra.mxu1 %v11265_v31  ;;  %8915 = vmatprep.mubr.bf16.mxu1 %v10627_v32 }
 0x8b4   :  { %8901 = vmatprep.subr.bf16.mxu1 %v11275_v26 }
 0x8b7   :  { %8902 = vmatpush3.bf16.msra.mxu1 %v11275_v26 }
 0x8b8   :  { %8903 = vmatprep.subr.bf16.mxu1 %v11285_v36 }
 0x8bb   :  { %8904 = vmatpush3.bf16.msra.mxu1 %v11285_v36 }
 0x8bc   :  { %8905 = vmatprep.subr.bf16.mxu1 %v11295_v50 }
 0x8bf   :  { %8906 = vmatpush3.bf16.msra.mxu1 %v11295_v50 }
 0x8c0   :  { %8907 = vmatprep.subr.bf16.mxu1 %v11305_v58 }
 0x8c3   :  { %8908 = vmatpush3.bf16.msra.mxu1 %v11305_v58 }
 0x8c4   :  { %8909 = vmatprep.subr.bf16.mxu1 %v11315_v17 }
 0x8c7   :  { %8910 = vmatpush3.bf16.msra.mxu1 %v11315_v17 }
 0x8c8   :  { %8911 = vmatprep.subr.bf16.mxu1 %v11325_v24 }
 0x8cb   :  { %8912 = vmatpush3.bf16.msra.mxu1 %v11325_v24 }
 0x8cc   :  { %8913 = vmatprep.subr.bf16.mxu1 %v11331_v60 }
 0x8cf   :  { %8914 = vmatpush3.bf16.msra.mxu1 %v11331_v60 }
 0x8d0   :  { %8931 = vmatprep.subr.bf16.mxu1 %v11265_v31 }
 0x8d2   :  { %8916 = vmatmul.mubr.bf16.vlgmr.msra.gmra.mrb[48].mxu1 %v10628_v49  ;;  %v10658_v49 = vld [vmem:[%s12774_s9 + $0xa8] sm:$0xff]  }
 0x8d3   :  { %8932 = vmatpush3.bf16.msra.mxu1 %v11265_v31  ;;  %8947 = vmatprep.mubr.bf16.mxu1 %v10635_v52  ;;  %v10656_v52 = vld [vmem:[%s12773_s8 + $0xb8] sm:$0xff]  }
 0x8d4   :  { %8933 = vmatprep.subr.bf16.mxu1 %v11275_v26 }
 0x8d7   :  { %8934 = vmatpush3.bf16.msra.mxu1 %v11275_v26 }
 0x8d8   :  { %8935 = vmatprep.subr.bf16.mxu1 %v11285_v36 }
 0x8db   :  { %8936 = vmatpush3.bf16.msra.mxu1 %v11285_v36 }
 0x8dc   :  { %8937 = vmatprep.subr.bf16.mxu1 %v11295_v50 }
 0x8df   :  { %8938 = vmatpush3.bf16.msra.mxu1 %v11295_v50 }
 0x8e0   :  { %8939 = vmatprep.subr.bf16.mxu1 %v11305_v58 }
 0x8e3   :  { %8940 = vmatpush3.bf16.msra.mxu1 %v11305_v58 }
 0x8e4   :  { %8941 = vmatprep.subr.bf16.mxu1 %v11315_v17 }
 0x8e5   :  { %v8713_v46 = vpop.f32.mrb[24].mxu1  ;;  %v8693_v48 = vpop.f32.mrb[36].mxu0 }
 0x8e6   :  { %v1335_v53 = vpop.f32.mrb[25].mxu1  ;;  %v1259_v55 = vpop.f32.mrb[37].mxu0 }
 0x8e7   :  { %v8714_v57 = vpop.f32.mrb[26].mxu1  ;;  %8942 = vmatpush3.bf16.msra.mxu1 %v11315_v17  ;;  %v8694_v59 = vpop.f32.mrb[38].mxu0 }
 0x8e8   :  { %v1359_v61 = vpack.c.bf16 %v8714_v57, %v8713_v46  ;;  %v1338_v62 = vpop.f32.mrb[27].mxu1  ;;  %8943 = vmatprep.subr.bf16.mxu1 %v11325_v24  ;;  %v1283_v63 = vpack.c.bf16 %v8694_v59, %v8693_v48  ;;  %v1262_v0 = vpop.f32.mrb[39].mxu0  ;;  %v10659_v46 = vld [vmem:[%s12774_s9 + $0xb0] sm:$0xff]   ;;  %v10661_v48 = vld [vmem:[%s12773_s8 + $0xc0] sm:$0xff]  }
 0x8e9   :  { %v1358_v1 = vpack.c.bf16 %v1338_v62, %v1335_v53  ;;  %v1282_v2 = vpack.c.bf16 %v1262_v0, %v1259_v55  ;;  %v10660_v53 = vld [vmem:[%s12774_s9 + $0xb8] sm:$0xff]   ;;  %v10663_v55 = vld [vmem:[%s12774_s9 + $0xc0] sm:$0xff]  }
 0x8eb   :  { %8723 = vmatprep.mubr.msk.bf16.mxu0 %vm359_vm2, %v1358_v1  ;;  %8944 = vmatpush3.bf16.msra.mxu1 %v11325_v24  ;;  %v10664_v1 = vld [vmem:[%s12774_s9 + $0xc8] sm:$0xff]  }
 0x8ec   :  { %8724 = vmatmul.mubr.msk.bf16.vlgmr.msra.gmra.mrb[40].mxu0 %vm359_vm2, %v1359_v61  ;;  %8945 = vmatprep.subr.bf16.mxu1 %v11331_v60 }
 0x8ed   :  { %8728 = vmatpush3.bf16.msra.mxu0 %v11418_v43  ;;  %8735 = vmatprep.mubr.msk.bf16.mxu0 %vm359_vm2, %v1282_v2  ;;  %v10657_v43 = vld [vmem:[%s12774_s9 + $0xa0] sm:$0xff]   ;;  %v10662_v2 = vld [vmem:[%s12773_s8 + $0xc8] sm:$0xff]  }
 0x8ee   :  { %8729 = vmatprep.subr.bf16.mxu0 %v10634_v13 }
 0x8ef   :  { %8946 = vmatpush3.bf16.msra.mxu1 %v11331_v60 }
 0x8f0   :  { %8963 = vmatprep.subr.bf16.mxu1 %v11265_v31 }
 0x8f1   :  { %8730 = vmatpush3.bf16.msra.mxu0 %v10634_v13  ;;  %v10665_v13 = vld [vmem:[%s12774_s9 + $0xd0] sm:$0xff]  }
 0x8f2   :  { %8948 = vmatmul.mubr.bf16.vlgmr.msra.gmra.mrb[52].mxu1 %v10636_v3  ;;  %8731 = vmatprep.subr.bf16.mxu0 %v10637_v4  ;;  %v10667_v3 = vld [vmem:[%s12773_s8 + $0xd0] sm:$0xff]  }
 0x8f3   :  { %8964 = vmatpush3.bf16.msra.mxu1 %v11265_v31  ;;  %8979 = vmatprep.mubr.bf16.mxu1 %v10643_v5  ;;  %v10669_v5 = vld [vmem:[%s12774_s9 + $0xe0] sm:$0xff]  }
 0x8f4   :  { %8965 = vmatprep.subr.bf16.mxu1 %v11275_v26 }
 0x8f5   :  { %8732 = vmatpush3.bf16.msra.mxu0 %v10637_v4  ;;  %v10666_v4 = vld [vmem:[%s12774_s9 + $0xd8] sm:$0xff]  }
 0x8f6   :  { %8733 = vmatprep.subr.bf16.mxu0 %v10638_v6 }
 0x8f7   :  { %8966 = vmatpush3.bf16.msra.mxu1 %v11275_v26 }
 0x8f8   :  { %8967 = vmatprep.subr.bf16.mxu1 %v11285_v36 }
 0x8f9   :  { %8734 = vmatpush3.bf16.msra.mxu0 %v10638_v6 }
 0x8fa   :  { %8759 = vmatprep.subr.bf16.mxu0 %v10639_v7 }
 0x8fb   :  { %8968 = vmatpush3.bf16.msra.mxu1 %v11285_v36 }
 0x8fc   :  { %8969 = vmatprep.subr.bf16.mxu1 %v11295_v50  ;;  %8736 = vmatmul.mubr.msk.bf16.vlgmr.msra.gmra.mrb[40].mxu0 %vm359_vm2, %v1283_v63 }
 0x8fd   :  { %8760 = vmatpush3.bf16.msra.mxu0 %v10639_v7 }
 0x8fe   :  { %8761 = vmatprep.subr.bf16.mxu0 %v10640_v8 }
 0x8ff   :  { %8970 = vmatpush3.bf16.msra.mxu1 %v11295_v50 }
 0x900   :  { %8971 = vmatprep.subr.bf16.mxu1 %v11305_v58 }
 0x901   :  { %8762 = vmatpush3.bf16.msra.mxu0 %v10640_v8 }
 0x902   :  { %8763 = vmatprep.subr.bf16.mxu0 %v10641_v10 }
 0x903   :  { %8972 = vmatpush3.bf16.msra.mxu1 %v11305_v58 }
 0x904   :  { %8973 = vmatprep.subr.bf16.mxu1 %v11315_v17 }
 0x905   :  { %v8757_v14 = vpop.f32.mrb[28].mxu1  ;;  %8764 = vmatpush3.bf16.msra.mxu0 %v10641_v10 }
 0x906   :  { %v1569_v20 = vpop.f32.mrb[29].mxu1  ;;  %8765 = vmatprep.subr.bf16.mxu0 %v10642_v33 }
 0x907   :  { %v8758_v54 = vpop.f32.mrb[30].mxu1  ;;  %8974 = vmatpush3.bf16.msra.mxu1 %v11315_v17 }
 0x908   :  { %v1593_v56 = vpack.c.bf16 %v8758_v54, %v8757_v14  ;;  %v1572_v41 = vpop.f32.mrb[31].mxu1  ;;  %8975 = vmatprep.subr.bf16.mxu1 %v11325_v24  ;;  %v10671_v54 = vld [vmem:[%s12774_s9 + $0xf0] sm:$0xff]  }
 0x909   :  { %v1592_v18 = vpack.c.bf16 %v1572_v41, %v1569_v20  ;;  %8766 = vmatpush3.bf16.msra.mxu0 %v10642_v33  ;;  %v10670_v20 = vld [vmem:[%s12774_s9 + $0xe8] sm:$0xff]   ;;  %v10672_v41 = vld [vmem:[%s12774_s9 + $0xf8] sm:$0xff]  }
 0x90a   :  { %8791 = vmatprep.subr.bf16.mxu0 %v10645_v51 }
 0x90b   :  { %8767 = vmatprep.mubr.msk.bf16.mxu0 %vm359_vm2, %v1592_v18  ;;  %8976 = vmatpush3.bf16.msra.mxu1 %v11325_v24  ;;  %v10675_v18 = vld [vmem:[%s12774_s9 + $0x100] sm:$0xff]  }
 0x90c   :  { %8768 = vmatmul.mubr.msk.bf16.vlgmr.msra.gmra.mrb[40].mxu0 %vm359_vm2, %v1593_v56  ;;  %8977 = vmatprep.subr.bf16.mxu1 %v11331_v60  ;;  %v10673_v56 = vld [vmem:[%s12773_s8 + $0xe0] sm:$0xff]  }
 0x90d   :  { %8792 = vmatpush3.bf16.msra.mxu0 %v10645_v51  ;;  %v10668_v51 = vld [vmem:[%s12773_s8 + $0xd8] sm:$0xff]  }
 0x90e   :  { %8793 = vmatprep.subr.bf16.mxu0 %v10646_v9 }
 0x90f   :  { %8978 = vmatpush3.bf16.msra.mxu1 %v11331_v60 }
 0x910   :  { %8995 = vmatprep.subr.bf16.mxu1 %v11265_v31 }
 0x911   :  { %8794 = vmatpush3.bf16.msra.mxu0 %v10646_v9 }
 0x912   :  { %8980 = vmatmul.mubr.bf16.vlgmr.msra.gmra.mrb[56].mxu1 %v10644_v38  ;;  %8795 = vmatprep.subr.bf16.mxu0 %v10647_v21 }
 0x913   :  { %8996 = vmatpush3.bf16.msra.mxu1 %v11265_v31  ;;  %9011 = vmatprep.mubr.bf16.mxu1 %v10649_v27 }
 0x914   :  { %8997 = vmatprep.subr.bf16.mxu1 %v11275_v26 }
 0x915   :  { %8796 = vmatpush3.bf16.msra.mxu0 %v10647_v21 }
 0x916   :  { %8797 = vmatprep.subr.bf16.mxu0 %v10648_v15 }
 0x917   :  { %8998 = vmatpush3.bf16.msra.mxu1 %v11275_v26 }
 0x918   :  { %8999 = vmatprep.subr.bf16.mxu1 %v11285_v36 }
 0x919   :  { %8798 = vmatpush3.bf16.msra.mxu0 %v10648_v15 }
 0x91a   :  { %8823 = vmatprep.subr.bf16.mxu0 %v10651_v16 }
 0x91b   :  { %9000 = vmatpush3.bf16.msra.mxu1 %v11285_v36 }
 0x91c   :  { %9001 = vmatprep.subr.bf16.mxu1 %v11295_v50 }
 0x91f   :  { %9002 = vmatpush3.bf16.msra.mxu1 %v11295_v50 }
 0x920   :  { %9003 = vmatprep.subr.bf16.mxu1 %v11305_v58 }
 0x923   :  { %9004 = vmatpush3.bf16.msra.mxu1 %v11305_v58 }
 0x924   :  { %9005 = vmatprep.subr.bf16.mxu1 %v11315_v17 }
 0x925   :  { %v8789_v39 = vpop.f32.mrb[32].mxu1 }
 0x926   :  { %v1728_v19 = vpop.f32.mrb[33].mxu1 }
 0x927   :  { %v8790_v29 = vpop.f32.mrb[34].mxu1  ;;  %9006 = vmatpush3.bf16.msra.mxu1 %v11315_v17 }
 0x928   :  { %v1752_v37 = vpack.c.bf16 %v8790_v29, %v8789_v39  ;;  %v1731_v22 = vpop.f32.mrb[35].mxu1  ;;  %9007 = vmatprep.subr.bf16.mxu1 %v11325_v24  ;;  %v10676_v39 = vld [vmem:[%s12774_s9 + $0x108] sm:$0xff]   ;;  %v10677_v29 = vld [vmem:[%s12774_s9 + $0x110] sm:$0xff]  }
 0x929   :  { %v1751_v23 = vpack.c.bf16 %v1731_v22, %v1728_v19  ;;  %v10674_v19 = vld [vmem:[%s12773_s8 + $0xe8] sm:$0xff]   ;;  %v10678_v22 = vld [vmem:[%s12774_s9 + $0x118] sm:$0xff]  }
 0x92b   :  { %8799 = vmatprep.mubr.msk.bf16.mxu0 %vm359_vm2, %v1751_v23  ;;  %9008 = vmatpush3.bf16.msra.mxu1 %v11325_v24  ;;  %v10681_v23 = vld [vmem:[%s12774_s9 + $0x120] sm:$0xff]  }
 0x92c   :  { %8800 = vmatmul.mubr.msk.bf16.vlgmr.msra.gmra.mrb[40].mxu0 %vm359_vm2, %v1752_v37  ;;  %9009 = vmatprep.subr.bf16.mxu1 %v11331_v60  ;;  %v10679_v37 = vld [vmem:[%s12773_s8 + $0xf0] sm:$0xff]  }
 0x92d   :  { %8824 = vmatpush3.bf16.msra.mxu0 %v10651_v16 }
 0x92e   :  { %8825 = vmatprep.subr.bf16.mxu0 %v10652_v47 }
 0x92f   :  { %9010 = vmatpush3.bf16.msra.mxu1 %v11331_v60 }
 0x930   :  { %9027 = vmatprep.subr.bf16.mxu1 %v11265_v31 }
 0x931   :  { %8826 = vmatpush3.bf16.msra.mxu0 %v10652_v47 }
 0x932   :  { %9012 = vmatmul.mubr.bf16.vlgmr.msra.gmra.mrb[60].mxu1 %v10650_v28  ;;  %8827 = vmatprep.subr.bf16.mxu0 %v10653_v44 }
 0x933   :  { %9028 = vmatpush3.bf16.msra.mxu1 %v11265_v31  ;;  %9043 = vmatprep.mubr.bf16.mxu1 %v10655_v25  ;;  %v10685_v25 = vld [vmem:[%s12774_s9 + $0x140] sm:$0xff]  }
 0x934   :  { %9029 = vmatprep.subr.bf16.mxu1 %v11275_v26 }
 0x935   :  { %8828 = vmatpush3.bf16.msra.mxu0 %v10653_v44 }
 0x936   :  { %8829 = vmatprep.subr.bf16.mxu0 %v10654_v30 }
 0x937   :  { %9030 = vmatpush3.bf16.msra.mxu1 %v11275_v26 }
 0x938   :  { %9031 = vmatprep.subr.bf16.mxu1 %v11285_v36 }
 0x939   :  { %8830 = vmatpush3.bf16.msra.mxu0 %v10654_v30 }
 0x93a   :  { %8855 = vmatprep.subr.bf16.mxu0 %v10657_v43 }
 0x93b   :  { %9032 = vmatpush3.bf16.msra.mxu1 %v11285_v36 }
 0x93c   :  { %9033 = vmatprep.subr.bf16.mxu1 %v11295_v50 }
 0x93f   :  { %9034 = vmatpush3.bf16.msra.mxu1 %v11295_v50 }
 0x940   :  { %9035 = vmatprep.subr.bf16.mxu1 %v11305_v58 }
 0x943   :  { %9036 = vmatpush3.bf16.msra.mxu1 %v11305_v58 }
 0x944   :  { %9037 = vmatprep.subr.bf16.mxu1 %v11315_v17 }
 0x945   :  { %v8821_v42 = vpop.f32.mrb[36].mxu1 }
 0x946   :  { %v1887_v45 = vpop.f32.mrb[37].mxu1 }
 0x947   :  { %v8822_v34 = vpop.f32.mrb[38].mxu1  ;;  %9038 = vmatpush3.bf16.msra.mxu1 %v11315_v17 }
 0x948   :  { %v1911_v35 = vpack.c.bf16 %v8822_v34, %v8821_v42  ;;  %v1890_v40 = vpop.f32.mrb[39].mxu1  ;;  %9039 = vmatprep.subr.bf16.mxu1 %v11325_v24 }
 0x949   :  { %v1910_v32 = vpack.c.bf16 %v1890_v40, %v1887_v45  ;;  %v10687_v40 = vld [vmem:[%s12774_s9 + $0x150] sm:$0xff]  }
 0x94b   :  { %8831 = vmatprep.mubr.msk.bf16.mxu0 %vm359_vm2, %v1910_v32  ;;  %9040 = vmatpush3.bf16.msra.mxu1 %v11325_v24  ;;  %v10688_v32 = vld [vmem:[%s12774_s9 + $0x158] sm:$0xff]  }
 0x94c   :  { %8832 = vmatmul.mubr.msk.bf16.vlgmr.msra.gmra.mrb[40].mxu0 %vm359_vm2, %v1911_v35  ;;  %9041 = vmatprep.subr.bf16.mxu1 %v11331_v60  ;;  %v10686_v35 = vld [vmem:[%s12774_s9 + $0x148] sm:$0xff]  }
 0x94d   :  { %8856 = vmatpush3.bf16.msra.mxu0 %v10657_v43 }
 0x94e   :  { %8857 = vmatprep.subr.bf16.mxu0 %v10658_v49 }
 0x94f   :  { %9042 = vmatpush3.bf16.msra.mxu1 %v11331_v60 }
 0x950   :  { %9059 = vmatprep.subr.bf16.mxu1 %v11265_v31 }
 0x951   :  { %8858 = vmatpush3.bf16.msra.mxu0 %v10658_v49  ;;  %v10689_v49 = vld [vmem:[%s12774_s9 + $0x160] sm:$0xff]  }
 0x952   :  { %9044 = vmatmul.mubr.bf16.vlgmr.msra.gmra.mrb[64].mxu1 %v10656_v52  ;;  %8859 = vmatprep.subr.bf16.mxu0 %v10659_v46 }
 0x953   :  { %9060 = vmatpush3.bf16.msra.mxu1 %v11265_v31  ;;  %9075 = vmatprep.mubr.bf16.mxu1 %v10661_v48 }
 0x954   :  { %9061 = vmatprep.subr.bf16.mxu1 %v11275_v26 }
 0x955   :  { %8860 = vmatpush3.bf16.msra.mxu0 %v10659_v46 }
 0x956   :  { %8861 = vmatprep.subr.bf16.mxu0 %v10660_v53 }
 0x957   :  { %9062 = vmatpush3.bf16.msra.mxu1 %v11275_v26 }
 0x958   :  { %9063 = vmatprep.subr.bf16.mxu1 %v11285_v36 }
 0x959   :  { %8862 = vmatpush3.bf16.msra.mxu0 %v10660_v53 }
 0x95a   :  { %8887 = vmatprep.subr.bf16.mxu0 %v10663_v55 }
 0x95b   :  { %9064 = vmatpush3.bf16.msra.mxu1 %v11285_v36 }
 0x95c   :  { %9065 = vmatprep.subr.bf16.mxu1 %v11295_v50 }
 0x95f   :  { %9066 = vmatpush3.bf16.msra.mxu1 %v11295_v50 }
 0x960   :  { %9067 = vmatprep.subr.bf16.mxu1 %v11305_v58 }
 0x963   :  { %9068 = vmatpush3.bf16.msra.mxu1 %v11305_v58 }
 0x964   :  { %9069 = vmatprep.subr.bf16.mxu1 %v11315_v17 }
 0x965   :  { %v8853_v57 = vpop.f32.mrb[40].mxu1 }
 0x966   :  { %v2046_v59 = vpop.f32.mrb[41].mxu1 }
 0x967   :  { %v8854_v61 = vpop.f32.mrb[42].mxu1  ;;  %9070 = vmatpush3.bf16.msra.mxu1 %v11315_v17 }
 0x968   :  { %v2070_v62 = vpack.c.bf16 %v8854_v61, %v8853_v57  ;;  %v2049_v63 = vpop.f32.mrb[43].mxu1  ;;  %9071 = vmatprep.subr.bf16.mxu1 %v11325_v24  ;;  %v10691_v61 = vld [vmem:[%s12774_s9 + $0x170] sm:$0xff]  }
 0x969   :  { %v2069_v0 = vpack.c.bf16 %v2049_v63, %v2046_v59  ;;  %v10690_v59 = vld [vmem:[%s12774_s9 + $0x168] sm:$0xff]   ;;  %v10693_v63 = vld [vmem:[%s12774_s9 + $0x180] sm:$0xff]  }
 0x96b   :  { %8863 = vmatprep.mubr.msk.bf16.mxu0 %vm359_vm2, %v2069_v0  ;;  %9072 = vmatpush3.bf16.msra.mxu1 %v11325_v24 }
 0x96c   :  { %8864 = vmatmul.mubr.msk.bf16.vlgmr.msra.gmra.mrb[40].mxu0 %vm359_vm2, %v2070_v62  ;;  %9073 = vmatprep.subr.bf16.mxu1 %v11331_v60  ;;  %v10692_v62 = vld [vmem:[%s12774_s9 + $0x178] sm:$0xff]  }
 0x96d   :  { %8888 = vmatpush3.bf16.msra.mxu0 %v10663_v55 }
 0x96e   :  { %8889 = vmatprep.subr.bf16.mxu0 %v10664_v1 }
 0x96f   :  { %9074 = vmatpush3.bf16.msra.mxu1 %v11331_v60 }
 0x970   :  { %9091 = vmatprep.subr.bf16.mxu1 %v11265_v31 }
 0x971   :  { %8890 = vmatpush3.bf16.msra.mxu0 %v10664_v1 }
 0x972   :  { %9076 = vmatmul.mubr.bf16.vlgmr.msra.gmra.mrb[68].mxu1 %v10662_v2  ;;  %8891 = vmatprep.subr.bf16.mxu0 %v10665_v13 }
 0x973   :  { %9092 = vmatpush3.bf16.msra.mxu1 %v11265_v31  ;;  %9107 = vmatprep.mubr.bf16.mxu1 %v10667_v3 }
 0x974   :  { %9093 = vmatprep.subr.bf16.mxu1 %v11275_v26 }
 0x975   :  { %8892 = vmatpush3.bf16.msra.mxu0 %v10665_v13 }
 0x976   :  { %8893 = vmatprep.subr.bf16.mxu0 %v10666_v4 }
 0x977   :  { %9094 = vmatpush3.bf16.msra.mxu1 %v11275_v26 }
 0x978   :  { %9095 = vmatprep.subr.bf16.mxu1 %v11285_v36 }
 0x979   :  { %8894 = vmatpush3.bf16.msra.mxu0 %v10666_v4 }
 0x97a   :  { %8919 = vmatprep.subr.bf16.mxu0 %v10669_v5 }
 0x97b   :  { %9096 = vmatpush3.bf16.msra.mxu1 %v11285_v36 }
 0x97c   :  { %9097 = vmatprep.subr.bf16.mxu1 %v11295_v50 }
 0x97f   :  { %9098 = vmatpush3.bf16.msra.mxu1 %v11295_v50 }
 0x980   :  { %9099 = vmatprep.subr.bf16.mxu1 %v11305_v58 }
 0x983   :  { %9100 = vmatpush3.bf16.msra.mxu1 %v11305_v58 }
 0x984   :  { %9101 = vmatprep.subr.bf16.mxu1 %v11315_v17 }
 0x985   :  { %v8885_v6 = vpop.f32.mrb[44].mxu1 }
 0x986   :  { %v2205_v7 = vpop.f32.mrb[45].mxu1 }
 0x987   :  { %v8886_v8 = vpop.f32.mrb[46].mxu1  ;;  %9102 = vmatpush3.bf16.msra.mxu1 %v11315_v17 }
 0x988   :  { %v2229_v10 = vpack.c.bf16 %v8886_v8, %v8885_v6  ;;  %v2208_v33 = vpop.f32.mrb[47].mxu1  ;;  %9103 = vmatprep.subr.bf16.mxu1 %v11325_v24  ;;  %v10695_v6 = vld [vmem:[%s12774_s9 + $0x190] sm:$0xff]   ;;  %v10697_v8 = vld [vmem:[%s12774_s9 + $0x1a0] sm:$0xff]  }
 0x989   :  { %v2228_v14 = vpack.c.bf16 %v2208_v33, %v2205_v7  ;;  %v10696_v7 = vld [vmem:[%s12774_s9 + $0x198] sm:$0xff]  }
 0x98b   :  { %8895 = vmatprep.mubr.msk.bf16.mxu0 %vm359_vm2, %v2228_v14  ;;  %9104 = vmatpush3.bf16.msra.mxu1 %v11325_v24 }
 0x98c   :  { %8896 = vmatmul.mubr.msk.bf16.vlgmr.msra.gmra.mrb[40].mxu0 %vm359_vm2, %v2229_v10  ;;  %9105 = vmatprep.subr.bf16.mxu1 %v11331_v60 }
 0x98d   :  { %8920 = vmatpush3.bf16.msra.mxu0 %v10669_v5  ;;  %v10694_v5 = vld [vmem:[%s12774_s9 + $0x188] sm:$0xff]  }
 0x98e   :  { %8921 = vmatprep.subr.bf16.mxu0 %v10670_v20 }
 0x98f   :  { %9106 = vmatpush3.bf16.msra.mxu1 %v11331_v60 }
 0x990   :  { %9123 = vmatprep.subr.bf16.mxu1 %v11265_v31 }
 0x991   :  { %8922 = vmatpush3.bf16.msra.mxu0 %v10670_v20 }
 0x992   :  { %9108 = vmatmul.mubr.bf16.vlgmr.msra.gmra.mrb[72].mxu1 %v10668_v51  ;;  %8923 = vmatprep.subr.bf16.mxu0 %v10671_v54 }
 0x993   :  { %9124 = vmatpush3.bf16.msra.mxu1 %v11265_v31  ;;  %9139 = vmatprep.mubr.bf16.mxu1 %v10673_v56  ;;  %v10698_v56 = vld [vmem:[%s12774_s9 + $0x1a8] sm:$0xff]  }
 0x994   :  { %9125 = vmatprep.subr.bf16.mxu1 %v11275_v26 }
 0x995   :  { %8924 = vmatpush3.bf16.msra.mxu0 %v10671_v54 }
 0x996   :  { %8925 = vmatprep.subr.bf16.mxu0 %v10672_v41 }
 0x997   :  { %9126 = vmatpush3.bf16.msra.mxu1 %v11275_v26 }
 0x998   :  { %9127 = vmatprep.subr.bf16.mxu1 %v11285_v36 }
 0x999   :  { %8926 = vmatpush3.bf16.msra.mxu0 %v10672_v41  ;;  %v10699_v41 = vld [vmem:[%s12774_s9 + $0x1b0] sm:$0xff]  }
 0x99a   :  { %8951 = vmatprep.subr.bf16.mxu0 %v10675_v18 }
 0x99b   :  { %9128 = vmatpush3.bf16.msra.mxu1 %v11285_v36 }
 0x99c   :  { %9129 = vmatprep.subr.bf16.mxu1 %v11295_v50 }
 0x99f   :  { %9130 = vmatpush3.bf16.msra.mxu1 %v11295_v50 }
 0x9a0   :  { %9131 = vmatprep.subr.bf16.mxu1 %v11305_v58 }
 0x9a3   :  { %9132 = vmatpush3.bf16.msra.mxu1 %v11305_v58 }
 0x9a4   :  { %9133 = vmatprep.subr.bf16.mxu1 %v11315_v17 }
 0x9a5   :  { %v8917_v9 = vpop.f32.mrb[48].mxu1 }
 0x9a6   :  { %v2364_v38 = vpop.f32.mrb[49].mxu1 }
 0x9a7   :  { %v8918_v21 = vpop.f32.mrb[50].mxu1  ;;  %9134 = vmatpush3.bf16.msra.mxu1 %v11315_v17 }
 0x9a8   :  { %v2388_v27 = vpack.c.bf16 %v8918_v21, %v8917_v9  ;;  %v2367_v15 = vpop.f32.mrb[51].mxu1  ;;  %9135 = vmatprep.subr.bf16.mxu1 %v11325_v24  ;;  %v10701_v9 = vld [vmem:[%s12774_s9 + $0x1c0] sm:$0xff]  }
 0x9a9   :  { %v2387_v16 = vpack.c.bf16 %v2367_v15, %v2364_v38 }
 0x9ab   :  { %8927 = vmatprep.mubr.msk.bf16.mxu0 %vm359_vm2, %v2387_v16  ;;  %9136 = vmatpush3.bf16.msra.mxu1 %v11325_v24 }
 0x9ac   :  { %8928 = vmatmul.mubr.msk.bf16.vlgmr.msra.gmra.mrb[40].mxu0 %vm359_vm2, %v2388_v27  ;;  %9137 = vmatprep.subr.bf16.mxu1 %v11331_v60 }
 0x9ad   :  { %8952 = vmatpush3.bf16.msra.mxu0 %v10675_v18  ;;  %v10700_v18 = vld [vmem:[%s12774_s9 + $0x1b8] sm:$0xff]  }
 0x9ae   :  { %8953 = vmatprep.subr.bf16.mxu0 %v10676_v39 }
 0x9af   :  { %9138 = vmatpush3.bf16.msra.mxu1 %v11331_v60 }
 0x9b0   :  { %9155 = vmatprep.subr.bf16.mxu1 %v11265_v31 }
 0x9b1   :  { %8954 = vmatpush3.bf16.msra.mxu0 %v10676_v39 }
 0x9b2   :  { %9140 = vmatmul.mubr.bf16.vlgmr.msra.gmra.mrb[76].mxu1 %v10674_v19  ;;  %8955 = vmatprep.subr.bf16.mxu0 %v10677_v29  ;;  %v10702_v19 = vld [vmem:[%s12774_s9 + $0x1c8] sm:$0xff]  }
 0x9b3   :  { %9156 = vmatpush3.bf16.msra.mxu1 %v11265_v31  ;;  %9171 = vmatprep.mubr.bf16.mxu1 %v10679_v37  ;;  %v10704_v37 = vld [vmem:[%s12774_s9 + $0x1d8] sm:$0xff]  }
 0x9b4   :  { %9157 = vmatprep.subr.bf16.mxu1 %v11275_v26 }
 0x9b5   :  { %8956 = vmatpush3.bf16.msra.mxu0 %v10677_v29  ;;  %v10703_v29 = vld [vmem:[%s12774_s9 + $0x1d0] sm:$0xff]  }
 0x9b6   :  { %8957 = vmatprep.subr.bf16.mxu0 %v10678_v22 }
 0x9b7   :  { %9158 = vmatpush3.bf16.msra.mxu1 %v11275_v26 }
 0x9b8   :  { %9159 = vmatprep.subr.bf16.mxu1 %v11285_v36 }
 0x9b9   :  { %8958 = vmatpush3.bf16.msra.mxu0 %v10678_v22  ;;  %v10705_v22 = vld [vmem:[%s12774_s9 + $0x1e0] sm:$0xff]  }
 0x9ba   :  { %8983 = vmatprep.subr.bf16.mxu0 %v10681_v23 }
 0x9bb   :  { %9160 = vmatpush3.bf16.msra.mxu1 %v11285_v36 }
 0x9bc   :  { %9161 = vmatprep.subr.bf16.mxu1 %v11295_v50 }
 0x9bf   :  { %9162 = vmatpush3.bf16.msra.mxu1 %v11295_v50  ;;  %v10682_v50 = vld [vmem:[%s12774_s9 + $0x128] sm:$0xff]  }
 0x9c0   :  { %9163 = vmatprep.subr.bf16.mxu1 %v11305_v58 }
 0x9c3   :  { %9164 = vmatpush3.bf16.msra.mxu1 %v11305_v58  ;;  %v10680_v58 = vld [vmem:[%s12773_s8 + $0xf8] sm:$0xff]  }
 0x9c4   :  { %9165 = vmatprep.subr.bf16.mxu1 %v11315_v17 }
 0x9c5   :  { %v8949_v31 = vpop.f32.mrb[52].mxu1 }
 0x9c6   :  { %v2523_v47 = vpop.f32.mrb[53].mxu1 }
 0x9c7   :  { %v8950_v28 = vpop.f32.mrb[54].mxu1  ;;  %9166 = vmatpush3.bf16.msra.mxu1 %v11315_v17  ;;  %v10683_v17 = vld [vmem:[%s12774_s9 + $0x130] sm:$0xff]  }
 0x9c8   :  { %v2547_v26 = vpack.c.bf16 %v8950_v28, %v8949_v31  ;;  %v2526_v44 = vpop.f32.mrb[55].mxu1  ;;  %9167 = vmatprep.subr.bf16.mxu1 %v11325_v24 }
 0x9c9   :  { %v2546_v36 = vpack.c.bf16 %v2526_v44, %v2523_v47 }
 0x9cb   :  { %8959 = vmatprep.mubr.msk.bf16.mxu0 %vm359_vm2, %v2546_v36  ;;  %9168 = vmatpush3.bf16.msra.mxu1 %v11325_v24  ;;  %v10684_v24 = vld [vmem:[%s12774_s9 + $0x138] sm:$0xff]   ;;  %v10706_v36 = vld [vmem:[%s12774_s9 + $0x1e8] sm:$0xff]  }
 0x9cc   :  { %8960 = vmatmul.mubr.msk.bf16.vlgmr.msra.gmra.mrb[40].mxu0 %vm359_vm2, %v2547_v26  ;;  %9169 = vmatprep.subr.bf16.mxu1 %v11331_v60 }
 0x9cd   :  { %8984 = vmatpush3.bf16.msra.mxu0 %v10681_v23 }
 0x9ce   :  { %8985 = vmatprep.subr.bf16.mxu0 %v10682_v50 }
 0x9cf   :  { %9170 = vmatpush3.bf16.msra.mxu1 %v11331_v60 }
 0x9d0   :  { %10071 = vmatprep.subr.bf16.mxu1 %v10737_v11 }
 0x9d1   :  { %8986 = vmatpush3.bf16.msra.mxu0 %v10682_v50  ;;  %v10707_v50 = vld [vmem:[%s12774_s9 + $0x1f0] sm:$0xff]  }
 0x9d2   :  { %9172 = vmatmul.mubr.bf16.vlgmr.msra.gmra.mrb[80].mxu1 %v10680_v58  ;;  %8987 = vmatprep.subr.bf16.mxu0 %v10683_v17  ;;  %v10708_v58 = vld [vmem:[%s12774_s9 + $0x1f8] sm:$0xff]   ;;  %s6805_s9 = sshll.u32 %s10740_s0, 4  ;;  %s6806_s9 = int_to_ptr.vmem [resolvable:$true] %s6805_s9 }
 0x9d3   :  { %9230 = vmatprep.mubr.msk.f32.mxu1 %vm10738_vm1, %v10739_v12  ;;  %s10713_s19 = scalar_lea.vmem %s6806_s9, 16  ;;  %s10717_s1 = scalar_lea.vmem %s6806_s9, 32 }
 0x9d4   :  { %p10714_p0 = scmp.ne.s32.totalorder %s6806_s9, %s10713_s19  ;;  %p10718_p1 = scmp.lt.s32.totalorder %s6806_s9, %s6806_s9 }
 0x9d5   :  { %8988 = vmatpush3.bf16.msra.mxu0 %v10683_v17  ;;  %p10719_p2 = scmp.lt.s32.totalorder %s10717_s1, %s10713_s19 }
 0x9d6   :  { %8989 = vmatprep.subr.bf16.mxu0 %v10684_v24 }
 0x9d7   :  { %p10720_p3 = por %p10719_p2, %p10718_p1 }
 0x9d9   :  { %8990 = vmatpush3.bf16.msra.mxu0 %v10684_v24  ;;  %p10721_p4 = pnand %p10720_p3, %p10714_p0 }
 0x9da   :  { %9015 = vmatprep.subr.bf16.mxu0 %v10685_v25 }
 0x9e5   :  { %v8981_v60 = vpop.f32.mrb[56].mxu1 }
 0x9e6   :  { %v2682_v30 = vpop.f32.mrb[57].mxu1 }
 0x9e7   :  { %v8982_v43 = vpop.f32.mrb[58].mxu1 }
 0x9e8   :  { %v2706_v42 = vpack.c.bf16 %v8982_v43, %v8981_v60  ;;  %v2685_v45 = vpop.f32.mrb[59].mxu1 }
 0x9e9   :  { %v2705_v34 = vpack.c.bf16 %v2685_v45, %v2682_v30  ;;  %v3750_v45 = vld [vmem:[%s12777_s12 + $0x8] sm:$0xff] }
 0x9eb   :  { %8991 = vmatprep.mubr.msk.bf16.mxu0 %vm359_vm2, %v2705_v34  ;;  %v3751_v34 = vld [vmem:[%s12777_s12 + $0x10] sm:$0xff] }
 0x9ec   :  { %8992 = vmatmul.mubr.msk.bf16.vlgmr.msra.gmra.mrb[40].mxu0 %vm359_vm2, %v2706_v42  ;;  %v3749_v42 = vld [vmem:[%s12777_s12] sm:$0xff] }
 0x9ed   :  { %9016 = vmatpush3.bf16.msra.mxu0 %v10685_v25 }
 0x9ee   :  { %9017 = vmatprep.subr.bf16.mxu0 %v10686_v35 }
 0x9f1   :  { %9018 = vmatpush3.bf16.msra.mxu0 %v10686_v35  ;;  %v10072_v35 = vpack.c.bf16 %v3750_v45, %v3749_v42  ;;  %v7071_v42 = vld [vmem:[%s12775_s10] ss:$0 sm:$0xff] }
 0x9f2   :  { %9019 = vmatprep.subr.bf16.mxu0 %v10687_v40 }
 0x9f3   :  { %10073 = vmatpush3.bf16.msra.mxu1 %v10072_v35 }
 0x9f4   :  { %10074 = vmatprep.subr.bf16.mxu1 %v10737_v11 }
 0x9f5   :  { %9020 = vmatpush3.bf16.msra.mxu0 %v10687_v40  ;;  %v3752_v40 = vld [vmem:[%s12777_s12 + $0x18] sm:$0xff] }
 0x9f6   :  { %9021 = vmatprep.subr.bf16.mxu0 %v10688_v32 }
 0x9f9   :  { %9022 = vmatpush3.bf16.msra.mxu0 %v10688_v32  ;;  %v10075_v32 = vpack.c.bf16 %v3752_v40, %v3751_v34 }
 0x9fa   :  { %9047 = vmatprep.subr.bf16.mxu0 %v10689_v49 }
 0x9fb   :  { %10076 = vmatpush3.bf16.msra.mxu1 %v10075_v32 }
 0x9fc   :  { %10077 = vmatprep.subr.bf16.mxu1 %v10737_v11 }
 0xa05   :  { %v9013_v52 = vpop.f32.mrb[60].mxu1 }
 0xa06   :  { %v2841_v46 = vpop.f32.mrb[61].mxu1 }
 0xa07   :  { %v9014_v48 = vpop.f32.mrb[62].mxu1 }
 0xa08   :  { %v2865_v53 = vpack.c.bf16 %v9014_v48, %v9013_v52  ;;  %v2844_v55 = vpop.f32.mrb[63].mxu1  ;;  %v3754_v52 = vld [vmem:[%s12777_s12 + $0x28] sm:$0xff]  ;;  %v3755_v48 = vld [vmem:[%s12777_s12 + $0x30] sm:$0xff] }
 0xa09   :  { %v2864_v57 = vpack.c.bf16 %v2844_v55, %v2841_v46 }
 0xa0b   :  { %9023 = vmatprep.mubr.msk.bf16.mxu0 %vm359_vm2, %v2864_v57  ;;  %v3757_v57 = vld [vmem:[%s12777_s12 + $0x40] sm:$0xff] }
 0xa0c   :  { %9024 = vmatmul.mubr.msk.bf16.vlgmr.msra.gmra.mrb[40].mxu0 %vm359_vm2, %v2865_v53  ;;  %v3756_v53 = vld [vmem:[%s12777_s12 + $0x38] sm:$0xff] }
 0xa0d   :  { %9048 = vmatpush3.bf16.msra.mxu0 %v10689_v49  ;;  %v3753_v49 = vld [vmem:[%s12777_s12 + $0x20] sm:$0xff]  ;;  %v10081_v55 = vpack.c.bf16 %v3756_v53, %v3755_v48 }
 0xa0e   :  { %9049 = vmatprep.subr.bf16.mxu0 %v10690_v59  ;;  %v10078_v46 = vpack.c.bf16 %v3754_v52, %v3753_v49 }
 0xa10   :  { %10079 = vmatpush3.bf16.msra.mxu1 %v10078_v46 }
 0xa11   :  { %9050 = vmatpush3.bf16.msra.mxu0 %v10690_v59  ;;  %10080 = vmatprep.subr.bf16.mxu1 %v10737_v11  ;;  %v3758_v59 = vld [vmem:[%s12777_s12 + $0x48] sm:$0xff] }
 0xa12   :  { %9051 = vmatprep.subr.bf16.mxu0 %v10691_v61 }
 0xa14   :  { %10082 = vmatpush3.bf16.msra.mxu1 %v10081_v55 }
 0xa15   :  { %9052 = vmatpush3.bf16.msra.mxu0 %v10691_v61  ;;  %v10084_v61 = vpack.c.bf16 %v3758_v59, %v3757_v57  ;;  %10083 = vmatprep.subr.bf16.mxu1 %v10737_v11 }
 0xa16   :  { %9053 = vmatprep.subr.bf16.mxu0 %v10692_v62 }
 0xa18   :  { %10085 = vmatpush3.bf16.msra.mxu1 %v10084_v61 }
 0xa19   :  { %9054 = vmatpush3.bf16.msra.mxu0 %v10692_v62  ;;  %v3759_v62 = vld [vmem:[%s12777_s12 + $0x50] sm:$0xff]  ;;  %10086 = vmatprep.subr.bf16.mxu1 %v10737_v11 }
 0xa1a   :  { %9079 = vmatprep.subr.bf16.mxu0 %v10693_v63 }
 0xa25   :  { %v9045_v0 = vpop.f32.mrb[64].mxu1 }
 0xa26   :  { %v3000_v1 = vpop.f32.mrb[65].mxu1 }
 0xa27   :  { %v9046_v2 = vpop.f32.mrb[66].mxu1 }
 0xa28   :  { %v3024_v13 = vpack.c.bf16 %v9046_v2, %v9045_v0  ;;  %v3003_v3 = vpop.f32.mrb[67].mxu1  ;;  %v3762_v2 = vld [vmem:[%s12777_s12 + $0x68] sm:$0xff] }
 0xa29   :  { %v3023_v4 = vpack.c.bf16 %v3003_v3, %v3000_v1  ;;  %v3761_v1 = vld [vmem:[%s12777_s12 + $0x60] sm:$0xff]  ;;  %v3763_v3 = vld [vmem:[%s12777_s12 + $0x70] sm:$0xff] }
 0xa2b   :  { %9055 = vmatprep.mubr.msk.bf16.mxu0 %vm359_vm2, %v3023_v4  ;;  %v3764_v4 = vld [vmem:[%s12777_s12 + $0x78] sm:$0xff] }
 0xa2c   :  { %9056 = vmatmul.mubr.msk.bf16.vlgmr.msra.gmra.mrb[40].mxu0 %vm359_vm2, %v3024_v13  ;;  %v10090_v13 = vpack.c.bf16 %v3762_v2, %v3761_v1 }
 0xa2d   :  { %9080 = vmatpush3.bf16.msra.mxu0 %v10693_v63  ;;  %v3760_v63 = vld [vmem:[%s12777_s12 + $0x58] sm:$0xff] }
 0xa2e   :  { %9081 = vmatprep.subr.bf16.mxu0 %v10694_v5  ;;  %v10087_v0 = vpack.c.bf16 %v3760_v63, %v3759_v62 }
 0xa30   :  { %10088 = vmatpush3.bf16.msra.mxu1 %v10087_v0 }
 0xa31   :  { %9082 = vmatpush3.bf16.msra.mxu0 %v10694_v5  ;;  %10089 = vmatprep.subr.bf16.mxu1 %v10737_v11  ;;  %v10093_v5 = vpack.c.bf16 %v3764_v4, %v3763_v3 }
 0xa32   :  { %9083 = vmatprep.subr.bf16.mxu0 %v10695_v6 }
 0xa34   :  { %10091 = vmatpush3.bf16.msra.mxu1 %v10090_v13 }
 0xa35   :  { %9084 = vmatpush3.bf16.msra.mxu0 %v10695_v6  ;;  %10092 = vmatprep.subr.bf16.mxu1 %v10737_v11 }
 0xa36   :  { %9085 = vmatprep.subr.bf16.mxu0 %v10696_v7 }
 0xa38   :  { %10094 = vmatpush3.bf16.msra.mxu1 %v10093_v5 }
 0xa39   :  { %9086 = vmatpush3.bf16.msra.mxu0 %v10696_v7  ;;  %10101 = vmatprep.subr.bf16.mxu1 %v10737_v11 }
 0xa3a   :  { %9111 = vmatprep.subr.bf16.mxu0 %v10697_v8 }
 0xa45   :  { %v9077_v10 = vpop.f32.mrb[68].mxu1 }
 0xa46   :  { %v3159_v33 = vpop.f32.mrb[69].mxu1 }
 0xa47   :  { %v9078_v14 = vpop.f32.mrb[70].mxu1 }
 0xa48   :  { %v3183_v20 = vpack.c.bf16 %v9078_v14, %v9077_v10  ;;  %v3162_v51 = vpop.f32.mrb[71].mxu1 }
 0xa49   :  { %v3182_v54 = vpack.c.bf16 %v3162_v51, %v3159_v33 }
 0xa4b   :  { %9087 = vmatprep.mubr.msk.bf16.mxu0 %vm359_vm2, %v3182_v54 }
 0xa4c   :  { %9088 = vmatmul.mubr.msk.bf16.vlgmr.msra.gmra.mrb[40].mxu0 %vm359_vm2, %v3183_v20  ;;  %v11948_v20 = vld [vmem:[%s12779_s14] sm:$0x3] }
 0xa4d   :  { %9112 = vmatpush3.bf16.msra.mxu0 %v10697_v8 }
 0xa4e   :  { %9113 = vmatprep.subr.bf16.mxu0 %v10698_v56 }
 0xa51   :  { %9114 = vmatpush3.bf16.msra.mxu0 %v10698_v56  ;;  %v3765_v56 = vld [vmem:[%s12778_s13] sm:$0xff] }
 0xa52   :  { %9115 = vmatprep.subr.bf16.mxu0 %v10699_v41 }
 0xa55   :  { %9116 = vmatpush3.bf16.msra.mxu0 %v10699_v41 }
 0xa56   :  { %9117 = vmatprep.subr.bf16.mxu0 %v10700_v18 }
 0xa59   :  { %9118 = vmatpush3.bf16.msra.mxu0 %v10700_v18 }
 0xa5a   :  { %9143 = vmatprep.subr.bf16.mxu0 %v10701_v9 }
 0xa65   :  { %v9109_v38 = vpop.f32.mrb[72].mxu1 }
 0xa66   :  { %v3318_v21 = vpop.f32.mrb[73].mxu1 }
 0xa67   :  { %v9110_v27 = vpop.f32.mrb[74].mxu1 }
 0xa68   :  { %v3342_v15 = vpack.c.bf16 %v9110_v27, %v9109_v38  ;;  %v3321_v16 = vpop.f32.mrb[75].mxu1 }
 0xa69   :  { %v3341_v39 = vpack.c.bf16 %v3321_v16, %v3318_v21  ;;  %v3746_v21 = vld [vmem:[%s12780_s15 + $0x8] sm:$0xff]  ;;  %v3748_v16 = vld [vmem:[%s12780_s15 + $0x18] sm:$0xff] }
 0xa6b   :  { %9119 = vmatprep.mubr.msk.bf16.mxu0 %vm359_vm2, %v3341_v39 }
 0xa6c   :  { %9120 = vmatmul.mubr.msk.bf16.vlgmr.msra.gmra.mrb[40].mxu0 %vm359_vm2, %v3342_v15  ;;  %v3747_v15 = vld [vmem:[%s12780_s15 + $0x10] sm:$0xff] }
 0xa6d   :  { %9144 = vmatpush3.bf16.msra.mxu0 %v10701_v9  ;;  %v3745_v9 = vld [vmem:[%s12780_s15] sm:$0xff] }
 0xa6e   :  { %9145 = vmatprep.subr.bf16.mxu0 %v10702_v19 }
 0xa71   :  { %9146 = vmatpush3.bf16.msra.mxu0 %v10702_v19 }
 0xa72   :  { %9147 = vmatprep.subr.bf16.mxu0 %v10703_v29 }
 0xa75   :  { %9148 = vmatpush3.bf16.msra.mxu0 %v10703_v29 }
 0xa76   :  { %9149 = vmatprep.subr.bf16.mxu0 %v10704_v37 }
 0xa79   :  { %9150 = vmatpush3.bf16.msra.mxu0 %v10704_v37 }
 0xa7a   :  { %9175 = vmatprep.subr.bf16.mxu0 %v10705_v22 }
 0xa85   :  { %v9141_v23 = vpop.f32.mrb[76].mxu1 }
 0xa86   :  { %v3477_v31 = vpop.f32.mrb[77].mxu1 }
 0xa87   :  { %v9142_v47 = vpop.f32.mrb[78].mxu1 }
 0xa88   :  { %v3501_v28 = vpack.c.bf16 %v9142_v47, %v9141_v23  ;;  %v3480_v26 = vpop.f32.mrb[79].mxu1 }
 0xa89   :  { %v3500_v44 = vpack.c.bf16 %v3480_v26, %v3477_v31 }
 0xa8b   :  { %9151 = vmatprep.mubr.msk.bf16.mxu0 %vm359_vm2, %v3500_v44 }
 0xa8c   :  { %9152 = vmatmul.mubr.msk.bf16.vlgmr.msra.gmra.mrb[40].mxu0 %vm359_vm2, %v3501_v28 }
 0xa8d   :  { %9176 = vmatpush3.bf16.msra.mxu0 %v10705_v22 }
 0xa8e   :  { %9177 = vmatprep.subr.bf16.mxu0 %v10706_v36 }
 0xa91   :  { %9178 = vmatpush3.bf16.msra.mxu0 %v10706_v36 }
 0xa92   :  { %9179 = vmatprep.subr.bf16.mxu0 %v10707_v50 }
 0xa95   :  { %9180 = vmatpush3.bf16.msra.mxu0 %v10707_v50 }
 0xa96   :  { %9181 = vmatprep.subr.bf16.mxu0 %v10708_v58 }
 0xa99   :  { %9182 = vmatpush3.bf16.msra.mxu0 %v10708_v58 }
 0xa9a   :  { %10065 = vmatprep.subr.bf16.mxu0 %v10737_v11 }
 0xaa5   :  { %v9173_v17 = vpop.f32.mrb[80].mxu1 }
 0xaa6   :  { %v3636_v24 = vpop.f32.mrb[81].mxu1 }
 0xaa7   :  { %v9174_v25 = vpop.f32.mrb[82].mxu1 }
 0xaa8   :  { %v3660_v60 = vpack.c.bf16 %v9174_v25, %v9173_v17  ;;  %v3639_v30 = vpop.f32.mrb[83].mxu1 }
 0xaa9   :  { %v3659_v43 = vpack.c.bf16 %v3639_v30, %v3636_v24 }
 0xaab   :  { %9183 = vmatprep.mubr.msk.bf16.mxu0 %vm359_vm2, %v3659_v43 }
 0xaac   :  { %9184 = vmatmul.mubr.msk.bf16.vlgmr.msra.gmra.mrb[40].mxu0 %vm359_vm2, %v3660_v60  ;;  %vm3766_vm2 = vcmask 261120  }
 0xaad   :  { %9195 = vmatprep.mubr.msk.f32.mxu0 %vm10738_vm1, %v10739_v12 }
 0xb7f   :  { %v11941_v6 = vpop.f32.mrb[40].mxu0 }
 0xb80   :  { %v3725_v7 = vpop.f32.mrb[41].mxu0 }
 0xb81   :  { %v9186_v8 = vpop.f32.mrb[42].mxu0 }
 0xb82   :  { %v10069_v10 = vpack.c.bf16 %v9186_v8, %v11941_v6  ;;  %v3728_v33 = vpop.f32.mrb[43].mxu0 }
 0xb83   :  { %v10066_v14 = vpack.c.bf16 %v3728_v33, %v3725_v7 }
 0xb85   :  { %10067 = vmatpush3.bf16.msra.mxu0 %v10066_v14  ;;  %v7628_v14 = vld [vmem:[%s12782_s17 + $0x40] sm:$0xff]  }
 0xb86   :  { %10068 = vmatprep.subr.bf16.mxu0 %v10737_v11 }
 0xb89   :  { %10070 = vmatpush3.bf16.msra.mxu0 %v10069_v10  ;;  %v4431_v10 = vld [vmem:[%s12781_s16] sm:$0x1] }
 0xb8a   :  { %9233 = vmatprep.subr.mxu0 %v10739_v12 }
 0xb8c   :  { %9196 = vmatmul.mubr.msk.f32.vlgmr.msra.gmra.mrb[44].mxu0 %vm3766_vm2, %v11948_v20 }
 0xb8d   :  { %9235 = vmatprep.mubr.msk.f32.mxu0 %vm10738_vm1, %v10739_v12  ;;  %9234 = vmatpush3.msra.mxu0 %v3765_v56 }
 0xc5f   :  { %v3836_v51 = vpop.f32.mrb[44].mxu0 }
 0xc60   :  { %v9197_v54 = vpop.f32.mrb[45].mxu0  ;;  %9231 = vmatmul.mubr.f32.vlgmr.msra.gmra.mrb[84].mxu1 %v3836_v51  ;;  %v7630_v51 = vld [vmem:[%s12782_s17 + $0x50] sm:$0xff]  }
 0xc61   :  { %10103 = vmatpush3.bf16.msra.mxu1 %v10072_v35  ;;  %9289 = vmatprep.mubr.msk.f32.mxu1 %vm10738_vm1, %v10739_v12  ;;  %v7631_v54 = vld [vmem:[%s12782_s17 + $0x58] sm:$0xff]  }
 0xc62   :  { %10104 = vmatprep.subr.bf16.mxu1 %v10737_v11 }
 0xc65   :  { %10106 = vmatpush3.bf16.msra.mxu1 %v10075_v32  ;;  %v7077_v32 = vld [vmem:[%s12776_s11] ss:$0 sm:$0xff] }
 0xc66   :  { %10107 = vmatprep.subr.bf16.mxu1 %v10737_v11 }
 0xc69   :  { %10109 = vmatpush3.bf16.msra.mxu1 %v10078_v46 }
 0xc6a   :  { %10110 = vmatprep.subr.bf16.mxu1 %v10737_v11 }
 0xc6d   :  { %10112 = vmatpush3.bf16.msra.mxu1 %v10081_v55 }
 0xc6e   :  { %10113 = vmatprep.subr.bf16.mxu1 %v10737_v11 }
 0xc71   :  { %10115 = vmatpush3.bf16.msra.mxu1 %v10084_v61 }
 0xc72   :  { %10116 = vmatprep.subr.bf16.mxu1 %v10737_v11 }
 0xc75   :  { %10118 = vmatpush3.bf16.msra.mxu1 %v10087_v0 }
 0xc76   :  { %10119 = vmatprep.subr.bf16.mxu1 %v10737_v11 }
 0xc79   :  { %10121 = vmatpush3.bf16.msra.mxu1 %v10090_v13 }
 0xc7a   :  { %10122 = vmatprep.subr.bf16.mxu1 %v10737_v11 }
 0xc7d   :  { %10124 = vmatpush3.bf16.msra.mxu1 %v10093_v5 }
 0xc7e   :  { %9292 = vmatprep.subr.mxu1 %v10739_v12 }
 0xd33   :  { %v3906_v41 = vpop.f32.mrb[84].mxu1 }
 0xd34   :  { %v9232_v18 = vpop.f32.mrb[85].mxu1  ;;  %9236 = vmatmul.mubr.msk.f32.vlgmr.msra.gmra.mrb[46].mxu0 %vm3910_vm11, %v3906_v41  ;;  %v7633_v41 = vld [vmem:[%s12782_s17 + $0x68] sm:$0xff]  }
 0xd35   :  { %9240 = vmatprep.mubr.msk.f32.mxu0 %vm511_vm5, %v3745_v9  ;;  %v7634_v18 = vld [vmem:[%s12782_s17 + $0x70] sm:$0xff]  }
 0xe07   :  { %v3980_v38 = vpop.f32.mrb[46].mxu0 }
 0xe08   :  { %v9237_v27 = vpop.f32.mrb[47].mxu0  ;;  %9238 = vmatprep.subr.msk.mxu0 %vm560_vm6, %v3980_v38 }
 0xe09   :  { %9239 = vmatpush3.msk.msra.mxu0 %vm560_vm6, %v3980_v38 }
 0xe0a   :  { %9241 = vmatmul.mubr.msk.f32.vlgmr.msra.gmra.mrb[48].mxu0 %vm511_vm5, %v3746_v21  ;;  %10095 = vmatprep.subr.bf16.mxu0 %v10737_v11 }
 0xe0b   :  { %9243 = vmatprep.mubr.msk.f32.mxu0 %vm511_vm5, %v3747_v15 }
 0xe0e   :  { %9244 = vmatmul.mubr.msk.f32.gmra.mrb[50].mxu0 %vm511_vm5, %v3748_v16 }
 0xe0f   :  { %9254 = vmatprep.mubr.msk.f32.mxu0 %vm10738_vm1, %v10739_v12 }
 0xedd   :  { %v9242_v39 = vpop.f32.mrb[48].mxu0 }
 0xede   :  { %v4085_v19 = vsub.f32 %v3728_v33, %v9242_v39  ;;  %v4065_v29 = vpop.f32.mrb[49].mxu0  ;;  %v7079_v33 = vld [vmem:[%s12781_s16 + $0x1] sm:$0x1] }
 0xedf   :  { %v4084_v37 = vsub.f32 %v3725_v7, %v4065_v29 }
 0xee0   :  { %v4089_v22 = vmul.f32 %v4085_v19, %v4085_v19 }
 0xee1   :  { %v4088_v23 = vmul.f32 %v4084_v37, %v4084_v37  ;;  %v9245_v31 = vpop.f32.mrb[50].mxu0 }
 0xee2   :  { %v4087_v47 = vsub.f32 %v9186_v8, %v9245_v31  ;;  %v4075_v28 = vpop.f32.mrb[51].mxu0  ;;  %v7623_v31 = vld [vmem:[%s12782_s17 + $0x18] sm:$0xff]  }
 0xee3   :  { %v10096_v26 = vpack.c.bf16 %v4089_v22, %v4088_v23  ;;  %v4086_v44 = vsub.f32 %v11941_v6, %v4075_v28  ;;  %v7621_v22 = vld [vmem:[%s12782_s17 + $0x8] sm:$0xff]   ;;  %v7622_v23 = vld [vmem:[%s12782_s17 + $0x10] sm:$0xff]   ;;  %v7624_v28 = vld [vmem:[%s12782_s17 + $0x20] sm:$0xff]  }
 0xee4   :  { %v4091_v36 = vmul.f32 %v4087_v47, %v4087_v47 }
 0xee5   :  { %v4090_v50 = vmul.f32 %v4086_v44, %v4086_v44  ;;  %10097 = vmatpush3.bf16.msra.mxu0 %v10096_v26  ;;  %v7637_v26 = vld [vmem:[%s12782_s17 + $0x88] sm:$0xff]  }
 0xee6   :  { %10098 = vmatprep.subr.bf16.mxu0 %v10737_v11 }
 0xee7   :  { %v10099_v58 = vpack.c.bf16 %v4091_v36, %v4090_v50  ;;  %v7638_v36 = vld [vmem:[%s12782_s17 + $0x90] sm:$0xff]  }
 0xee8   :  { %v7626_v50 = vld [vmem:[%s12782_s17 + $0x30] sm:$0xff]  }
 0xee9   :  { %10100 = vmatpush3.bf16.msra.mxu0 %v10099_v58  ;;  %v7639_v58 = vld [vmem:[%s12782_s17 + $0x98] sm:$0xff]  }
 0xeea   :  { %10173 = vmatprep.subr.bf16.mxu0 %v10737_v11 }
 0xeec   :  { %9255 = vmatmul.mubr.msk.f32.vlgmr.msra.gmra.mrb[52].mxu0 %vm3766_vm2, %v11948_v20  ;;  %v7629_v20 = vld [vmem:[%s12782_s17 + $0x48] sm:$0xff]  }
 0xeed   :  { %9431 = vmatprep.mubr.msk.f32.mxu0 %vm10738_vm1, %v10739_v12 }
 0xfbf   :  { %v4158_v17 = vpop.f32.mrb[52].mxu0 }
 0xfc0   :  { %v9256_v24 = vpop.f32.mrb[53].mxu0  ;;  %9290 = vmatmul.mubr.f32.vlgmr.msra.gmra.mrb[86].mxu1 %v4158_v17  ;;  %v7627_v17 = vld [vmem:[%s12782_s17 + $0x38] sm:$0xff]  }
 0xfc1   :  { %9293 = vmatpush3.msra.mxu1 %v3765_v56  ;;  %9294 = vmatprep.mubr.msk.f32.mxu1 %vm10738_vm1, %v10739_v12  ;;  %v7632_v56 = vld [vmem:[%s12782_s17 + $0x60] sm:$0xff]  }
 0xfc2   :  { %v7640_v24 = vld [vmem:[%s12782_s17 + $0xa0] sm:$0xff]  }
0x1093   :  { %v4228_v25 = vpop.f32.mrb[86].mxu1 }
0x1094   :  { %v4229_v60 = vadd.f32 1e-05, %v4228_v25  ;;  %v9291_v30 = vpop.f32.mrb[87].mxu1  ;;  %v7641_v25 = vld [vmem:[%s12782_s17 + $0xa8] sm:$0xff]  }
0x1095   :  { %v7083_v30 = vld [vmem:[%s12781_s16 + $0x3] sm:$0x1] }
0x1096   :  { %10711 = vrsqrt.f32 %v4229_v60  ;;  %v7081_v60 = vld [vmem:[%s12781_s16 + $0x2] sm:$0x1] }
0x10a0   :  { %v10712_v43 = vpop.eup %10711 }
0x10a1   :  { %9295 = vmatmul.mubr.msk.f32.vlgmr.msra.gmra.mrb[88].mxu1 %vm3910_vm11, %v10712_v43  ;;  %v7085_v43 = vld [vmem:[%s12781_s16 + $0x4] sm:$0x1] }
0x10a2   :  { %9299 = vmatprep.mubr.msk.f32.mxu1 %vm511_vm5, %v3745_v9  ;;  %v7635_v9 = vld [vmem:[%s12782_s17 + $0x78] sm:$0xff]  }
0x1174   :  { %v4302_v45 = vpop.f32.mrb[88].mxu1 }
0x1175   :  { %v4313_v34 = vmul.f32 %v7071_v42, %v4302_v45  ;;  %v9296_v35 = vpop.f32.mrb[89].mxu1  ;;  %v7087_v42 = vld [vmem:[%s12781_s16 + $0x5] sm:$0x1]  ;;  %v7089_v45 = vld [vmem:[%s12781_s16 + $0x6] sm:$0x1] }
0x1176   :  { %v7093_v35 = vld [vmem:[%s12781_s16 + $0x8] sm:$0x1] }
0x1177   :  { %9297 = vmatprep.subr.msk.mxu1 %vm560_vm6, %v4313_v34 }
0x1178   :  { %9298 = vmatpush3.msk.msra.mxu1 %vm560_vm6, %v4313_v34  ;;  %v7091_v34 = vld [vmem:[%s12781_s16 + $0x7] sm:$0x1] }
0x1179   :  { %9300 = vmatmul.mubr.msk.f32.vlgmr.msra.gmra.mrb[90].mxu1 %vm511_vm5, %v3746_v21  ;;  %9305 = vmatprep.subr.bf16.mxu1 %v10739_v12 }
0x117a   :  { %9302 = vmatprep.mubr.msk.f32.mxu1 %vm511_vm5, %v3747_v15 }
0x117d   :  { %9303 = vmatmul.mubr.msk.f32.gmra.mrb[92].mxu1 %vm511_vm5, %v3748_v16  ;;  %v7110_v16 = vld [vmem:[%s12782_s17] sm:$0xff]  }
0x117e   :  { %9309 = vmatprep.mubr.msk.bf16.mxu1 %vm10738_vm1, %v10739_v12 }
0x124c   :  { %v9301_v40 = vpop.f32.mrb[90].mxu1 }
0x124d   :  { %v4403_v49 = vmul.f32 %v9301_v40, %v4085_v19  ;;  %v4383_v52 = vpop.f32.mrb[91].mxu1  ;;  %v7095_v40 = vld [vmem:[%s12781_s16 + $0x9] sm:$0x1] }
0x124e   :  { %v4402_v46 = vmul.f32 %v4383_v52, %v4084_v37  ;;  %v7642_v52 = vld [vmem:[%s12782_s17 + $0xb0] sm:$0xff]  }
0x124f   :  { %v4414_v48 = vadd.f32 %v7077_v32, %v4403_v49  ;;  %v7099_v49 = vld [vmem:[%s12781_s16 + $0xb] sm:$0x1] }
0x1250   :  { %v4413_v53 = vadd.f32 %v7077_v32, %v4402_v46  ;;  %v9304_v55 = vpop.f32.mrb[92].mxu1  ;;  %v7101_v46 = vld [vmem:[%s12781_s16 + $0xc] sm:$0x1] }
0x1251   :  { %vm4418_vm6 = vcmp.gt.f32.partialorder %v4414_v48, 0.0  ;;  %v4422_v57 = vmul.f32 0.01, %v4414_v48  ;;  %v4405_v59 = vmul.f32 %v9304_v55, %v4087_v47  ;;  %v4393_v61 = vpop.f32.mrb[93].mxu1  ;;  %v7636_v47 = vld [vmem:[%s12782_s17 + $0x80] sm:$0xff]  }
0x1252   :  { %vm4417_vm12 = vcmp.gt.f32.partialorder %v4413_v53, 0.0  ;;  %v4421_v62 = vmul.f32 0.01, %v4413_v53  ;;  %v4404_v63 = vmul.f32 %v4393_v61, %v4086_v44  ;;  %10175 = vmatpush3.bf16.msra.mxu0 %v7636_v47  ;;  %v7625_v44 = vld [vmem:[%s12782_s17 + $0x28] sm:$0xff]   ;;  %v7644_v61 = vld [vmem:[%s12782_s17 + $0xc0] sm:$0xff]  }
0x1253   :  { %v4426_v0 = vsel %vm4418_vm6, %v4414_v48, %v4422_v57  ;;  %v4416_v1 = vadd.f32 %v7077_v32, %v4405_v59  ;;  %10176 = vmatprep.subr.bf16.mxu0 %v10737_v11  ;;  %v7643_v48 = vld [vmem:[%s12782_s17 + $0xb8] sm:$0xff]   ;;  %v7105_v55 = vld [vmem:[%s12781_s16 + $0xe] sm:$0x1] }
0x1254   :  { %v4425_v2 = vsel %vm4417_vm12, %v4413_v53, %v4421_v62  ;;  %v4415_v13 = vadd.f32 %v7077_v32, %v4404_v63  ;;  %v7097_v32 = vld [vmem:[%s12781_s16 + $0xa] sm:$0x1]  ;;  %v7103_v53 = vld [vmem:[%s12781_s16 + $0xd] sm:$0x1] }
0x1255   :  { %v12015_v3 = vpack.c.bf16 %v4426_v0, %v4425_v2  ;;  %vm4420_vm5 = vcmp.gt.f32.partialorder %v4416_v1, 0.0  ;;  %v4424_v4 = vmul.f32 0.01, %v4416_v1  ;;  %v7645_v2 = vld [vmem:[%s12782_s17 + $0xc8] sm:$0xff]  }
0x1256   :  { %vm4419_vm13 = vcmp.gt.f32.partialorder %v4415_v13, 0.0  ;;  %v4423_v5 = vmul.f32 0.01, %v4415_v13  ;;  %10178 = vmatpush3.bf16.msra.mxu0 %v7637_v26  ;;  %v7657_v26 = vld [vmem:[%s12782_s17 + $0x128] sm:$0xff]  }
0x1257   :  { %v4428_v6 = vsel %vm4420_vm5, %v4416_v1, %v4424_v4  ;;  %9306 = vmatpush3.bf16.msra.mxu1 %v12015_v3  ;;  %10179 = vmatprep.subr.bf16.mxu0 %v10737_v11 }
0x1258   :  { %v4427_v7 = vsel %vm4419_vm13, %v4415_v13, %v4423_v5  ;;  %9307 = vmatprep.subr.bf16.mxu1 %v10739_v12  ;;  %v7646_v13 = vld [vmem:[%s12782_s17 + $0xd0] sm:$0xff]  }
0x1259   :  { %v12019_v8 = vpack.c.bf16 %v4428_v6, %v4427_v7  ;;  %v7647_v6 = vld [vmem:[%s12782_s17 + $0xd8] sm:$0xff]  }
0x125a   :  { %10181 = vmatpush3.bf16.msra.mxu0 %v7638_v36  ;;  %v7659_v36 = vld [vmem:[%s12782_s17 + $0x138] sm:$0xff]  }
0x125b   :  { %9308 = vmatpush3.bf16.msra.mxu1 %v12019_v8  ;;  %10182 = vmatprep.subr.bf16.mxu0 %v10737_v11 }
0x125c   :  { %9313 = vmatprep.subr.bf16.mxu1 %v10739_v12 }
0x125e   :  { %9310 = vmatmul.mubr.msk.bf16.vlgmr.msra.gmra.mrb[96].mxu1 %vm3766_vm2, %v4431_v10  ;;  %10184 = vmatpush3.bf16.msra.mxu0 %v7639_v58  ;;  %v7660_v58 = vld [vmem:[%s12782_s17 + $0x140] sm:$0xff]  }
0x125f   :  { %9314 = vmatpush3.bf16.msra.mxu1 %v12015_v3  ;;  %9317 = vmatprep.mubr.msk.bf16.mxu1 %vm10738_vm1, %v10739_v12 }
0x1260   :  { %9315 = vmatprep.subr.bf16.mxu1 %v10739_v12  ;;  %10185 = vmatprep.subr.bf16.mxu0 %v10737_v11 }
0x1262   :  { %10187 = vmatpush3.bf16.msra.mxu0 %v7640_v24 }
0x1263   :  { %9316 = vmatpush3.bf16.msra.mxu1 %v12019_v8  ;;  %10188 = vmatprep.subr.bf16.mxu0 %v10737_v11 }
0x1264   :  { %10125 = vmatprep.subr.bf16.mxu1 %v10737_v11 }
0x1266   :  { %9318 = vmatmul.mubr.msk.bf16.vlgmr.msra.gmra.mrb[100].mxu1 %vm3766_vm2, %v7079_v33  ;;  %10190 = vmatpush3.bf16.msra.mxu0 %v7641_v25 }
0x1267   :  { %10127 = vmatpush3.bf16.msra.mxu1 %v7628_v14  ;;  %9353 = vmatprep.mubr.msk.f32.mxu1 %vm10738_vm1, %v10739_v12 }
0x1268   :  { %10128 = vmatprep.subr.bf16.mxu1 %v10737_v11  ;;  %10191 = vmatprep.subr.bf16.mxu0 %v10737_v11 }
0x126a   :  { %10193 = vmatpush3.bf16.msra.mxu0 %v7642_v52 }
0x126b   :  { %10130 = vmatpush3.bf16.msra.mxu1 %v7629_v20  ;;  %10194 = vmatprep.subr.bf16.mxu0 %v10737_v11  ;;  %v7649_v20 = vld [vmem:[%s12782_s17 + $0xe8] sm:$0xff]  }
0x126c   :  { %10131 = vmatprep.subr.bf16.mxu1 %v10737_v11 }
0x126e   :  { %10196 = vmatpush3.bf16.msra.mxu0 %v7643_v48 }
0x126f   :  { %10133 = vmatpush3.bf16.msra.mxu1 %v7630_v51  ;;  %10197 = vmatprep.subr.bf16.mxu0 %v10737_v11 }
0x1270   :  { %10134 = vmatprep.subr.bf16.mxu1 %v10737_v11 }
0x1273   :  { %10136 = vmatpush3.bf16.msra.mxu1 %v7631_v54  ;;  %v7650_v54 = vld [vmem:[%s12782_s17 + $0xf0] sm:$0xff]  }
0x1274   :  { %10137 = vmatprep.subr.bf16.mxu1 %v10737_v11 }
0x1277   :  { %10139 = vmatpush3.bf16.msra.mxu1 %v7632_v56 }
0x1278   :  { %10140 = vmatprep.subr.bf16.mxu1 %v10737_v11 }
0x127b   :  { %10142 = vmatpush3.bf16.msra.mxu1 %v7633_v41 }
0x127c   :  { %10143 = vmatprep.subr.bf16.mxu1 %v10737_v11 }
0x127f   :  { %10145 = vmatpush3.bf16.msra.mxu1 %v7634_v18 }
0x1280   :  { %10146 = vmatprep.subr.bf16.mxu1 %v10737_v11 }
0x1283   :  { %10148 = vmatpush3.bf16.msra.mxu1 %v7635_v9  ;;  %v7651_v9 = vld [vmem:[%s12782_s17 + $0xf8] sm:$0xff]  }
0x1284   :  { %10149 = vmatprep.subr.bf16.mxu1 %v10737_v11 }
0x1331   :  { %v4469_v38 = vpop.f32.mrb[96].mxu1 }
0x1332   :  { %v9311_v21 = vpop.f32.mrb[97].mxu1 }
0x1333   :  { %v4472_v27 = vpop.f32.mrb[98].mxu1  ;;  %v7652_v21 = vld [vmem:[%s12782_s17 + $0x100] sm:$0xff]  }
0x1334   :  { %v9312_v15 = vpop.f32.mrb[99].mxu1 }
0x1339   :  { %v4546_v39 = vpop.f32.mrb[100].mxu1 }
0x133a   :  { %v9319_v19 = vpop.f32.mrb[101].mxu1  ;;  %9354 = vmatmul.mubr.f32.vlgmr.msra.gmra.mrb[94].mxu1 %v4546_v39  ;;  %v7653_v39 = vld [vmem:[%s12782_s17 + $0x108] sm:$0xff]  }
0x133b   :  { %10151 = vmatpush3.bf16.msra.mxu1 %v7110_v16  ;;  %v4549_v29 = vpop.f32.mrb[102].mxu1  ;;  %9388 = vmatprep.mubr.msk.f32.mxu1 %vm10738_vm1, %v10739_v12 }
0x133c   :  { %v9320_v37 = vpop.f32.mrb[103].mxu1  ;;  %10152 = vmatprep.subr.bf16.mxu1 %v10737_v11  ;;  %v7654_v29 = vld [vmem:[%s12782_s17 + $0x110] sm:$0xff]  }
0x133f   :  { %10154 = vmatpush3.bf16.msra.mxu1 %v7621_v22 }
0x1340   :  { %10155 = vmatprep.subr.bf16.mxu1 %v10737_v11 }
0x1343   :  { %10157 = vmatpush3.bf16.msra.mxu1 %v7622_v23 }
0x1344   :  { %10158 = vmatprep.subr.bf16.mxu1 %v10737_v11 }
0x1347   :  { %10160 = vmatpush3.bf16.msra.mxu1 %v7623_v31  ;;  %v7655_v31 = vld [vmem:[%s12782_s17 + $0x118] sm:$0xff]  }
0x1348   :  { %10161 = vmatprep.subr.bf16.mxu1 %v10737_v11 }
0x134b   :  { %10163 = vmatpush3.bf16.msra.mxu1 %v7624_v28  ;;  %v7656_v28 = vld [vmem:[%s12782_s17 + $0x120] sm:$0xff]  }
0x134c   :  { %10164 = vmatprep.subr.bf16.mxu1 %v10737_v11 }
0x134f   :  { %10166 = vmatpush3.bf16.msra.mxu1 %v7625_v44  ;;  %v7658_v44 = vld [vmem:[%s12782_s17 + $0x130] sm:$0xff]  }
0x1350   :  { %10167 = vmatprep.subr.bf16.mxu1 %v10737_v11 }
0x1353   :  { %10169 = vmatpush3.bf16.msra.mxu1 %v7626_v50 }
0x1354   :  { %10170 = vmatprep.subr.bf16.mxu1 %v10737_v11 }
0x1357   :  { %10172 = vmatpush3.bf16.msra.mxu1 %v7627_v17 }
0x1358   :  { %9391 = vmatprep.subr.bf16.mxu1 %v10739_v12 }
0x135a   :  { %9389 = vmatmul.mubr.f32.vlgmr.msra.gmra.mrb[94].mxu1 %v4469_v38 }
0x135b   :  { %9392 = vmatpush3.bf16.msra.mxu1 %v12015_v3  ;;  %9395 = vmatprep.mubr.msk.bf16.mxu1 %vm10738_vm1, %v10739_v12 }
0x135c   :  { %9393 = vmatprep.subr.bf16.mxu1 %v10739_v12 }
0x135f   :  { %9394 = vmatpush3.bf16.msra.mxu1 %v12019_v8 }
0x1360   :  { %9434 = vmatprep.subr.bf16.mxu1 %v10739_v12 }
0x1362   :  { %9396 = vmatmul.mubr.msk.bf16.vlgmr.msra.gmra.mrb[104].mxu1 %vm3766_vm2, %v7081_v60  ;;  %v7661_v60 = vld [vmem:[%s12782_s17 + $0x148] sm:$0xff]  }
0x1363   :  { %9435 = vmatpush3.bf16.msra.mxu1 %v12015_v3  ;;  %9438 = vmatprep.mubr.msk.bf16.mxu1 %vm10738_vm1, %v10739_v12 }
0x1364   :  { %9436 = vmatprep.subr.bf16.mxu1 %v10739_v12 }
0x1367   :  { %9437 = vmatpush3.bf16.msra.mxu1 %v12019_v8 }
0x1368   :  { %9477 = vmatprep.subr.bf16.mxu1 %v10739_v12 }
0x136a   :  { %9439 = vmatmul.mubr.msk.bf16.vlgmr.msra.gmra.mrb[108].mxu1 %vm3766_vm2, %v7083_v30  ;;  %v7662_v30 = vld [vmem:[%s12782_s17 + $0x150] sm:$0xff]  }
0x136b   :  { %9478 = vmatpush3.bf16.msra.mxu1 %v12015_v3  ;;  %9481 = vmatprep.mubr.msk.bf16.mxu1 %vm10738_vm1, %v10739_v12 }
0x136c   :  { %9479 = vmatprep.subr.bf16.mxu1 %v10739_v12 }
0x136f   :  { %9480 = vmatpush3.bf16.msra.mxu1 %v12019_v8 }
0x1370   :  { %9520 = vmatprep.subr.bf16.mxu1 %v10739_v12 }
0x1372   :  { %9482 = vmatmul.mubr.msk.bf16.vlgmr.msra.gmra.mrb[112].mxu1 %vm3766_vm2, %v7085_v43  ;;  %v7107_v43 = vld [vmem:[%s12781_s16 + $0xf] sm:$0x1] }
0x1373   :  { %9521 = vmatpush3.bf16.msra.mxu1 %v12015_v3  ;;  %9524 = vmatprep.mubr.msk.bf16.mxu1 %vm10738_vm1, %v10739_v12 }
0x1374   :  { %9522 = vmatprep.subr.bf16.mxu1 %v10739_v12 }
0x1377   :  { %9523 = vmatpush3.bf16.msra.mxu1 %v12019_v8 }
0x1378   :  { %9563 = vmatprep.subr.bf16.mxu1 %v10739_v12 }
0x137a   :  { %9525 = vmatmul.mubr.msk.bf16.vlgmr.msra.gmra.mrb[116].mxu1 %vm3766_vm2, %v7087_v42  ;;  %v7663_v42 = vld [vmem:[%s12782_s17 + $0x158] sm:$0xff]  }
0x137b   :  { %9564 = vmatpush3.bf16.msra.mxu1 %v12015_v3  ;;  %9567 = vmatprep.mubr.msk.bf16.mxu1 %vm10738_vm1, %v10739_v12 }
0x137c   :  { %9565 = vmatprep.subr.bf16.mxu1 %v10739_v12 }
0x137f   :  { %9566 = vmatpush3.bf16.msra.mxu1 %v12019_v8 }
0x1380   :  { %9606 = vmatprep.subr.bf16.mxu1 %v10739_v12 }
0x1382   :  { %9568 = vmatmul.mubr.msk.bf16.vlgmr.msra.gmra.mrb[120].mxu1 %vm3766_vm2, %v7089_v45  ;;  %v7664_v45 = vld [vmem:[%s12782_s17 + $0x160] sm:$0xff]  }
0x1383   :  { %9607 = vmatpush3.bf16.msra.mxu1 %v12015_v3  ;;  %9610 = vmatprep.mubr.msk.bf16.mxu1 %vm10738_vm1, %v10739_v12 }
0x1384   :  { %9608 = vmatprep.subr.bf16.mxu1 %v10739_v12 }
0x1387   :  { %9609 = vmatpush3.bf16.msra.mxu1 %v12019_v8 }
0x1388   :  { %9649 = vmatprep.subr.bf16.mxu1 %v10739_v12 }
0x138a   :  { %9611 = vmatmul.mubr.msk.bf16.vlgmr.msra.gmra.mrb[124].mxu1 %vm3766_vm2, %v7091_v34  ;;  %v7665_v34 = vld [vmem:[%s12782_s17 + $0x168] sm:$0xff]  }
0x138b   :  { %9650 = vmatpush3.bf16.msra.mxu1 %v12015_v3  ;;  %9653 = vmatprep.mubr.msk.bf16.mxu1 %vm10738_vm1, %v10739_v12 }
0x138c   :  { %9651 = vmatprep.subr.bf16.mxu1 %v10739_v12 }
0x138f   :  { %9652 = vmatpush3.bf16.msra.mxu1 %v12019_v8 }
0x1390   :  { %9692 = vmatprep.subr.bf16.mxu1 %v10739_v12 }
0x1392   :  { %9654 = vmatmul.mubr.msk.bf16.vlgmr.msra.gmra.mrb[128].mxu1 %vm3766_vm2, %v7093_v35  ;;  %v7666_v35 = vld [vmem:[%s12782_s17 + $0x170] sm:$0xff]  }
0x1393   :  { %9693 = vmatpush3.bf16.msra.mxu1 %v12015_v3  ;;  %9696 = vmatprep.mubr.msk.bf16.mxu1 %vm10738_vm1, %v10739_v12 }
0x1394   :  { %9694 = vmatprep.subr.bf16.mxu1 %v10739_v12 }
0x1397   :  { %9695 = vmatpush3.bf16.msra.mxu1 %v12019_v8 }
0x1398   :  { %9735 = vmatprep.subr.bf16.mxu1 %v10739_v12 }
0x139a   :  { %9697 = vmatmul.mubr.msk.bf16.vlgmr.msra.gmra.mrb[132].mxu1 %vm3766_vm2, %v7095_v40  ;;  %v7667_v40 = vld [vmem:[%s12782_s17 + $0x178] sm:$0xff]  }
0x139b   :  { %9736 = vmatpush3.bf16.msra.mxu1 %v12015_v3  ;;  %9739 = vmatprep.mubr.msk.bf16.mxu1 %vm10738_vm1, %v10739_v12 }
0x139c   :  { %9737 = vmatprep.subr.bf16.mxu1 %v10739_v12 }
0x139f   :  { %9738 = vmatpush3.bf16.msra.mxu1 %v12019_v8 }
0x13a0   :  { %9778 = vmatprep.subr.bf16.mxu1 %v10739_v12 }
0x13a2   :  { %9740 = vmatmul.mubr.msk.bf16.vlgmr.msra.gmra.mrb[136].mxu1 %vm3766_vm2, %v7097_v32 }
0x13a3   :  { %9779 = vmatpush3.bf16.msra.mxu1 %v12015_v3  ;;  %9782 = vmatprep.mubr.msk.bf16.mxu1 %vm10738_vm1, %v10739_v12 }
0x13a4   :  { %9780 = vmatprep.subr.bf16.mxu1 %v10739_v12 }
0x13a7   :  { %9781 = vmatpush3.bf16.msra.mxu1 %v12019_v8 }
0x13a8   :  { %9821 = vmatprep.subr.bf16.mxu1 %v10739_v12 }
0x13aa   :  { %9783 = vmatmul.mubr.msk.bf16.vlgmr.msra.gmra.mrb[140].mxu1 %vm3766_vm2, %v7099_v49  ;;  %v7668_v49 = vld [vmem:[%s12782_s17 + $0x180] sm:$0xff]  }
0x13ab   :  { %9822 = vmatpush3.bf16.msra.mxu1 %v12015_v3  ;;  %9825 = vmatprep.mubr.msk.bf16.mxu1 %vm10738_vm1, %v10739_v12 }
0x13ac   :  { %9823 = vmatprep.subr.bf16.mxu1 %v10739_v12 }
0x13af   :  { %9824 = vmatpush3.bf16.msra.mxu1 %v12019_v8 }
0x13b0   :  { %9864 = vmatprep.subr.bf16.mxu1 %v10739_v12 }
0x13b2   :  { %9826 = vmatmul.mubr.msk.bf16.vlgmr.msra.gmra.mrb[144].mxu1 %vm3766_vm2, %v7101_v46 }
0x13b3   :  { %9865 = vmatpush3.bf16.msra.mxu1 %v12015_v3  ;;  %9868 = vmatprep.mubr.msk.bf16.mxu1 %vm10738_vm1, %v10739_v12 }
0x13b4   :  { %9866 = vmatprep.subr.bf16.mxu1 %v10739_v12 }
0x13b7   :  { %9867 = vmatpush3.bf16.msra.mxu1 %v12019_v8 }
0x13b8   :  { %9907 = vmatprep.subr.bf16.mxu1 %v10739_v12 }
0x13ba   :  { %9869 = vmatmul.mubr.msk.bf16.vlgmr.msra.gmra.mrb[148].mxu1 %vm3766_vm2, %v7103_v53  ;;  %v7669_v53 = vld [vmem:[%s12782_s17 + $0x188] sm:$0xff]  }
0x13bb   :  { %9908 = vmatpush3.bf16.msra.mxu1 %v12015_v3  ;;  %9911 = vmatprep.mubr.msk.bf16.mxu1 %vm10738_vm1, %v10739_v12 }
0x13bc   :  { %9909 = vmatprep.subr.bf16.mxu1 %v10739_v12 }
0x13bf   :  { %9910 = vmatpush3.bf16.msra.mxu1 %v12019_v8 }
0x13c0   :  { %9950 = vmatprep.subr.bf16.mxu1 %v10739_v12 }
0x13c2   :  { %9912 = vmatmul.mubr.msk.bf16.vlgmr.msra.gmra.mrb[152].mxu1 %vm3766_vm2, %v7105_v55  ;;  %v7670_v55 = vld [vmem:[%s12782_s17 + $0x190] sm:$0xff]  }
0x13c3   :  { %9951 = vmatpush3.bf16.msra.mxu1 %v12015_v3  ;;  %9954 = vmatprep.mubr.msk.bf16.mxu1 %vm10738_vm1, %v10739_v12 }
0x13c4   :  { %9952 = vmatprep.subr.bf16.mxu1 %v10739_v12 }
0x13c7   :  { %9953 = vmatpush3.bf16.msra.mxu1 %v12019_v8  ;;  %v7648_v8 = vld [vmem:[%s12782_s17 + $0xe0] sm:$0xff]  }
0x13ca   :  { %9955 = vmatmul.mubr.msk.bf16.vlgmr.msra.gmra.mrb[156].mxu1 %vm3766_vm2, %v7107_v43  ;;  %v7703_v43 = vld [vmem:[%s12782_s17 + $0x298] sm:$0xff]  }
0x142d   :  { %v12272_v57 = vpop.f32.mrb[94].mxu1 }
0x142e   :  { %v9390_v59 = vpop.f32.mrb[95].mxu1 }
0x142f   :  { %v7671_v59 = vld [vmem:[%s12782_s17 + $0x198] sm:$0xff]  }
0x1435   :  { %v4763_v62 = vpop.f32.mrb[104].mxu1 }
0x1436   :  { %v9397_v63 = vpop.f32.mrb[105].mxu1  ;;  %9432 = vmatmul.mubr.f32.vlgmr.msra.gmra.mrb[54].mxu0 %v4763_v62  ;;  %v7673_v62 = vld [vmem:[%s12782_s17 + $0x1a8] sm:$0xff]  }
0x1437   :  { %10199 = vmatpush3.bf16.msra.mxu0 %v7644_v61  ;;  %v4766_v0 = vpop.f32.mrb[106].mxu1  ;;  %9474 = vmatprep.mubr.msk.f32.mxu0 %vm10738_vm1, %v10739_v12  ;;  %v7672_v61 = vld [vmem:[%s12782_s17 + $0x1a0] sm:$0xff]   ;;  %v7674_v63 = vld [vmem:[%s12782_s17 + $0x1b0] sm:$0xff]  }
0x1438   :  { %v9398_v1 = vpop.f32.mrb[107].mxu1  ;;  %10200 = vmatprep.subr.bf16.mxu0 %v10737_v11  ;;  %v7675_v0 = vld [vmem:[%s12782_s17 + $0x1b8] sm:$0xff]  }
0x143b   :  { %10202 = vmatpush3.bf16.msra.mxu0 %v7645_v2  ;;  %v7676_v2 = vld [vmem:[%s12782_s17 + $0x1c0] sm:$0xff]  }
0x143c   :  { %10203 = vmatprep.subr.bf16.mxu0 %v10737_v11 }
0x143d   :  { %v4911_v3 = vpop.f32.mrb[108].mxu1 }
0x143e   :  { %v9440_v4 = vpop.f32.mrb[109].mxu1 }
0x143f   :  { %10205 = vmatpush3.bf16.msra.mxu0 %v7646_v13  ;;  %v4914_v5 = vpop.f32.mrb[110].mxu1 }
0x1440   :  { %10206 = vmatprep.subr.bf16.mxu0 %v10737_v11  ;;  %v9441_v7 = vpop.f32.mrb[111].mxu1  ;;  %v7677_v5 = vld [vmem:[%s12782_s17 + $0x1c8] sm:$0xff]  }
0x1441   :  { %v7679_v7 = vld [vmem:[%s12782_s17 + $0x1d8] sm:$0xff]  }
0x1443   :  { %10208 = vmatpush3.bf16.msra.mxu0 %v7647_v6  ;;  %v7678_v6 = vld [vmem:[%s12782_s17 + $0x1d0] sm:$0xff]  }
0x1444   :  { %10209 = vmatprep.subr.bf16.mxu0 %v10737_v11 }
0x1445   :  { %v5059_v10 = vpop.f32.mrb[112].mxu1 }
0x1446   :  { %v9483_v33 = vpop.f32.mrb[113].mxu1 }
0x1447   :  { %10211 = vmatpush3.bf16.msra.mxu0 %v7648_v8  ;;  %v5062_v14 = vpop.f32.mrb[114].mxu1  ;;  %v7680_v8 = vld [vmem:[%s12782_s17 + $0x1e0] sm:$0xff]   ;;  %v7682_v33 = vld [vmem:[%s12782_s17 + $0x1f0] sm:$0xff]  }
0x1448   :  { %10212 = vmatprep.subr.bf16.mxu0 %v10737_v11  ;;  %v9484_v51 = vpop.f32.mrb[115].mxu1  ;;  %v7683_v14 = vld [vmem:[%s12782_s17 + $0x1f8] sm:$0xff]  }
0x1449   :  { %v7684_v51 = vld [vmem:[%s12782_s17 + $0x200] sm:$0xff]  }
0x144b   :  { %10214 = vmatpush3.bf16.msra.mxu0 %v7649_v20 }
0x144c   :  { %10215 = vmatprep.subr.bf16.mxu0 %v10737_v11 }
0x144d   :  { %v12303_v56 = vpop.f32.mrb[116].mxu1 }
0x144e   :  { %v9526_v41 = vpop.f32.mrb[117].mxu1 }
0x144f   :  { %10217 = vmatpush3.bf16.msra.mxu0 %v7650_v54  ;;  %v5210_v18 = vpop.f32.mrb[118].mxu1 }
0x1450   :  { %10218 = vmatprep.subr.bf16.mxu0 %v10737_v11  ;;  %v9527_v38 = vpop.f32.mrb[119].mxu1  ;;  %v7685_v18 = vld [vmem:[%s12782_s17 + $0x208] sm:$0xff]  }
0x1451   :  { %v7687_v38 = vld [vmem:[%s12782_s17 + $0x218] sm:$0xff]  }
0x1453   :  { %10220 = vmatpush3.bf16.msra.mxu0 %v7651_v9  ;;  %v7686_v9 = vld [vmem:[%s12782_s17 + $0x210] sm:$0xff]  }
0x1454   :  { %10221 = vmatprep.subr.bf16.mxu0 %v10737_v11 }
0x1455   :  { %v12313_v27 = vpop.f32.mrb[120].mxu1 }
0x1456   :  { %9475 = vmatmul.mubr.f32.vlgmr.msra.gmra.mrb[54].mxu0 %v4911_v3  ;;  %v9569_v15 = vpop.f32.mrb[121].mxu1 }
0x1457   :  { %10223 = vmatpush3.bf16.msra.mxu0 %v7652_v21  ;;  %9517 = vmatprep.mubr.msk.f32.mxu0 %vm10738_vm1, %v10739_v12  ;;  %v5358_v16 = vpop.f32.mrb[122].mxu1  ;;  %v7688_v21 = vld [vmem:[%s12782_s17 + $0x220] sm:$0xff]   ;;  %v7690_v15 = vld [vmem:[%s12782_s17 + $0x230] sm:$0xff]  }
0x1458   :  { %10224 = vmatprep.subr.bf16.mxu0 %v10737_v11  ;;  %v9570_v19 = vpop.f32.mrb[123].mxu1  ;;  %v7691_v16 = vld [vmem:[%s12782_s17 + $0x238] sm:$0xff]  }
0x1459   :  { %v7692_v19 = vld [vmem:[%s12782_s17 + $0x240] sm:$0xff]  }
0x145b   :  { %10226 = vmatpush3.bf16.msra.mxu0 %v7653_v39 }
0x145c   :  { %10227 = vmatprep.subr.bf16.mxu0 %v10737_v11 }
0x145d   :  { %v12325_v37 = vpop.f32.mrb[124].mxu1 }
0x145e   :  { %v9612_v22 = vpop.f32.mrb[125].mxu1 }
0x145f   :  { %10229 = vmatpush3.bf16.msra.mxu0 %v7654_v29  ;;  %v5506_v23 = vpop.f32.mrb[126].mxu1 }
0x1460   :  { %10230 = vmatprep.subr.bf16.mxu0 %v10737_v11  ;;  %v9613_v47 = vpop.f32.mrb[127].mxu1  ;;  %v7693_v23 = vld [vmem:[%s12782_s17 + $0x248] sm:$0xff]  }
0x1461   :  { %v7695_v47 = vld [vmem:[%s12782_s17 + $0x258] sm:$0xff]  }
0x1463   :  { %10232 = vmatpush3.bf16.msra.mxu0 %v7655_v31  ;;  %v7694_v31 = vld [vmem:[%s12782_s17 + $0x250] sm:$0xff]  }
0x1464   :  { %10233 = vmatprep.subr.bf16.mxu0 %v10737_v11 }
0x1465   :  { %v12347_v50 = vpop.f32.mrb[128].mxu1 }
0x1466   :  { %v9655_v17 = vpop.f32.mrb[129].mxu1 }
0x1467   :  { %10235 = vmatpush3.bf16.msra.mxu0 %v7656_v28  ;;  %v5654_v24 = vpop.f32.mrb[130].mxu1  ;;  %v7696_v28 = vld [vmem:[%s12782_s17 + $0x260] sm:$0xff]  }
0x1468   :  { %10236 = vmatprep.subr.bf16.mxu0 %v10737_v11  ;;  %v9656_v25 = vpop.f32.mrb[131].mxu1 }
0x146b   :  { %10238 = vmatpush3.bf16.msra.mxu0 %v7657_v26  ;;  %v7697_v26 = vld [vmem:[%s12782_s17 + $0x268] sm:$0xff]  }
0x146c   :  { %10239 = vmatprep.subr.bf16.mxu0 %v10737_v11 }
0x146d   :  { %v12387_v32 = vpop.f32.mrb[132].mxu1 }
0x146e   :  { %v9698_v52 = vpop.f32.mrb[133].mxu1 }
0x146f   :  { %10241 = vmatpush3.bf16.msra.mxu0 %v7658_v44  ;;  %v5802_v46 = vpop.f32.mrb[134].mxu1  ;;  %v7698_v44 = vld [vmem:[%s12782_s17 + $0x270] sm:$0xff]  }
0x1470   :  { %10242 = vmatprep.subr.bf16.mxu0 %v10737_v11  ;;  %v9699_v48 = vpop.f32.mrb[135].mxu1 }
0x1471   :  { %v7709_v48 = vld [vmem:[%s12782_s17 + $0x2c8] sm:$0xff]  }
0x1473   :  { %10244 = vmatpush3.bf16.msra.mxu0 %v7659_v36  ;;  %v7699_v36 = vld [vmem:[%s12782_s17 + $0x278] sm:$0xff]  }
0x1474   :  { %10245 = vmatprep.subr.bf16.mxu0 %v10737_v11 }
0x1475   :  { %v12424_v1 = vpop.f32.mrb[136].mxu1 }
0x1476   :  { %9518 = vmatmul.mubr.f32.vlgmr.msra.gmra.mrb[54].mxu0 %v5059_v10  ;;  %v9741_v13 = vpop.f32.mrb[137].mxu1  ;;  %v7681_v10 = vld [vmem:[%s12782_s17 + $0x1e8] sm:$0xff]  }
0x1477   :  { %10247 = vmatpush3.bf16.msra.mxu0 %v7660_v58  ;;  %9560 = vmatprep.mubr.msk.f32.mxu0 %vm10738_vm1, %v10739_v12  ;;  %v5950_v3 = vpop.f32.mrb[138].mxu1  ;;  %v7700_v58 = vld [vmem:[%s12782_s17 + $0x280] sm:$0xff]  }
0x1478   :  { %10248 = vmatprep.subr.bf16.mxu0 %v10737_v11  ;;  %v9742_v4 = vpop.f32.mrb[139].mxu1 }
0x1479   :  { %v7717_v4 = vld [vmem:[%s12782_s17 + $0x308] sm:$0xff]  }
0x147b   :  { %10250 = vmatpush3.bf16.msra.mxu0 %v7661_v60  ;;  %v7701_v60 = vld [vmem:[%s12782_s17 + $0x288] sm:$0xff]  }
0x147c   :  { %10251 = vmatprep.subr.bf16.mxu0 %v10737_v11 }
0x147d   :  { %v12461_v20 = vpop.f32.mrb[140].mxu1 }
0x147e   :  { %v9784_v54 = vpop.f32.mrb[141].mxu1 }
0x147f   :  { %10253 = vmatpush3.bf16.msra.mxu0 %v7662_v30  ;;  %v7702_v30 = vld [vmem:[%s12782_s17 + $0x290] sm:$0xff]   ;;  %v7727_v54 = vld [vmem:[%s12782_s17 + $0x358] sm:$0xff]  }
0x1480   :  { %10254 = vmatprep.subr.bf16.mxu0 %v10737_v11 }
0x1483   :  { %10256 = vmatpush3.bf16.msra.mxu0 %v7663_v42  ;;  %v7704_v42 = vld [vmem:[%s12782_s17 + $0x2a0] sm:$0xff]  }
0x1484   :  { %10257 = vmatprep.subr.bf16.mxu0 %v10737_v11 }
0x1487   :  { %10259 = vmatpush3.bf16.msra.mxu0 %v7664_v45  ;;  %v7705_v45 = vld [vmem:[%s12782_s17 + $0x2a8] sm:$0xff]  }
0x1488   :  { %10260 = vmatprep.subr.bf16.mxu0 %v10737_v11 }
0x148b   :  { %10262 = vmatpush3.bf16.msra.mxu0 %v7665_v34  ;;  %v7706_v34 = vld [vmem:[%s12782_s17 + $0x2b0] sm:$0xff]  }
0x148c   :  { %10263 = vmatprep.subr.bf16.mxu0 %v10737_v11 }
0x148f   :  { %10265 = vmatpush3.bf16.msra.mxu0 %v7666_v35  ;;  %v7707_v35 = vld [vmem:[%s12782_s17 + $0x2b8] sm:$0xff]  }
0x1490   :  { %10266 = vmatprep.subr.bf16.mxu0 %v10737_v11 }
0x1493   :  { %10268 = vmatpush3.bf16.msra.mxu0 %v7667_v40 }
0x1494   :  { %10269 = vmatprep.subr.bf16.mxu0 %v10737_v11 }
0x1496   :  { %9561 = vmatmul.mubr.f32.vlgmr.msra.gmra.mrb[54].mxu0 %v12303_v56  ;;  %v6098_v56 = vpop.f32.mrb[142].mxu1 }
0x1497   :  { %10271 = vmatpush3.bf16.msra.mxu0 %v7668_v49  ;;  %9603 = vmatprep.mubr.msk.f32.mxu0 %vm10738_vm1, %v10739_v12  ;;  %v9785_v41 = vpop.f32.mrb[143].mxu1  ;;  %v7728_v56 = vld [vmem:[%s12782_s17 + $0x360] sm:$0xff]  }
0x1498   :  { %10272 = vmatprep.subr.bf16.mxu0 %v10737_v11  ;;  %v12498_v39 = vpop.f32.mrb[144].mxu1  ;;  %v7729_v41 = vld [vmem:[%s12782_s17 + $0x368] sm:$0xff]  }
0x1499   :  { %v9827_v29 = vpop.f32.mrb[145].mxu1 }
0x149a   :  { %v7739_v29 = vld [vmem:[%s12782_s17 + $0x3b8] sm:$0xff]  }
0x149b   :  { %10274 = vmatpush3.bf16.msra.mxu0 %v7669_v53  ;;  %v7710_v53 = vld [vmem:[%s12782_s17 + $0x2d0] sm:$0xff]  }
0x149c   :  { %10275 = vmatprep.subr.bf16.mxu0 %v10737_v11 }
0x149f   :  { %10277 = vmatpush3.bf16.msra.mxu0 %v7670_v55  ;;  %v7711_v55 = vld [vmem:[%s12782_s17 + $0x2d8] sm:$0xff]  }
0x14a0   :  { %10278 = vmatprep.subr.bf16.mxu0 %v10737_v11 }
0x14a3   :  { %10280 = vmatpush3.bf16.msra.mxu0 %v7671_v59  ;;  %v7712_v59 = vld [vmem:[%s12782_s17 + $0x2e0] sm:$0xff]  }
0x14a4   :  { %10281 = vmatprep.subr.bf16.mxu0 %v10737_v11 }
0x14a7   :  { %10283 = vmatpush3.bf16.msra.mxu0 %v7672_v61  ;;  %v7713_v61 = vld [vmem:[%s12782_s17 + $0x2e8] sm:$0xff]  }
0x14a8   :  { %10284 = vmatprep.subr.bf16.mxu0 %v10737_v11 }
0x14ab   :  { %10286 = vmatpush3.bf16.msra.mxu0 %v7673_v62  ;;  %v7714_v62 = vld [vmem:[%s12782_s17 + $0x2f0] sm:$0xff]  }
0x14ac   :  { %10287 = vmatprep.subr.bf16.mxu0 %v10737_v11 }
0x14af   :  { %10289 = vmatpush3.bf16.msra.mxu0 %v7674_v63  ;;  %v7715_v63 = vld [vmem:[%s12782_s17 + $0x2f8] sm:$0xff]  }
0x14b0   :  { %10290 = vmatprep.subr.bf16.mxu0 %v10737_v11 }
0x14b3   :  { %10292 = vmatpush3.bf16.msra.mxu0 %v7675_v0 }
0x14b4   :  { %10293 = vmatprep.subr.bf16.mxu0 %v10737_v11 }
0x14b6   :  { %9604 = vmatmul.mubr.f32.vlgmr.msra.gmra.mrb[54].mxu0 %v12313_v27  ;;  %v7689_v27 = vld [vmem:[%s12782_s17 + $0x228] sm:$0xff]  }
0x14b7   :  { %10295 = vmatpush3.bf16.msra.mxu0 %v7676_v2  ;;  %9646 = vmatprep.mubr.msk.f32.mxu0 %vm10738_vm1, %v10739_v12  ;;  %v7716_v2 = vld [vmem:[%s12782_s17 + $0x300] sm:$0xff]  }
0x14b8   :  { %10296 = vmatprep.subr.bf16.mxu0 %v10737_v11 }
0x14bb   :  { %10298 = vmatpush3.bf16.msra.mxu0 %v7677_v5  ;;  %v7718_v5 = vld [vmem:[%s12782_s17 + $0x310] sm:$0xff]  }
0x14bc   :  { %10299 = vmatprep.subr.bf16.mxu0 %v10737_v11 }
0x14bf   :  { %10301 = vmatpush3.bf16.msra.mxu0 %v7678_v6  ;;  %v7719_v6 = vld [vmem:[%s12782_s17 + $0x318] sm:$0xff]  }
0x14c0   :  { %10302 = vmatprep.subr.bf16.mxu0 %v10737_v11 }
0x14c3   :  { %10304 = vmatpush3.bf16.msra.mxu0 %v7679_v7  ;;  %v7720_v7 = vld [vmem:[%s12782_s17 + $0x320] sm:$0xff]  }
0x14c4   :  { %10305 = vmatprep.subr.bf16.mxu0 %v10737_v11 }
0x14c7   :  { %10307 = vmatpush3.bf16.msra.mxu0 %v7680_v8  ;;  %v7721_v8 = vld [vmem:[%s12782_s17 + $0x328] sm:$0xff]  }
0x14c8   :  { %10308 = vmatprep.subr.bf16.mxu0 %v10737_v11 }
0x14cb   :  { %10310 = vmatpush3.bf16.msra.mxu0 %v7681_v10  ;;  %v7722_v10 = vld [vmem:[%s12782_s17 + $0x330] sm:$0xff]  }
0x14cc   :  { %10311 = vmatprep.subr.bf16.mxu0 %v10737_v11 }
0x14cf   :  { %10313 = vmatpush3.bf16.msra.mxu0 %v7682_v33  ;;  %v7723_v33 = vld [vmem:[%s12782_s17 + $0x338] sm:$0xff]  }
0x14d0   :  { %10314 = vmatprep.subr.bf16.mxu0 %v10737_v11 }
0x14d3   :  { %10316 = vmatpush3.bf16.msra.mxu0 %v7683_v14  ;;  %v7724_v14 = vld [vmem:[%s12782_s17 + $0x340] sm:$0xff]  }
0x14d4   :  { %10317 = vmatprep.subr.bf16.mxu0 %v10737_v11 }
0x14d6   :  { %9647 = vmatmul.mubr.f32.vlgmr.msra.gmra.mrb[54].mxu0 %v12325_v37  ;;  %v6246_v37 = vpop.f32.mrb[146].mxu1 }
0x14d7   :  { %10319 = vmatpush3.bf16.msra.mxu0 %v7684_v51  ;;  %9689 = vmatprep.mubr.msk.f32.mxu0 %vm10738_vm1, %v10739_v12  ;;  %v9828_v22 = vpop.f32.mrb[147].mxu1  ;;  %v7726_v51 = vld [vmem:[%s12782_s17 + $0x350] sm:$0xff]   ;;  %v7740_v37 = vld [vmem:[%s12782_s17 + $0x3c0] sm:$0xff]  }
0x14d8   :  { %10320 = vmatprep.subr.bf16.mxu0 %v10737_v11  ;;  %v7741_v22 = vld [vmem:[%s12782_s17 + $0x3c8] sm:$0xff]  }
0x14db   :  { %10322 = vmatpush3.bf16.msra.mxu0 %v7685_v18  ;;  %v7730_v18 = vld [vmem:[%s12782_s17 + $0x370] sm:$0xff]  }
0x14dc   :  { %10323 = vmatprep.subr.bf16.mxu0 %v10737_v11 }
0x14df   :  { %10325 = vmatpush3.bf16.msra.mxu0 %v7686_v9  ;;  %v7731_v9 = vld [vmem:[%s12782_s17 + $0x378] sm:$0xff]  }
0x14e0   :  { %10326 = vmatprep.subr.bf16.mxu0 %v10737_v11 }
0x14e3   :  { %10328 = vmatpush3.bf16.msra.mxu0 %v7687_v38  ;;  %v7732_v38 = vld [vmem:[%s12782_s17 + $0x380] sm:$0xff]  }
0x14e4   :  { %10329 = vmatprep.subr.bf16.mxu0 %v10737_v11 }
0x14e7   :  { %10331 = vmatpush3.bf16.msra.mxu0 %v7688_v21  ;;  %v7733_v21 = vld [vmem:[%s12782_s17 + $0x388] sm:$0xff]  }
0x14e8   :  { %10332 = vmatprep.subr.bf16.mxu0 %v10737_v11 }
0x14eb   :  { %10334 = vmatpush3.bf16.msra.mxu0 %v7689_v27  ;;  %v7734_v27 = vld [vmem:[%s12782_s17 + $0x390] sm:$0xff]  }
0x14ec   :  { %10335 = vmatprep.subr.bf16.mxu0 %v10737_v11 }
0x14ef   :  { %10337 = vmatpush3.bf16.msra.mxu0 %v7690_v15  ;;  %v7735_v15 = vld [vmem:[%s12782_s17 + $0x398] sm:$0xff]  }
0x14f0   :  { %10338 = vmatprep.subr.bf16.mxu0 %v10737_v11 }
0x14f3   :  { %10340 = vmatpush3.bf16.msra.mxu0 %v7691_v16  ;;  %v7736_v16 = vld [vmem:[%s12782_s17 + $0x3a0] sm:$0xff]  }
0x14f4   :  { %10341 = vmatprep.subr.bf16.mxu0 %v10737_v11 }
0x14f6   :  { %9690 = vmatmul.mubr.f32.vlgmr.msra.gmra.mrb[54].mxu0 %v12347_v50  ;;  %v12535_v50 = vpop.f32.mrb[148].mxu1 }
0x14f7   :  { %10343 = vmatpush3.bf16.msra.mxu0 %v7692_v19  ;;  %9732 = vmatprep.mubr.msk.f32.mxu0 %vm10738_vm1, %v10739_v12  ;;  %v9870_v17 = vpop.f32.mrb[149].mxu1  ;;  %v7738_v19 = vld [vmem:[%s12782_s17 + $0x3b0] sm:$0xff]  }
0x14f8   :  { %10344 = vmatprep.subr.bf16.mxu0 %v10737_v11  ;;  %v6394_v24 = vpop.f32.mrb[150].mxu1 }
0x14f9   :  { %v9871_v25 = vpop.f32.mrb[151].mxu1 }
0x14fa   :  { %v12572_v40 = vpop.f32.mrb[152].mxu1 }
0x14fb   :  { %10346 = vmatpush3.bf16.msra.mxu0 %v7693_v23  ;;  %v9913_v49 = vpop.f32.mrb[153].mxu1  ;;  %v7742_v23 = vld [vmem:[%s12782_s17 + $0x3d0] sm:$0xff]  }
0x14fc   :  { %10347 = vmatprep.subr.bf16.mxu0 %v10737_v11  ;;  %v6542_v52 = vpop.f32.mrb[154].mxu1 }
0x14fd   :  { %v9914_v46 = vpop.f32.mrb[155].mxu1 }
0x14fe   :  { %v12609_v0 = vpop.f32.mrb[156].mxu1 }
0x14ff   :  { %10349 = vmatpush3.bf16.msra.mxu0 %v7694_v31  ;;  %v7744_v31 = vld [vmem:[%s12782_s17 + $0x3e0] sm:$0xff]  }
0x1500   :  { %10350 = vmatprep.subr.bf16.mxu0 %v10737_v11 }
0x1503   :  { %10352 = vmatpush3.bf16.msra.mxu0 %v7695_v47  ;;  %v7745_v47 = vld [vmem:[%s12782_s17 + $0x3e8] sm:$0xff]  }
0x1504   :  { %10353 = vmatprep.subr.bf16.mxu0 %v10737_v11 }
0x1507   :  { %10355 = vmatpush3.bf16.msra.mxu0 %v7696_v28  ;;  %v7746_v28 = vld [vmem:[%s12782_s17 + $0x3f0] sm:$0xff]  }
0x1508   :  { %10356 = vmatprep.subr.bf16.mxu0 %v10737_v11 }
0x150b   :  { %10358 = vmatpush3.bf16.msra.mxu0 %v7697_v26  ;;  %v7747_v26 = vld [vmem:[%s12782_s17 + $0x3f8] sm:$0xff]  }
0x150c   :  { %10359 = vmatprep.subr.bf16.mxu0 %v10737_v11 }
0x150f   :  { %10361 = vmatpush3.bf16.msra.mxu0 %v7698_v44 }
0x1510   :  { %10362 = vmatprep.subr.bf16.mxu0 %v10737_v11 }
0x1513   :  { %10364 = vmatpush3.bf16.msra.mxu0 %v7699_v36 }
0x1514   :  { %10365 = vmatprep.subr.bf16.mxu0 %v10737_v11 }
0x1516   :  { %9733 = vmatmul.mubr.f32.vlgmr.msra.gmra.mrb[54].mxu0 %v12387_v32  ;;  %v7708_v32 = vld [vmem:[%s12782_s17 + $0x2c0] sm:$0xff]  }
0x1517   :  { %10367 = vmatpush3.bf16.msra.mxu0 %v7700_v58  ;;  %9775 = vmatprep.mubr.msk.f32.mxu0 %vm10738_vm1, %v10739_v12 }
0x1518   :  { %10368 = vmatprep.subr.bf16.mxu0 %v10737_v11 }
0x151b   :  { %10370 = vmatpush3.bf16.msra.mxu0 %v7701_v60 }
0x151c   :  { %10371 = vmatprep.subr.bf16.mxu0 %v10737_v11 }
0x151f   :  { %10373 = vmatpush3.bf16.msra.mxu0 %v7702_v30 }
0x1520   :  { %10374 = vmatprep.subr.bf16.mxu0 %v10737_v11 }
0x1523   :  { %10376 = vmatpush3.bf16.msra.mxu0 %v7703_v43 }
0x1524   :  { %10377 = vmatprep.subr.bf16.mxu0 %v10737_v11 }
0x1527   :  { %10379 = vmatpush3.bf16.msra.mxu0 %v7704_v42 }
0x1528   :  { %10380 = vmatprep.subr.bf16.mxu0 %v10737_v11 }
0x152b   :  { %10382 = vmatpush3.bf16.msra.mxu0 %v7705_v45 }
0x152c   :  { %10383 = vmatprep.subr.bf16.mxu0 %v10737_v11 }
0x152f   :  { %10385 = vmatpush3.bf16.msra.mxu0 %v7706_v34 }
0x1530   :  { %10386 = vmatprep.subr.bf16.mxu0 %v10737_v11 }
0x1533   :  { %10388 = vmatpush3.bf16.msra.mxu0 %v7707_v35 }
0x1534   :  { %10389 = vmatprep.subr.bf16.mxu0 %v10737_v11 }
0x1536   :  { %9776 = vmatmul.mubr.f32.vlgmr.msra.gmra.mrb[54].mxu0 %v12424_v1  ;;  %v9956_v1 = vpop.f32.mrb[157].mxu1 }
0x1537   :  { %10391 = vmatpush3.bf16.msra.mxu0 %v7708_v32  ;;  %9818 = vmatprep.mubr.msk.f32.mxu0 %vm10738_vm1, %v10739_v12  ;;  %v6690_v13 = vpop.f32.mrb[158].mxu1 }
0x1538   :  { %10392 = vmatprep.subr.bf16.mxu0 %v10737_v11  ;;  %v9957_v3 = vpop.f32.mrb[159].mxu1 }
0x153b   :  { %10394 = vmatpush3.bf16.msra.mxu0 %v7709_v48 }
0x153c   :  { %10395 = vmatprep.subr.bf16.mxu0 %v10737_v11 }
0x153f   :  { %10397 = vmatpush3.bf16.msra.mxu0 %v7710_v53 }
0x1540   :  { %10398 = vmatprep.subr.bf16.mxu0 %v10737_v11 }
0x1543   :  { %10400 = vmatpush3.bf16.msra.mxu0 %v7711_v55 }
0x1544   :  { %10401 = vmatprep.subr.bf16.mxu0 %v10737_v11 }
0x1547   :  { %10403 = vmatpush3.bf16.msra.mxu0 %v7712_v59 }
0x1548   :  { %10404 = vmatprep.subr.bf16.mxu0 %v10737_v11 }
0x154b   :  { %10406 = vmatpush3.bf16.msra.mxu0 %v7713_v61 }
0x154c   :  { %10407 = vmatprep.subr.bf16.mxu0 %v10737_v11 }
0x154f   :  { %10409 = vmatpush3.bf16.msra.mxu0 %v7714_v62 }
0x1550   :  { %10410 = vmatprep.subr.bf16.mxu0 %v10737_v11 }
0x1553   :  { %10412 = vmatpush3.bf16.msra.mxu0 %v7715_v63 }
0x1554   :  { %10413 = vmatprep.subr.bf16.mxu0 %v10737_v11 }
0x1556   :  { %9819 = vmatmul.mubr.f32.vlgmr.msra.gmra.mrb[54].mxu0 %v12461_v20  ;;  %v7725_v20 = vld [vmem:[%s12782_s17 + $0x348] sm:$0xff]  }
0x1557   :  { %10415 = vmatpush3.bf16.msra.mxu0 %v7716_v2  ;;  %9861 = vmatprep.mubr.msk.f32.mxu0 %vm10738_vm1, %v10739_v12 }
0x1558   :  { %10416 = vmatprep.subr.bf16.mxu0 %v10737_v11 }
0x155b   :  { %10418 = vmatpush3.bf16.msra.mxu0 %v7717_v4 }
0x155c   :  { %10419 = vmatprep.subr.bf16.mxu0 %v10737_v11 }
0x155f   :  { %10421 = vmatpush3.bf16.msra.mxu0 %v7718_v5 }
0x1560   :  { %10422 = vmatprep.subr.bf16.mxu0 %v10737_v11 }
0x1563   :  { %10424 = vmatpush3.bf16.msra.mxu0 %v7719_v6 }
0x1564   :  { %10425 = vmatprep.subr.bf16.mxu0 %v10737_v11 }
0x1567   :  { %10427 = vmatpush3.bf16.msra.mxu0 %v7720_v7 }
0x1568   :  { %10428 = vmatprep.subr.bf16.mxu0 %v10737_v11 }
0x156b   :  { %10430 = vmatpush3.bf16.msra.mxu0 %v7721_v8 }
0x156c   :  { %10431 = vmatprep.subr.bf16.mxu0 %v10737_v11 }
0x156f   :  { %10433 = vmatpush3.bf16.msra.mxu0 %v7722_v10 }
0x1570   :  { %10434 = vmatprep.subr.bf16.mxu0 %v10737_v11 }
0x1573   :  { %10436 = vmatpush3.bf16.msra.mxu0 %v7723_v33 }
0x1574   :  { %10437 = vmatprep.subr.bf16.mxu0 %v10737_v11 }
0x1576   :  { %9862 = vmatmul.mubr.f32.vlgmr.msra.gmra.mrb[54].mxu0 %v12498_v39  ;;  %v7737_v39 = vld [vmem:[%s12782_s17 + $0x3a8] sm:$0xff]  }
0x1577   :  { %10439 = vmatpush3.bf16.msra.mxu0 %v7724_v14  ;;  %9904 = vmatprep.mubr.msk.f32.mxu0 %vm10738_vm1, %v10739_v12 }
0x1578   :  { %10440 = vmatprep.subr.bf16.mxu0 %v10737_v11 }
0x157b   :  { %10442 = vmatpush3.bf16.msra.mxu0 %v7725_v20 }
0x157c   :  { %10443 = vmatprep.subr.bf16.mxu0 %v10737_v11 }
0x157f   :  { %10445 = vmatpush3.bf16.msra.mxu0 %v7726_v51 }
0x1580   :  { %10446 = vmatprep.subr.bf16.mxu0 %v10737_v11 }
0x1583   :  { %10448 = vmatpush3.bf16.msra.mxu0 %v7727_v54 }
0x1584   :  { %10449 = vmatprep.subr.bf16.mxu0 %v10737_v11 }
0x1587   :  { %10451 = vmatpush3.bf16.msra.mxu0 %v7728_v56 }
0x1588   :  { %10452 = vmatprep.subr.bf16.mxu0 %v10737_v11 }
0x158b   :  { %10454 = vmatpush3.bf16.msra.mxu0 %v7729_v41 }
0x158c   :  { %10455 = vmatprep.subr.bf16.mxu0 %v10737_v11 }
0x158f   :  { %10457 = vmatpush3.bf16.msra.mxu0 %v7730_v18 }
0x1590   :  { %10458 = vmatprep.subr.bf16.mxu0 %v10737_v11 }
0x1593   :  { %10460 = vmatpush3.bf16.msra.mxu0 %v7731_v9 }
0x1594   :  { %10461 = vmatprep.subr.bf16.mxu0 %v10737_v11 }
0x1596   :  { %9905 = vmatmul.mubr.f32.vlgmr.msra.gmra.mrb[54].mxu0 %v12535_v50 }
0x1597   :  { %10463 = vmatpush3.bf16.msra.mxu0 %v7732_v38  ;;  %9947 = vmatprep.mubr.msk.f32.mxu0 %vm10738_vm1, %v10739_v12 }
0x1598   :  { %10464 = vmatprep.subr.bf16.mxu0 %v10737_v11 }
0x159b   :  { %10466 = vmatpush3.bf16.msra.mxu0 %v7733_v21 }
0x159c   :  { %10467 = vmatprep.subr.bf16.mxu0 %v10737_v11 }
0x159f   :  { %10469 = vmatpush3.bf16.msra.mxu0 %v7734_v27 }
0x15a0   :  { %10470 = vmatprep.subr.bf16.mxu0 %v10737_v11 }
0x15a3   :  { %10472 = vmatpush3.bf16.msra.mxu0 %v7735_v15 }
0x15a4   :  { %10473 = vmatprep.subr.bf16.mxu0 %v10737_v11 }
0x15a7   :  { %10475 = vmatpush3.bf16.msra.mxu0 %v7736_v16 }
0x15a8   :  { %10476 = vmatprep.subr.bf16.mxu0 %v10737_v11 }
0x15ab   :  { %10478 = vmatpush3.bf16.msra.mxu0 %v7737_v39 }
0x15ac   :  { %10479 = vmatprep.subr.bf16.mxu0 %v10737_v11 }
0x15af   :  { %10481 = vmatpush3.bf16.msra.mxu0 %v7738_v19 }
0x15b0   :  { %10482 = vmatprep.subr.bf16.mxu0 %v10737_v11 }
0x15b3   :  { %10484 = vmatpush3.bf16.msra.mxu0 %v7739_v29 }
0x15b4   :  { %10485 = vmatprep.subr.bf16.mxu0 %v10737_v11 }
0x15b6   :  { %9948 = vmatmul.mubr.f32.vlgmr.msra.gmra.mrb[54].mxu0 %v12572_v40 }
0x15b7   :  { %10487 = vmatpush3.bf16.msra.mxu0 %v7740_v37  ;;  %9990 = vmatprep.mubr.msk.f32.mxu0 %vm10738_vm1, %v10739_v12  ;;  %v7743_v12 = vld [vmem:[%s12782_s17 + $0x3d8] sm:$0xff]   ;;  %vm6797_vm1 = vcmask 0  }
0x15b8   :  { %10488 = vmatprep.subr.bf16.mxu0 %v10737_v11 }
0x15bb   :  { %10490 = vmatpush3.bf16.msra.mxu0 %v7741_v22 }
0x15bc   :  { %10491 = vmatprep.subr.bf16.mxu0 %v10737_v11 }
0x15bf   :  { %10493 = vmatpush3.bf16.msra.mxu0 %v7742_v23 }
0x15c0   :  { %10494 = vmatprep.subr.bf16.mxu0 %v10737_v11 }
0x15c3   :  { %10496 = vmatpush3.bf16.msra.mxu0 %v7743_v12 }
0x15c4   :  { %10497 = vmatprep.subr.bf16.mxu0 %v10737_v11 }
0x15c7   :  { %10499 = vmatpush3.bf16.msra.mxu0 %v7744_v31 }
0x15c8   :  { %10500 = vmatprep.subr.bf16.mxu0 %v10737_v11 }
0x15cb   :  { %10502 = vmatpush3.bf16.msra.mxu0 %v7745_v47 }
0x15cc   :  { %10503 = vmatprep.subr.bf16.mxu0 %v10737_v11 }
0x15cf   :  { %10505 = vmatpush3.bf16.msra.mxu0 %v7746_v28 }
0x15d0   :  { %10506 = vmatprep.subr.bf16.mxu0 %v10737_v11 }
0x15d3   :  { %10508 = vmatpush3.bf16.msra.mxu0 %v7747_v26 }
0x15d6   :  { %9991 = vmatmul.mubr.f32.vlgmr.msra.gmra.mrb[54].mxu0 %v12609_v0 }
0x16a9   :  { %v6791_v44 = vpop.f32.mrb[54].mxu0 }
0x16aa   :  { %v10509_v36 = vadd.f32 %v6791_v44, %v12272_v57  ;;  %v9992_v50 = vpop.f32.mrb[55].mxu0 }
0x16ac   :  { %v6796_v58 = vmul.f32 0.5, %v10509_v36 }
0x16ae   :  { %6798 = vst.msk [vmem:[#allocation2] sm:$0x1] %vm6797_vm1, %v6796_v58 }
0x16af   :  { %10724 = shalt.err (!%p10721_p4)
}
0x16b0   :  { %s10725_s22 = scalar_lea.hbm %s12783_s18, 16 }
0x16b1   :  { %p10726_p5 = scmp.ne.s32.totalorder %s12783_s18, %s10725_s22  ;;  %p10729_p6 = scmp.lt.u32.totalorder %s10725_s22, %s12783_s18 }
0x16b3   :  { %p10731_p7 = pnand %p10729_p6, %p10726_p5 }
0x16b5   :  { %10734 = shalt.err (!%p10731_p7)
}
0x16b6   :  { %6808 = dma.vmem_to_hbm [thread:$0]  %s6806_s9, 16, %s12783_s18, [#allocation3]  }
0x16b7   :  { %10735 = dma.done.wait [#allocation3], 16  }
0x16b8   :  { %10736 = vsyncadd [#allocation3], 4294967280 }
0x16b9   :  { %6812 = vsyncpa [#allocation3], 1 }

</bundles_post_ra>
